<compile_context>
chip_gen: v5e
topology: v5e:2x2
jax: 0.10.0
libtpu: 0.0.40
codegen_flags: <defaults>
</compile_context>

<pallas_src>
import functools

import jax
import jax.numpy as jnp
import numpy as np
from jax.experimental import pallas as pl
from jax.experimental.pallas import tpu as pltpu

BN_EPS = 1e-5


# ------------------------------ fused kernel --------------------------------
def _ember_kernel(xw_ref, w11_ref, b11_ref, s12_ref, t12_ref,
                  w14_ref, b14_ref, s15_ref, t15_ref,
                  w21_ref, b21_ref, s22_ref, t22_ref,
                  w24_ref, b24_ref, s25_ref, t25_ref,
                  wout_ref, bout_ref, o_ref, h2_ref, *, tb, mt, l2, half):
    bf16, f32 = jnp.bfloat16, jnp.float32

    # ---- conv_11 (kernel == stride == 64 -> per-window GEMM) + ReLU + BN12 --
    xw = xw_ref[0]                                                  # bf16 (slots*tb, 64)
    z1 = jnp.dot(xw, w11_ref[...], preferred_element_type=f32)      # (slots*tb, 128)
    h1 = jnp.maximum(z1 + b11_ref[...], 0.0) * s12_ref[...] + t12_ref[...]
    h1b = h1.astype(bf16)          # single bf16 pack; all 3 taps slice this copy

    # ---- conv_14 (k=3, s=2) as 3 shifted GEMMs + ReLU + BN15 ----------------
    # Rows of h1 are ordered [even time steps | odd time steps], so each tap
    # (time 2t, 2t+1, 2t+2) is a contiguous, sublane-aligned row range.
    z2 = jnp.dot(h1b[0:l2 * tb, :], w14_ref[0], preferred_element_type=f32)
    for k, r0 in ((1, half * tb), (2, tb)):
        z2 = z2 + jnp.dot(h1b[r0:r0 + l2 * tb, :], w14_ref[k],
                          preferred_element_type=f32)
    h2 = jnp.maximum(z2 + b14_ref[...], 0.0) * s15_ref[...] + t15_ref[...]
    h2_ref[...] = h2.astype(bf16)  # bf16 VMEM intermediate for the dense tail

    # ---- dense tail, sub-tiled over M to bound accumulator vreg pressure ----
    # linr_21's flatten is folded into the offline weight permutation; the
    # contraction is K-chunked over the l2 time steps (per-chunk loads from
    # the h2 scratch, accumulate in <= 64x256 f32 vregs).
    n_sub = tb // mt
    for m in range(n_sub):
        m0 = m * mt
        z3 = jnp.dot(h2_ref[m0:m0 + mt, :], w21_ref[0],
                     preferred_element_type=f32)                    # (mt, 256)
        for t in range(1, l2):
            chunk = h2_ref[t * tb + m0:t * tb + m0 + mt, :]         # bf16 (mt, 128)
            z3 = z3 + jnp.dot(chunk, w21_ref[t], preferred_element_type=f32)
        h3 = jnp.maximum(z3 + b21_ref[...], 0.0) * s22_ref[...] + t22_ref[...]

        # linr_24 + ReLU + BN25
        z4 = jnp.dot(h3.astype(bf16), w24_ref[...], preferred_element_type=f32)
        h4 = jnp.maximum(z4 + b24_ref[...], 0.0) * s25_ref[...] + t25_ref[...]

        # linr_out (lane-padded to 128 outputs) + sigmoid (exp + EUP reciprocal)
        z5 = jnp.dot(h4.astype(bf16), wout_ref[...], preferred_element_type=f32)
        z5 = z5 + bout_ref[...]
        sig = pl.reciprocal(1.0 + jnp.exp(-z5), approx=True)
        o_ref[0, m0:m0 + mt, :] = sig.astype(o_ref.dtype)


# ------------------------------- wrapper -------------------------------------
def ember_forward(x, prep, *, tile_b=128):
    """x: (B, 1, L) f32 -> (B, 2) f32 (sigmoid outputs)."""
    B, _, L = x.shape
    L1 = (L - 64) // 64 + 1                    # 37
    L2 = (L1 - 3) // 2 + 1                     # 18
    half = -(-(L1 + 1) // 2)                   # even-slot count (>= L2+1)
    half = -(-half // 4) * 4                   # pad so slots is a multiple of 8
    slots = 2 * half                           # 40 padded time slots

    # Batch tile: >= 8, multiple of 8 (sublane-aligned in-kernel slices);
    # capped at tile_b (default 128).  Above 64 keep a multiple of 64 so the
    # dense-tail M sub-tiling divides evenly.  On v7x keep tile_b <= 256 so
    # G >= 2 feeds both TensorCores; v6e/v5e can go higher.
    TB = min(-(-B // 8) * 8, tile_b)
    if TB > 64:
        TB = (TB // 64) * 64
    MT = min(TB, 64)
    G = -(-B // TB)
    Bp = G * TB

    # conv_11 windows (stride == kernel -> non-overlapping), cast to bf16 up
    # front (halves DMA + permute traffic), zero-pad time to `slots`, and
    # de-interleave even/odd windows so conv_14 taps are contiguous rows.
    xw = x[:, 0, :L1 * 64].reshape(B, L1, 64).astype(jnp.bfloat16)
    xw = jnp.pad(xw, ((0, Bp - B), (0, slots - L1), (0, 0)))
    perm = np.concatenate([np.arange(0, slots, 2), np.arange(1, slots, 2)])
    xw = xw[:, perm, :]                                            # (Bp, slots, 64)
    # per-tile time-major layout: row = slot*TB + local_batch
    xw = xw.reshape(G, TB, slots, 64).transpose(0, 2, 1, 3).reshape(G, slots * TB, 64)

    kernel = functools.partial(_ember_kernel, tb=TB, mt=MT, l2=L2, half=half)

    def full(a):   # whole-array VMEM block, grid-invariant
        return pl.BlockSpec(a.shape, lambda i: (0,) * a.ndim)

    weights = (prep['w11'], prep['b11'], prep['s12'], prep['t12'],
               prep['w14'], prep['b14'], prep['s15'], prep['t15'],
               prep['w21'], prep['b21'], prep['s22'], prep['t22'],
               prep['w24'], prep['b24'], prep['s25'], prep['t25'],
               prep['wout'], prep['bout'])

    flops_per_sample = 2 * (L1 * 64 * 128 + L2 * 3 * 128 * 128
                            + 128 * L2 * 256 + 256 * 32 + 32 * 128)
    weight_bytes = int(sum(int(w.size) * w.dtype.itemsize for w in weights))
    cost = pl.CostEstimate(
        flops=int(Bp) * flops_per_sample,
        transcendentals=int(Bp) * 128,
        bytes_accessed=int(xw.size) * 2 + weight_bytes + int(Bp) * 128 * 4,
    )

    out = pl.pallas_call(
        kernel,
        out_shape=jax.ShapeDtypeStruct((G, TB, 128), jnp.float32),
        grid=(G,),
        in_specs=[pl.BlockSpec((1, slots * TB, 64), lambda i: (i, 0, 0))]
                 + [full(w) for w in weights],
        out_specs=pl.BlockSpec((1, TB, 128), lambda i: (i, 0, 0)),
        scratch_shapes=[pltpu.VMEM((L2 * TB, 128), jnp.bfloat16)],
        compiler_params=pltpu.CompilerParams(
            dimension_semantics=("parallel",),
            vmem_limit_bytes=48 * 1024 * 1024),
        cost_estimate=cost,
    )(xw, *weights)

    return out.reshape(Bp, 128)[:B, :2]


# ------------------------------ parameters -----------------------------------
def init_params(key):
    ks = jax.random.split(key, 16)

    def nrm(k, shape, s=0.05):
        return s * jax.random.normal(k, shape, jnp.float32)

    p = {}
    p['w11'] = nrm(ks[0], (128, 1, 64));   p['b11'] = nrm(ks[1], (128,))
    p['w14'] = nrm(ks[2], (128, 128, 3));  p['b14'] = nrm(ks[3], (128,))
    p['w21'] = nrm(ks[4], (256, 2304));    p['b21'] = nrm(ks[5], (256,))
    p['w24'] = nrm(ks[6], (32, 256));      p['b24'] = nrm(ks[7], (32,))
    p['wout'] = nrm(ks[8], (2, 32));       p['bout'] = nrm(ks[9], (2,))

    def bn(k, c):
        k1, k2, k3, k4 = jax.random.split(k, 4)
        gamma = 1.0 + 0.1 * jax.random.normal(k1, (c,), jnp.float32)
        beta = 0.1 * jax.random.normal(k2, (c,), jnp.float32)
        mean = 0.1 * jax.random.normal(k3, (c,), jnp.float32)
        var = 1.0 + 0.1 * jnp.abs(jax.random.normal(k4, (c,), jnp.float32))
        scale = gamma / jnp.sqrt(var + BN_EPS)
        shift = beta - mean * scale
        return scale, shift

    p['bn12_scale'], p['bn12_shift'] = bn(ks[10], 128)
    p['bn15_scale'], p['bn15_shift'] = bn(ks[11], 128)
    p['bn22_scale'], p['bn22_shift'] = bn(ks[12], 256)
    p['bn25_scale'], p['bn25_shift'] = bn(ks[13], 32)
    return p


def prepare_params(p, l2=18):
    """One-time offline weight layout prep (bf16 matmul operands, folded flatten)."""
    bf16 = jnp.bfloat16
    row = lambda v: v.reshape(1, -1).astype(jnp.float32)
    wout_pad = jnp.zeros((32, 128), jnp.float32).at[:, :2].set(p['wout'].T)
    bout_pad = jnp.zeros((1, 128), jnp.float32).at[0, :2].set(p['bout'])
    return {
        'w11': p['w11'][:, 0, :].T.astype(bf16),                       # (64, 128)
        'b11': row(p['b11']),
        's12': row(p['bn12_scale']), 't12': row(p['bn12_shift']),
        'w14': p['w14'].transpose(2, 1, 0).astype(bf16),               # (3, 128, 128) [k, cin, cout]
        'b14': row(p['b14']),
        's15': row(p['bn15_scale']), 't15': row(p['bn15_shift']),
        # linr_21 weight: (256, 2304), K index = c*18 + t  ->  (18, 128, 256) [t, c, n]
        'w21': p['w21'].reshape(256, 128, l2).transpose(2, 1, 0).astype(bf16),
        'b21': row(p['b21']),
        's22': row(p['bn22_scale']), 't22': row(p['bn22_shift']),
        'w24': p['w24'].T.astype(bf16),                                # (256, 32)
        'b24': row(p['b24']),
        's25': row(p['bn25_scale']), 't25': row(p['bn25_shift']),
        'wout': wout_pad.astype(bf16),                                 # (32, 128) lane-padded
        'bout': bout_pad,                                              # (1, 128)
    }


# ---------------------------- pure-JAX reference -----------------------------
def ref_forward(x, p):
    B, _, L = x.shape
    L1 = (L - 64) // 64 + 1
    L2 = (L1 - 3) // 2 + 1
    xw = x[:, 0, :L1 * 64].reshape(B, L1, 64)
    h1 = jnp.einsum('blk,ck->blc', xw, p['w11'][:, 0, :]) + p['b11']
    h1 = jnp.maximum(h1, 0.0) * p['bn12_scale'] + p['bn12_shift']
    idx = 2 * jnp.arange(L2)[:, None] + jnp.arange(3)[None, :]
    win = h1[:, idx, :]                                               # (B, 18, 3, 128)
    h2 = jnp.einsum('btkc,dck->btd', win, p['w14']) + p['b14']
    h2 = jnp.maximum(h2, 0.0) * p['bn15_scale'] + p['bn15_shift']
    x2 = h2.transpose(0, 2, 1).reshape(B, 128 * L2)                   # PyTorch flatten order
    x2 = jnp.maximum(x2 @ p['w21'].T + p['b21'], 0.0)
    x2 = x2 * p['bn22_scale'] + p['bn22_shift']
    x2 = jnp.maximum(x2 @ p['w24'].T + p['b24'], 0.0)
    x2 = x2 * p['bn25_scale'] + p['bn25_shift']
    return jax.nn.sigmoid(x2 @ p['wout'].T + p['bout'])


# --------------------------------- main ---------------------------------------
if __name__ == "__main__":
    key = jax.random.PRNGKey(0)
    kx, kp = jax.random.split(key)
    # Input length 2381 (as in the original model); batch = 2.
    x = jax.random.normal(kx, (2, 1, 2381), jnp.float32)
    params = init_params(kp)
    prep = prepare_params(params)

    fwd = jax.jit(ember_forward)
    out = jax.block_until_ready(fwd(x, prep))
    ref = jax.block_until_ready(ref_forward(x, params))

    assert out.shape == (2, 2)
    # bf16 matmuls + approx reciprocal in the kernel vs f32 reference.
    np.testing.assert_allclose(np.asarray(out), np.asarray(ref),
                               rtol=2e-2, atol=1e-2)
    print("KERNEL_OK")
</pallas_src>

<mosaic_0001>
module attributes {stable_mosaic.version = 11 : i64} {
  func.func @_ember_kernel(%arg0: i32, %arg1: memref<1x320x64xbf16, #tpu.memory_space<vmem>>, %arg2: memref<64x128xbf16, #tpu.memory_space<vmem>>, %arg3: memref<1x128xf32, #tpu.memory_space<vmem>>, %arg4: memref<1x128xf32, #tpu.memory_space<vmem>>, %arg5: memref<1x128xf32, #tpu.memory_space<vmem>>, %arg6: memref<3x128x128xbf16, #tpu.memory_space<vmem>>, %arg7: memref<1x128xf32, #tpu.memory_space<vmem>>, %arg8: memref<1x128xf32, #tpu.memory_space<vmem>>, %arg9: memref<1x128xf32, #tpu.memory_space<vmem>>, %arg10: memref<18x128x256xbf16, #tpu.memory_space<vmem>>, %arg11: memref<1x256xf32, #tpu.memory_space<vmem>>, %arg12: memref<1x256xf32, #tpu.memory_space<vmem>>, %arg13: memref<1x256xf32, #tpu.memory_space<vmem>>, %arg14: memref<256x32xbf16, #tpu.memory_space<vmem>>, %arg15: memref<1x32xf32, #tpu.memory_space<vmem>>, %arg16: memref<1x32xf32, #tpu.memory_space<vmem>>, %arg17: memref<1x32xf32, #tpu.memory_space<vmem>>, %arg18: memref<32x128xbf16, #tpu.memory_space<vmem>>, %arg19: memref<1x128xf32, #tpu.memory_space<vmem>>, %arg20: memref<1x8x128xf32, #tpu.memory_space<vmem>>, %arg21: memref<144x128xbf16, #tpu.memory_space<vmem>>) attributes {dimension_semantics = [#tpu.dimension_semantics<parallel>], iteration_bounds = array<i64: 1>, scalar_prefetch = 0 : i64, scratch_operands = 1 : i64, tpu.core_type = #tpu.core_type<tc>, window_params = [{transform_indices = @transform_0, window_bounds = array<i64: 1, 320, 64>}, {pipeline_mode = #tpu.pipeline_mode<synchronous>, transform_indices = @transform_1, window_bounds = array<i64: 64, 128>}, {pipeline_mode = #tpu.pipeline_mode<synchronous>, transform_indices = @transform_2, window_bounds = array<i64: 1, 128>}, {pipeline_mode = #tpu.pipeline_mode<synchronous>, transform_indices = @transform_3, window_bounds = array<i64: 1, 128>}, {pipeline_mode = #tpu.pipeline_mode<synchronous>, transform_indices = @transform_4, window_bounds = array<i64: 1, 128>}, {pipeline_mode = #tpu.pipeline_mode<synchronous>, transform_indices = @transform_5, window_bounds = array<i64: 3, 128, 128>}, {pipeline_mode = #tpu.pipeline_mode<synchronous>, transform_indices = @transform_6, window_bounds = array<i64: 1, 128>}, {pipeline_mode = #tpu.pipeline_mode<synchronous>, transform_indices = @transform_7, window_bounds = array<i64: 1, 128>}, {pipeline_mode = #tpu.pipeline_mode<synchronous>, transform_indices = @transform_8, window_bounds = array<i64: 1, 128>}, {pipeline_mode = #tpu.pipeline_mode<synchronous>, transform_indices = @transform_9, window_bounds = array<i64: 18, 128, 256>}, {pipeline_mode = #tpu.pipeline_mode<synchronous>, transform_indices = @transform_10, window_bounds = array<i64: 1, 256>}, {pipeline_mode = #tpu.pipeline_mode<synchronous>, transform_indices = @transform_11, window_bounds = array<i64: 1, 256>}, {pipeline_mode = #tpu.pipeline_mode<synchronous>, transform_indices = @transform_12, window_bounds = array<i64: 1, 256>}, {pipeline_mode = #tpu.pipeline_mode<synchronous>, transform_indices = @transform_13, window_bounds = array<i64: 256, 32>}, {pipeline_mode = #tpu.pipeline_mode<synchronous>, transform_indices = @transform_14, window_bounds = array<i64: 1, 32>}, {pipeline_mode = #tpu.pipeline_mode<synchronous>, transform_indices = @transform_15, window_bounds = array<i64: 1, 32>}, {pipeline_mode = #tpu.pipeline_mode<synchronous>, transform_indices = @transform_16, window_bounds = array<i64: 1, 32>}, {pipeline_mode = #tpu.pipeline_mode<synchronous>, transform_indices = @transform_17, window_bounds = array<i64: 32, 128>}, {pipeline_mode = #tpu.pipeline_mode<synchronous>, transform_indices = @transform_18, window_bounds = array<i64: 1, 128>}, {transform_indices = @transform_19, window_bounds = array<i64: 1, 8, 128>}]} {
    %c0 = arith.constant 0 : index
    %c0_0 = arith.constant 0 : index
    %c0_1 = arith.constant 0 : index
    %0 = vector.load %arg1[%c0, %c0_0, %c0_1] : memref<1x320x64xbf16, #tpu.memory_space<vmem>>, vector<1x320x64xbf16>
    %1 = vector.shape_cast %0 : vector<1x320x64xbf16> to vector<320x64xbf16>
    %c0_2 = arith.constant 0 : index
    %c0_3 = arith.constant 0 : index
    %2 = vector.load %arg2[%c0_2, %c0_3] : memref<64x128xbf16, #tpu.memory_space<vmem>>, vector<64x128xbf16>
    %cst = arith.constant dense<0.000000e+00> : vector<320x128xf32>
    %3 = tpu.matmul %1, %2, %cst {dimension_numbers = #tpu.dot_dimension_numbers<[1], [0], [0], [1], [0, 0, 1, 1], [], []>} : vector<320x64xbf16>, vector<64x128xbf16>, vector<320x128xf32> -> vector<320x128xf32>
    %c0_4 = arith.constant 0 : index
    %c0_5 = arith.constant 0 : index
    %4 = vector.load %arg3[%c0_4, %c0_5] : memref<1x128xf32, #tpu.memory_space<vmem>>, vector<1x128xf32>
    %5 = vector.broadcast %4 : vector<1x128xf32> to vector<320x128xf32>
    %6 = arith.addf %3, %5 : vector<320x128xf32>
    %cst_6 = arith.constant 0.000000e+00 : f32
    %7 = vector.broadcast %cst_6 : f32 to vector<320x128xf32>
    %8 = arith.maximumf %6, %7 : vector<320x128xf32>
    %c0_7 = arith.constant 0 : index
    %c0_8 = arith.constant 0 : index
    %9 = vector.load %arg4[%c0_7, %c0_8] : memref<1x128xf32, #tpu.memory_space<vmem>>, vector<1x128xf32>
    %10 = vector.broadcast %9 : vector<1x128xf32> to vector<320x128xf32>
    %11 = arith.mulf %8, %10 : vector<320x128xf32>
    %c0_9 = arith.constant 0 : index
    %c0_10 = arith.constant 0 : index
    %12 = vector.load %arg5[%c0_9, %c0_10] : memref<1x128xf32, #tpu.memory_space<vmem>>, vector<1x128xf32>
    %13 = vector.broadcast %12 : vector<1x128xf32> to vector<320x128xf32>
    %14 = arith.addf %11, %13 : vector<320x128xf32>
    %15 = arith.truncf %14 : vector<320x128xf32> to vector<320x128xbf16>
    %16 = vector.extract_strided_slice %15 {offsets = [0, 0], sizes = [144, 128], strides = [1, 1]} : vector<320x128xbf16> to vector<144x128xbf16>
    %c0_11 = arith.constant 0 : index
    %c0_12 = arith.constant 0 : index
    %c0_13 = arith.constant 0 : index
    %17 = vector.load %arg6[%c0_11, %c0_12, %c0_13] : memref<3x128x128xbf16, #tpu.memory_space<vmem>>, vector<1x128x128xbf16>
    %18 = vector.shape_cast %17 : vector<1x128x128xbf16> to vector<128x128xbf16>
    %cst_14 = arith.constant dense<0.000000e+00> : vector<144x128xf32>
    %19 = tpu.matmul %16, %18, %cst_14 {dimension_numbers = #tpu.dot_dimension_numbers<[1], [0], [0], [1], [0, 0, 1, 1], [], []>} : vector<144x128xbf16>, vector<128x128xbf16>, vector<144x128xf32> -> vector<144x128xf32>
    %20 = vector.extract_strided_slice %15 {offsets = [160, 0], sizes = [144, 128], strides = [1, 1]} : vector<320x128xbf16> to vector<144x128xbf16>
    %c1 = arith.constant 1 : index
    %c0_15 = arith.constant 0 : index
    %c0_16 = arith.constant 0 : index
    %21 = vector.load %arg6[%c1, %c0_15, %c0_16] : memref<3x128x128xbf16, #tpu.memory_space<vmem>>, vector<1x128x128xbf16>
    %22 = vector.shape_cast %21 : vector<1x128x128xbf16> to vector<128x128xbf16>
    %cst_17 = arith.constant dense<0.000000e+00> : vector<144x128xf32>
    %23 = tpu.matmul %20, %22, %cst_17 {dimension_numbers = #tpu.dot_dimension_numbers<[1], [0], [0], [1], [0, 0, 1, 1], [], []>} : vector<144x128xbf16>, vector<128x128xbf16>, vector<144x128xf32> -> vector<144x128xf32>
    %24 = arith.addf %19, %23 : vector<144x128xf32>
    %25 = vector.extract_strided_slice %15 {offsets = [8, 0], sizes = [144, 128], strides = [1, 1]} : vector<320x128xbf16> to vector<144x128xbf16>
    %c2 = arith.constant 2 : index
    %c0_18 = arith.constant 0 : index
    %c0_19 = arith.constant 0 : index
    %26 = vector.load %arg6[%c2, %c0_18, %c0_19] : memref<3x128x128xbf16, #tpu.memory_space<vmem>>, vector<1x128x128xbf16>
    %27 = vector.shape_cast %26 : vector<1x128x128xbf16> to vector<128x128xbf16>
    %cst_20 = arith.constant dense<0.000000e+00> : vector<144x128xf32>
    %28 = tpu.matmul %25, %27, %cst_20 {dimension_numbers = #tpu.dot_dimension_numbers<[1], [0], [0], [1], [0, 0, 1, 1], [], []>} : vector<144x128xbf16>, vector<128x128xbf16>, vector<144x128xf32> -> vector<144x128xf32>
    %29 = arith.addf %24, %28 : vector<144x128xf32>
    %c0_21 = arith.constant 0 : index
    %c0_22 = arith.constant 0 : index
    %30 = vector.load %arg7[%c0_21, %c0_22] : memref<1x128xf32, #tpu.memory_space<vmem>>, vector<1x128xf32>
    %31 = vector.broadcast %30 : vector<1x128xf32> to vector<144x128xf32>
    %32 = arith.addf %29, %31 : vector<144x128xf32>
    %cst_23 = arith.constant 0.000000e+00 : f32
    %33 = vector.broadcast %cst_23 : f32 to vector<144x128xf32>
    %34 = arith.maximumf %32, %33 : vector<144x128xf32>
    %c0_24 = arith.constant 0 : index
    %c0_25 = arith.constant 0 : index
    %35 = vector.load %arg8[%c0_24, %c0_25] : memref<1x128xf32, #tpu.memory_space<vmem>>, vector<1x128xf32>
    %36 = vector.broadcast %35 : vector<1x128xf32> to vector<144x128xf32>
    %37 = arith.mulf %34, %36 : vector<144x128xf32>
    %c0_26 = arith.constant 0 : index
    %c0_27 = arith.constant 0 : index
    %38 = vector.load %arg9[%c0_26, %c0_27] : memref<1x128xf32, #tpu.memory_space<vmem>>, vector<1x128xf32>
    %39 = vector.broadcast %38 : vector<1x128xf32> to vector<144x128xf32>
    %40 = arith.addf %37, %39 : vector<144x128xf32>
    %41 = arith.truncf %40 : vector<144x128xf32> to vector<144x128xbf16>
    %c0_28 = arith.constant 0 : index
    %c0_29 = arith.constant 0 : index
    %42 = vector.load %arg21[%c0_28, %c0_29] : memref<144x128xbf16, #tpu.memory_space<vmem>>, vector<144x128xbf16>
    tpu.vector_store %arg21[%c0_28, %c0_29], %41 {strides = array<i32>} : memref<144x128xbf16, #tpu.memory_space<vmem>>, vector<144x128xbf16>,
    %c0_30 = arith.constant 0 : index
    %c0_31 = arith.constant 0 : index
    %43 = vector.load %arg21[%c0_30, %c0_31] : memref<144x128xbf16, #tpu.memory_space<vmem>>, vector<8x128xbf16>
    %c0_32 = arith.constant 0 : index
    %c0_33 = arith.constant 0 : index
    %c0_34 = arith.constant 0 : index
    %44 = vector.load %arg10[%c0_32, %c0_33, %c0_34] : memref<18x128x256xbf16, #tpu.memory_space<vmem>>, vector<1x128x256xbf16>
    %45 = vector.shape_cast %44 : vector<1x128x256xbf16> to vector<128x256xbf16>
    %cst_35 = arith.constant dense<0.000000e+00> : vector<8x256xf32>
    %46 = tpu.matmul %43, %45, %cst_35 {dimension_numbers = #tpu.dot_dimension_numbers<[1], [0], [0], [1], [0, 0, 1, 1], [], []>} : vector<8x128xbf16>, vector<128x256xbf16>, vector<8x256xf32> -> vector<8x256xf32>
    %c8 = arith.constant 8 : index
    %c0_36 = arith.constant 0 : index
    %47 = vector.load %arg21[%c8, %c0_36] : memref<144x128xbf16, #tpu.memory_space<vmem>>, vector<8x128xbf16>
    %c1_37 = arith.constant 1 : index
    %c0_38 = arith.constant 0 : index
    %c0_39 = arith.constant 0 : index
    %48 = vector.load %arg10[%c1_37, %c0_38, %c0_39] : memref<18x128x256xbf16, #tpu.memory_space<vmem>>, vector<1x128x256xbf16>
    %49 = vector.shape_cast %48 : vector<1x128x256xbf16> to vector<128x256xbf16>
    %cst_40 = arith.constant dense<0.000000e+00> : vector<8x256xf32>
    %50 = tpu.matmul %47, %49, %cst_40 {dimension_numbers = #tpu.dot_dimension_numbers<[1], [0], [0], [1], [0, 0, 1, 1], [], []>} : vector<8x128xbf16>, vector<128x256xbf16>, vector<8x256xf32> -> vector<8x256xf32>
    %51 = arith.addf %46, %50 : vector<8x256xf32>
    %c16 = arith.constant 16 : index
    %c0_41 = arith.constant 0 : index
    %52 = vector.load %arg21[%c16, %c0_41] : memref<144x128xbf16, #tpu.memory_space<vmem>>, vector<8x128xbf16>
    %c2_42 = arith.constant 2 : index
    %c0_43 = arith.constant 0 : index
    %c0_44 = arith.constant 0 : index
    %53 = vector.load %arg10[%c2_42, %c0_43, %c0_44] : memref<18x128x256xbf16, #tpu.memory_space<vmem>>, vector<1x128x256xbf16>
    %54 = vector.shape_cast %53 : vector<1x128x256xbf16> to vector<128x256xbf16>
    %cst_45 = arith.constant dense<0.000000e+00> : vector<8x256xf32>
    %55 = tpu.matmul %52, %54, %cst_45 {dimension_numbers = #tpu.dot_dimension_numbers<[1], [0], [0], [1], [0, 0, 1, 1], [], []>} : vector<8x128xbf16>, vector<128x256xbf16>, vector<8x256xf32> -> vector<8x256xf32>
    %56 = arith.addf %51, %55 : vector<8x256xf32>
    %c24 = arith.constant 24 : index
    %c0_46 = arith.constant 0 : index
    %57 = vector.load %arg21[%c24, %c0_46] : memref<144x128xbf16, #tpu.memory_space<vmem>>, vector<8x128xbf16>
    %c3 = arith.constant 3 : index
    %c0_47 = arith.constant 0 : index
    %c0_48 = arith.constant 0 : index
    %58 = vector.load %arg10[%c3, %c0_47, %c0_48] : memref<18x128x256xbf16, #tpu.memory_space<vmem>>, vector<1x128x256xbf16>
    %59 = vector.shape_cast %58 : vector<1x128x256xbf16> to vector<128x256xbf16>
    %cst_49 = arith.constant dense<0.000000e+00> : vector<8x256xf32>
    %60 = tpu.matmul %57, %59, %cst_49 {dimension_numbers = #tpu.dot_dimension_numbers<[1], [0], [0], [1], [0, 0, 1, 1], [], []>} : vector<8x128xbf16>, vector<128x256xbf16>, vector<8x256xf32> -> vector<8x256xf32>
    %61 = arith.addf %56, %60 : vector<8x256xf32>
    %c32 = arith.constant 32 : index
    %c0_50 = arith.constant 0 : index
    %62 = vector.load %arg21[%c32, %c0_50] : memref<144x128xbf16, #tpu.memory_space<vmem>>, vector<8x128xbf16>
    %c4 = arith.constant 4 : index
    %c0_51 = arith.constant 0 : index
    %c0_52 = arith.constant 0 : index
    %63 = vector.load %arg10[%c4, %c0_51, %c0_52] : memref<18x128x256xbf16, #tpu.memory_space<vmem>>, vector<1x128x256xbf16>
    %64 = vector.shape_cast %63 : vector<1x128x256xbf16> to vector<128x256xbf16>
    %cst_53 = arith.constant dense<0.000000e+00> : vector<8x256xf32>
    %65 = tpu.matmul %62, %64, %cst_53 {dimension_numbers = #tpu.dot_dimension_numbers<[1], [0], [0], [1], [0, 0, 1, 1], [], []>} : vector<8x128xbf16>, vector<128x256xbf16>, vector<8x256xf32> -> vector<8x256xf32>
    %66 = arith.addf %61, %65 : vector<8x256xf32>
    %c40 = arith.constant 40 : index
    %c0_54 = arith.constant 0 : index
    %67 = vector.load %arg21[%c40, %c0_54] : memref<144x128xbf16, #tpu.memory_space<vmem>>, vector<8x128xbf16>
    %c5 = arith.constant 5 : index
    %c0_55 = arith.constant 0 : index
    %c0_56 = arith.constant 0 : index
    %68 = vector.load %arg10[%c5, %c0_55, %c0_56] : memref<18x128x256xbf16, #tpu.memory_space<vmem>>, vector<1x128x256xbf16>
    %69 = vector.shape_cast %68 : vector<1x128x256xbf16> to vector<128x256xbf16>
    %cst_57 = arith.constant dense<0.000000e+00> : vector<8x256xf32>
    %70 = tpu.matmul %67, %69, %cst_57 {dimension_numbers = #tpu.dot_dimension_numbers<[1], [0], [0], [1], [0, 0, 1, 1], [], []>} : vector<8x128xbf16>, vector<128x256xbf16>, vector<8x256xf32> -> vector<8x256xf32>
    %71 = arith.addf %66, %70 : vector<8x256xf32>
    %c48 = arith.constant 48 : index
    %c0_58 = arith.constant 0 : index
    %72 = vector.load %arg21[%c48, %c0_58] : memref<144x128xbf16, #tpu.memory_space<vmem>>, vector<8x128xbf16>
    %c6 = arith.constant 6 : index
    %c0_59 = arith.constant 0 : index
    %c0_60 = arith.constant 0 : index
    %73 = vector.load %arg10[%c6, %c0_59, %c0_60] : memref<18x128x256xbf16, #tpu.memory_space<vmem>>, vector<1x128x256xbf16>
    %74 = vector.shape_cast %73 : vector<1x128x256xbf16> to vector<128x256xbf16>
    %cst_61 = arith.constant dense<0.000000e+00> : vector<8x256xf32>
    %75 = tpu.matmul %72, %74, %cst_61 {dimension_numbers = #tpu.dot_dimension_numbers<[1], [0], [0], [1], [0, 0, 1, 1], [], []>} : vector<8x128xbf16>, vector<128x256xbf16>, vector<8x256xf32> -> vector<8x256xf32>
    %76 = arith.addf %71, %75 : vector<8x256xf32>
    %c56 = arith.constant 56 : index
    %c0_62 = arith.constant 0 : index
    %77 = vector.load %arg21[%c56, %c0_62] : memref<144x128xbf16, #tpu.memory_space<vmem>>, vector<8x128xbf16>
    %c7 = arith.constant 7 : index
    %c0_63 = arith.constant 0 : index
    %c0_64 = arith.constant 0 : index
    %78 = vector.load %arg10[%c7, %c0_63, %c0_64] : memref<18x128x256xbf16, #tpu.memory_space<vmem>>, vector<1x128x256xbf16>
    %79 = vector.shape_cast %78 : vector<1x128x256xbf16> to vector<128x256xbf16>
    %cst_65 = arith.constant dense<0.000000e+00> : vector<8x256xf32>
    %80 = tpu.matmul %77, %79, %cst_65 {dimension_numbers = #tpu.dot_dimension_numbers<[1], [0], [0], [1], [0, 0, 1, 1], [], []>} : vector<8x128xbf16>, vector<128x256xbf16>, vector<8x256xf32> -> vector<8x256xf32>
    %81 = arith.addf %76, %80 : vector<8x256xf32>
    %c64 = arith.constant 64 : index
    %c0_66 = arith.constant 0 : index
    %82 = vector.load %arg21[%c64, %c0_66] : memref<144x128xbf16, #tpu.memory_space<vmem>>, vector<8x128xbf16>
    %c8_67 = arith.constant 8 : index
    %c0_68 = arith.constant 0 : index
    %c0_69 = arith.constant 0 : index
    %83 = vector.load %arg10[%c8_67, %c0_68, %c0_69] : memref<18x128x256xbf16, #tpu.memory_space<vmem>>, vector<1x128x256xbf16>
    %84 = vector.shape_cast %83 : vector<1x128x256xbf16> to vector<128x256xbf16>
    %cst_70 = arith.constant dense<0.000000e+00> : vector<8x256xf32>
    %85 = tpu.matmul %82, %84, %cst_70 {dimension_numbers = #tpu.dot_dimension_numbers<[1], [0], [0], [1], [0, 0, 1, 1], [], []>} : vector<8x128xbf16>, vector<128x256xbf16>, vector<8x256xf32> -> vector<8x256xf32>
    %86 = arith.addf %81, %85 : vector<8x256xf32>
    %c72 = arith.constant 72 : index
    %c0_71 = arith.constant 0 : index
    %87 = vector.load %arg21[%c72, %c0_71] : memref<144x128xbf16, #tpu.memory_space<vmem>>, vector<8x128xbf16>
    %c9 = arith.constant 9 : index
    %c0_72 = arith.constant 0 : index
    %c0_73 = arith.constant 0 : index
    %88 = vector.load %arg10[%c9, %c0_72, %c0_73] : memref<18x128x256xbf16, #tpu.memory_space<vmem>>, vector<1x128x256xbf16>
    %89 = vector.shape_cast %88 : vector<1x128x256xbf16> to vector<128x256xbf16>
    %cst_74 = arith.constant dense<0.000000e+00> : vector<8x256xf32>
    %90 = tpu.matmul %87, %89, %cst_74 {dimension_numbers = #tpu.dot_dimension_numbers<[1], [0], [0], [1], [0, 0, 1, 1], [], []>} : vector<8x128xbf16>, vector<128x256xbf16>, vector<8x256xf32> -> vector<8x256xf32>
    %91 = arith.addf %86, %90 : vector<8x256xf32>
    %c80 = arith.constant 80 : index
    %c0_75 = arith.constant 0 : index
    %92 = vector.load %arg21[%c80, %c0_75] : memref<144x128xbf16, #tpu.memory_space<vmem>>, vector<8x128xbf16>
    %c10 = arith.constant 10 : index
    %c0_76 = arith.constant 0 : index
    %c0_77 = arith.constant 0 : index
    %93 = vector.load %arg10[%c10, %c0_76, %c0_77] : memref<18x128x256xbf16, #tpu.memory_space<vmem>>, vector<1x128x256xbf16>
    %94 = vector.shape_cast %93 : vector<1x128x256xbf16> to vector<128x256xbf16>
    %cst_78 = arith.constant dense<0.000000e+00> : vector<8x256xf32>
    %95 = tpu.matmul %92, %94, %cst_78 {dimension_numbers = #tpu.dot_dimension_numbers<[1], [0], [0], [1], [0, 0, 1, 1], [], []>} : vector<8x128xbf16>, vector<128x256xbf16>, vector<8x256xf32> -> vector<8x256xf32>
    %96 = arith.addf %91, %95 : vector<8x256xf32>
    %c88 = arith.constant 88 : index
    %c0_79 = arith.constant 0 : index
    %97 = vector.load %arg21[%c88, %c0_79] : memref<144x128xbf16, #tpu.memory_space<vmem>>, vector<8x128xbf16>
    %c11 = arith.constant 11 : index
    %c0_80 = arith.constant 0 : index
    %c0_81 = arith.constant 0 : index
    %98 = vector.load %arg10[%c11, %c0_80, %c0_81] : memref<18x128x256xbf16, #tpu.memory_space<vmem>>, vector<1x128x256xbf16>
    %99 = vector.shape_cast %98 : vector<1x128x256xbf16> to vector<128x256xbf16>
    %cst_82 = arith.constant dense<0.000000e+00> : vector<8x256xf32>
    %100 = tpu.matmul %97, %99, %cst_82 {dimension_numbers = #tpu.dot_dimension_numbers<[1], [0], [0], [1], [0, 0, 1, 1], [], []>} : vector<8x128xbf16>, vector<128x256xbf16>, vector<8x256xf32> -> vector<8x256xf32>
    %101 = arith.addf %96, %100 : vector<8x256xf32>
    %c96 = arith.constant 96 : index
    %c0_83 = arith.constant 0 : index
    %102 = vector.load %arg21[%c96, %c0_83] : memref<144x128xbf16, #tpu.memory_space<vmem>>, vector<8x128xbf16>
    %c12 = arith.constant 12 : index
    %c0_84 = arith.constant 0 : index
    %c0_85 = arith.constant 0 : index
    %103 = vector.load %arg10[%c12, %c0_84, %c0_85] : memref<18x128x256xbf16, #tpu.memory_space<vmem>>, vector<1x128x256xbf16>
    %104 = vector.shape_cast %103 : vector<1x128x256xbf16> to vector<128x256xbf16>
    %cst_86 = arith.constant dense<0.000000e+00> : vector<8x256xf32>
    %105 = tpu.matmul %102, %104, %cst_86 {dimension_numbers = #tpu.dot_dimension_numbers<[1], [0], [0], [1], [0, 0, 1, 1], [], []>} : vector<8x128xbf16>, vector<128x256xbf16>, vector<8x256xf32> -> vector<8x256xf32>
    %106 = arith.addf %101, %105 : vector<8x256xf32>
    %c104 = arith.constant 104 : index
    %c0_87 = arith.constant 0 : index
    %107 = vector.load %arg21[%c104, %c0_87] : memref<144x128xbf16, #tpu.memory_space<vmem>>, vector<8x128xbf16>
    %c13 = arith.constant 13 : index
    %c0_88 = arith.constant 0 : index
    %c0_89 = arith.constant 0 : index
    %108 = vector.load %arg10[%c13, %c0_88, %c0_89] : memref<18x128x256xbf16, #tpu.memory_space<vmem>>, vector<1x128x256xbf16>
    %109 = vector.shape_cast %108 : vector<1x128x256xbf16> to vector<128x256xbf16>
    %cst_90 = arith.constant dense<0.000000e+00> : vector<8x256xf32>
    %110 = tpu.matmul %107, %109, %cst_90 {dimension_numbers = #tpu.dot_dimension_numbers<[1], [0], [0], [1], [0, 0, 1, 1], [], []>} : vector<8x128xbf16>, vector<128x256xbf16>, vector<8x256xf32> -> vector<8x256xf32>
    %111 = arith.addf %106, %110 : vector<8x256xf32>
    %c112 = arith.constant 112 : index
    %c0_91 = arith.constant 0 : index
    %112 = vector.load %arg21[%c112, %c0_91] : memref<144x128xbf16, #tpu.memory_space<vmem>>, vector<8x128xbf16>
    %c14 = arith.constant 14 : index
    %c0_92 = arith.constant 0 : index
    %c0_93 = arith.constant 0 : index
    %113 = vector.load %arg10[%c14, %c0_92, %c0_93] : memref<18x128x256xbf16, #tpu.memory_space<vmem>>, vector<1x128x256xbf16>
    %114 = vector.shape_cast %113 : vector<1x128x256xbf16> to vector<128x256xbf16>
    %cst_94 = arith.constant dense<0.000000e+00> : vector<8x256xf32>
    %115 = tpu.matmul %112, %114, %cst_94 {dimension_numbers = #tpu.dot_dimension_numbers<[1], [0], [0], [1], [0, 0, 1, 1], [], []>} : vector<8x128xbf16>, vector<128x256xbf16>, vector<8x256xf32> -> vector<8x256xf32>
    %116 = arith.addf %111, %115 : vector<8x256xf32>
    %c120 = arith.constant 120 : index
    %c0_95 = arith.constant 0 : index
    %117 = vector.load %arg21[%c120, %c0_95] : memref<144x128xbf16, #tpu.memory_space<vmem>>, vector<8x128xbf16>
    %c15 = arith.constant 15 : index
    %c0_96 = arith.constant 0 : index
    %c0_97 = arith.constant 0 : index
    %118 = vector.load %arg10[%c15, %c0_96, %c0_97] : memref<18x128x256xbf16, #tpu.memory_space<vmem>>, vector<1x128x256xbf16>
    %119 = vector.shape_cast %118 : vector<1x128x256xbf16> to vector<128x256xbf16>
    %cst_98 = arith.constant dense<0.000000e+00> : vector<8x256xf32>
    %120 = tpu.matmul %117, %119, %cst_98 {dimension_numbers = #tpu.dot_dimension_numbers<[1], [0], [0], [1], [0, 0, 1, 1], [], []>} : vector<8x128xbf16>, vector<128x256xbf16>, vector<8x256xf32> -> vector<8x256xf32>
    %121 = arith.addf %116, %120 : vector<8x256xf32>
    %c128 = arith.constant 128 : index
    %c0_99 = arith.constant 0 : index
    %122 = vector.load %arg21[%c128, %c0_99] : memref<144x128xbf16, #tpu.memory_space<vmem>>, vector<8x128xbf16>
    %c16_100 = arith.constant 16 : index
    %c0_101 = arith.constant 0 : index
    %c0_102 = arith.constant 0 : index
    %123 = vector.load %arg10[%c16_100, %c0_101, %c0_102] : memref<18x128x256xbf16, #tpu.memory_space<vmem>>, vector<1x128x256xbf16>
    %124 = vector.shape_cast %123 : vector<1x128x256xbf16> to vector<128x256xbf16>
    %cst_103 = arith.constant dense<0.000000e+00> : vector<8x256xf32>
    %125 = tpu.matmul %122, %124, %cst_103 {dimension_numbers = #tpu.dot_dimension_numbers<[1], [0], [0], [1], [0, 0, 1, 1], [], []>} : vector<8x128xbf16>, vector<128x256xbf16>, vector<8x256xf32> -> vector<8x256xf32>
    %126 = arith.addf %121, %125 : vector<8x256xf32>
    %c136 = arith.constant 136 : index
    %c0_104 = arith.constant 0 : index
    %127 = vector.load %arg21[%c136, %c0_104] : memref<144x128xbf16, #tpu.memory_space<vmem>>, vector<8x128xbf16>
    %c17 = arith.constant 17 : index
    %c0_105 = arith.constant 0 : index
    %c0_106 = arith.constant 0 : index
    %128 = vector.load %arg10[%c17, %c0_105, %c0_106] : memref<18x128x256xbf16, #tpu.memory_space<vmem>>, vector<1x128x256xbf16>
    %129 = vector.shape_cast %128 : vector<1x128x256xbf16> to vector<128x256xbf16>
    %cst_107 = arith.constant dense<0.000000e+00> : vector<8x256xf32>
    %130 = tpu.matmul %127, %129, %cst_107 {dimension_numbers = #tpu.dot_dimension_numbers<[1], [0], [0], [1], [0, 0, 1, 1], [], []>} : vector<8x128xbf16>, vector<128x256xbf16>, vector<8x256xf32> -> vector<8x256xf32>
    %131 = arith.addf %126, %130 : vector<8x256xf32>
    %c0_108 = arith.constant 0 : index
    %c0_109 = arith.constant 0 : index
    %132 = vector.load %arg11[%c0_108, %c0_109] : memref<1x256xf32, #tpu.memory_space<vmem>>, vector<1x256xf32>
    %133 = vector.broadcast %132 : vector<1x256xf32> to vector<8x256xf32>
    %134 = arith.addf %131, %133 : vector<8x256xf32>
    %cst_110 = arith.constant 0.000000e+00 : f32
    %135 = vector.broadcast %cst_110 : f32 to vector<8x256xf32>
    %136 = arith.maximumf %134, %135 : vector<8x256xf32>
    %c0_111 = arith.constant 0 : index
    %c0_112 = arith.constant 0 : index
    %137 = vector.load %arg12[%c0_111, %c0_112] : memref<1x256xf32, #tpu.memory_space<vmem>>, vector<1x256xf32>
    %138 = vector.broadcast %137 : vector<1x256xf32> to vector<8x256xf32>
    %139 = arith.mulf %136, %138 : vector<8x256xf32>
    %c0_113 = arith.constant 0 : index
    %c0_114 = arith.constant 0 : index
    %140 = vector.load %arg13[%c0_113, %c0_114] : memref<1x256xf32, #tpu.memory_space<vmem>>, vector<1x256xf32>
    %141 = vector.broadcast %140 : vector<1x256xf32> to vector<8x256xf32>
    %142 = arith.addf %139, %141 : vector<8x256xf32>
    %143 = arith.truncf %142 : vector<8x256xf32> to vector<8x256xbf16>
    %c0_115 = arith.constant 0 : index
    %c0_116 = arith.constant 0 : index
    %144 = vector.load %arg14[%c0_115, %c0_116] : memref<256x32xbf16, #tpu.memory_space<vmem>>, vector<256x32xbf16>
    %cst_117 = arith.constant dense<0.000000e+00> : vector<8x32xf32>
    %145 = tpu.matmul %143, %144, %cst_117 {dimension_numbers = #tpu.dot_dimension_numbers<[1], [0], [0], [1], [0, 0, 1, 1], [], []>} : vector<8x256xbf16>, vector<256x32xbf16>, vector<8x32xf32> -> vector<8x32xf32>
    %c0_118 = arith.constant 0 : index
    %c0_119 = arith.constant 0 : index
    %146 = vector.load %arg15[%c0_118, %c0_119] : memref<1x32xf32, #tpu.memory_space<vmem>>, vector<1x32xf32>
    %147 = vector.broadcast %146 : vector<1x32xf32> to vector<8x32xf32>
    %148 = arith.addf %145, %147 : vector<8x32xf32>
    %cst_120 = arith.constant 0.000000e+00 : f32
    %149 = vector.broadcast %cst_120 : f32 to vector<8x32xf32>
    %150 = arith.maximumf %148, %149 : vector<8x32xf32>
    %c0_121 = arith.constant 0 : index
    %c0_122 = arith.constant 0 : index
    %151 = vector.load %arg16[%c0_121, %c0_122] : memref<1x32xf32, #tpu.memory_space<vmem>>, vector<1x32xf32>
    %152 = vector.broadcast %151 : vector<1x32xf32> to vector<8x32xf32>
    %153 = arith.mulf %150, %152 : vector<8x32xf32>
    %c0_123 = arith.constant 0 : index
    %c0_124 = arith.constant 0 : index
    %154 = vector.load %arg17[%c0_123, %c0_124] : memref<1x32xf32, #tpu.memory_space<vmem>>, vector<1x32xf32>
    %155 = vector.broadcast %154 : vector<1x32xf32> to vector<8x32xf32>
    %156 = arith.addf %153, %155 : vector<8x32xf32>
    %157 = arith.truncf %156 : vector<8x32xf32> to vector<8x32xbf16>
    %c0_125 = arith.constant 0 : index
    %c0_126 = arith.constant 0 : index
    %158 = vector.load %arg18[%c0_125, %c0_126] : memref<32x128xbf16, #tpu.memory_space<vmem>>, vector<32x128xbf16>
    %cst_127 = arith.constant dense<0.000000e+00> : vector<8x128xf32>
    %159 = tpu.matmul %157, %158, %cst_127 {dimension_numbers = #tpu.dot_dimension_numbers<[1], [0], [0], [1], [0, 0, 1, 1], [], []>} : vector<8x32xbf16>, vector<32x128xbf16>, vector<8x128xf32> -> vector<8x128xf32>
    %c0_128 = arith.constant 0 : index
    %c0_129 = arith.constant 0 : index
    %160 = vector.load %arg19[%c0_128, %c0_129] : memref<1x128xf32, #tpu.memory_space<vmem>>, vector<1x128xf32>
    %161 = vector.broadcast %160 : vector<1x128xf32> to vector<8x128xf32>
    %162 = arith.addf %159, %161 : vector<8x128xf32>
    %cst_130 = arith.constant 0.000000e+00 : f32
    %163 = vector.broadcast %cst_130 : f32 to vector<8x128xf32>
    %164 = arith.subf %163, %162 : vector<8x128xf32>
    %165 = math.exp %164 : vector<8x128xf32>
    %cst_131 = arith.constant 1.000000e+00 : f32
    %166 = vector.broadcast %cst_131 : f32 to vector<8x128xf32>
    %167 = arith.addf %166, %165 : vector<8x128xf32>
    %168 = tpu.reciprocal %167 {approx = true} : vector<8x128xf32> -> vector<8x128xf32>
    %c0_132 = arith.constant 0 : index
    %c0_133 = arith.constant 0 : index
    %c0_134 = arith.constant 0 : index
    %169 = vector.load %arg20[%c0_132, %c0_133, %c0_134] : memref<1x8x128xf32, #tpu.memory_space<vmem>>, vector<1x8x128xf32>
    %170 = vector.shape_cast %169 : vector<1x8x128xf32> to vector<8x128xf32>
    %171 = vector.shape_cast %168 : vector<8x128xf32> to vector<1x8x128xf32>
    tpu.vector_store %arg20[%c0_132, %c0_133, %c0_134], %171 {strides = array<i32>} : memref<1x8x128xf32, #tpu.memory_space<vmem>>, vector<1x8x128xf32>,
    return
  }
  func.func @transform_0(%arg0: i32) -> (i32, i32, i32) {
    %c0_i32 = arith.constant 0 : i32
    %c0_i32_0 = arith.constant 0 : i32
    %c0_i32_1 = arith.constant 0 : i32
    return %arg0, %c0_i32, %c0_i32_0 : i32, i32, i32
  }
  func.func @transform_1(%arg0: i32) -> (i32, i32) {
    %c0_i32 = arith.constant 0 : i32
    %c0_i32_0 = arith.constant 0 : i32
    %c0_i32_1 = arith.constant 0 : i32
    return %c0_i32, %c0_i32_0 : i32, i32
  }
  func.func @transform_2(%arg0: i32) -> (i32, i32) {
    %c0_i32 = arith.constant 0 : i32
    %c0_i32_0 = arith.constant 0 : i32
    %c0_i32_1 = arith.constant 0 : i32
    return %c0_i32, %c0_i32_0 : i32, i32
  }
  func.func @transform_3(%arg0: i32) -> (i32, i32) {
    %c0_i32 = arith.constant 0 : i32
    %c0_i32_0 = arith.constant 0 : i32
    %c0_i32_1 = arith.constant 0 : i32
    return %c0_i32, %c0_i32_0 : i32, i32
  }
  func.func @transform_4(%arg0: i32) -> (i32, i32) {
    %c0_i32 = arith.constant 0 : i32
    %c0_i32_0 = arith.constant 0 : i32
    %c0_i32_1 = arith.constant 0 : i32
    return %c0_i32, %c0_i32_0 : i32, i32
  }
  func.func @transform_5(%arg0: i32) -> (i32, i32, i32) {
    %c0_i32 = arith.constant 0 : i32
    %c0_i32_0 = arith.constant 0 : i32
    %c0_i32_1 = arith.constant 0 : i32
    %c0_i32_2 = arith.constant 0 : i32
    return %c0_i32, %c0_i32_0, %c0_i32_1 : i32, i32, i32
  }
  func.func @transform_6(%arg0: i32) -> (i32, i32) {
    %c0_i32 = arith.constant 0 : i32
    %c0_i32_0 = arith.constant 0 : i32
    %c0_i32_1 = arith.constant 0 : i32
    return %c0_i32, %c0_i32_0 : i32, i32
  }
  func.func @transform_7(%arg0: i32) -> (i32, i32) {
    %c0_i32 = arith.constant 0 : i32
    %c0_i32_0 = arith.constant 0 : i32
    %c0_i32_1 = arith.constant 0 : i32
    return %c0_i32, %c0_i32_0 : i32, i32
  }
  func.func @transform_8(%arg0: i32) -> (i32, i32) {
    %c0_i32 = arith.constant 0 : i32
    %c0_i32_0 = arith.constant 0 : i32
    %c0_i32_1 = arith.constant 0 : i32
    return %c0_i32, %c0_i32_0 : i32, i32
  }
  func.func @transform_9(%arg0: i32) -> (i32, i32, i32) {
    %c0_i32 = arith.constant 0 : i32
    %c0_i32_0 = arith.constant 0 : i32
    %c0_i32_1 = arith.constant 0 : i32
    %c0_i32_2 = arith.constant 0 : i32
    return %c0_i32, %c0_i32_0, %c0_i32_1 : i32, i32, i32
  }
  func.func @transform_10(%arg0: i32) -> (i32, i32) {
    %c0_i32 = arith.constant 0 : i32
    %c0_i32_0 = arith.constant 0 : i32
    %c0_i32_1 = arith.constant 0 : i32
    return %c0_i32, %c0_i32_0 : i32, i32
  }
  func.func @transform_11(%arg0: i32) -> (i32, i32) {
    %c0_i32 = arith.constant 0 : i32
    %c0_i32_0 = arith.constant 0 : i32
    %c0_i32_1 = arith.constant 0 : i32
    return %c0_i32, %c0_i32_0 : i32, i32
  }
  func.func @transform_12(%arg0: i32) -> (i32, i32) {
    %c0_i32 = arith.constant 0 : i32
    %c0_i32_0 = arith.constant 0 : i32
    %c0_i32_1 = arith.constant 0 : i32
    return %c0_i32, %c0_i32_0 : i32, i32
  }
  func.func @transform_13(%arg0: i32) -> (i32, i32) {
    %c0_i32 = arith.constant 0 : i32
    %c0_i32_0 = arith.constant 0 : i32
    %c0_i32_1 = arith.constant 0 : i32
    return %c0_i32, %c0_i32_0 : i32, i32
  }
  func.func @transform_14(%arg0: i32) -> (i32, i32) {
    %c0_i32 = arith.constant 0 : i32
    %c0_i32_0 = arith.constant 0 : i32
    %c0_i32_1 = arith.constant 0 : i32
    return %c0_i32, %c0_i32_0 : i32, i32
  }
  func.func @transform_15(%arg0: i32) -> (i32, i32) {
    %c0_i32 = arith.constant 0 : i32
    %c0_i32_0 = arith.constant 0 : i32
    %c0_i32_1 = arith.constant 0 : i32
    return %c0_i32, %c0_i32_0 : i32, i32
  }
  func.func @transform_16(%arg0: i32) -> (i32, i32) {
    %c0_i32 = arith.constant 0 : i32
    %c0_i32_0 = arith.constant 0 : i32
    %c0_i32_1 = arith.constant 0 : i32
    return %c0_i32, %c0_i32_0 : i32, i32
  }
  func.func @transform_17(%arg0: i32) -> (i32, i32) {
    %c0_i32 = arith.constant 0 : i32
    %c0_i32_0 = arith.constant 0 : i32
    %c0_i32_1 = arith.constant 0 : i32
    return %c0_i32, %c0_i32_0 : i32, i32
  }
  func.func @transform_18(%arg0: i32) -> (i32, i32) {
    %c0_i32 = arith.constant 0 : i32
    %c0_i32_0 = arith.constant 0 : i32
    %c0_i32_1 = arith.constant 0 : i32
    return %c0_i32, %c0_i32_0 : i32, i32
  }
  func.func @transform_19(%arg0: i32) -> (i32, i32, i32) {
    %c0_i32 = arith.constant 0 : i32
    %c0_i32_0 = arith.constant 0 : i32
    %c0_i32_1 = arith.constant 0 : i32
    return %arg0, %c0_i32, %c0_i32_0 : i32, i32, i32
  }
}

</mosaic_0001>

<bundles_post_ra>
// kernel: ember_forward.1
= control target key start
LH: loop header
LB: loop body
LE: loop exit
PB: predicated region body
PF: predicated region fallthrough
CT: control target
= control target key end

     0   :  { %s6878_s0 = inlined_call_operand.vmem [shape: bf16[1,320,64], index: 0, kind: input, shape index: {}]   ;;  %s6879_s1 = inlined_call_operand.hbm [shape: bf16[64,128], index: 1, kind: input, shape index: {}]   ;;  %s6880_s2 = inlined_call_operand.hbm [shape: f32[1,128], index: 2, kind: input, shape index: {}]   ;;  %s6881_s3 = inlined_call_operand.hbm [shape: f32[1,128], index: 3, kind: input, shape index: {}]   ;;  %s6882_s4 = inlined_call_operand.hbm [shape: f32[1,128], index: 4, kind: input, shape index: {}]   ;;  %s6883_s5 = inlined_call_operand.hbm [shape: bf16[3,128,128], index: 5, kind: input, shape index: {}]   ;;  %s6884_s6 = inlined_call_operand.hbm [shape: f32[1,128], index: 6, kind: input, shape index: {}]   ;;  %s6885_s7 = inlined_call_operand.hbm [shape: f32[1,128], index: 7, kind: input, shape index: {}]   ;;  %s6886_s8 = inlined_call_operand.hbm [shape: f32[1,128], index: 8, kind: input, shape index: {}]   ;;  %s6887_s9 = inlined_call_operand.hbm [shape: bf16[18,128,256], index: 9, kind: input, shape index: {}]   ;;  %s6888_s10 = inlined_call_operand.hbm [shape: f32[1,256], index: 10, kind: input, shape index: {}]   ;;  %s6889_s11 = inlined_call_operand.hbm [shape: f32[1,256], index: 11, kind: input, shape index: {}]   ;;  %s6890_s12 = inlined_call_operand.hbm [shape: f32[1,256], index: 12, kind: input, shape index: {}]   ;;  %s6891_s13 = inlined_call_operand.vmem [shape: bf16[256,32], index: 13, kind: input, shape index: {}]   ;;  %s6892_s14 = inlined_call_operand.hbm [shape: f32[1,32], index: 14, kind: input, shape index: {}]   ;;  %s6893_s15 = inlined_call_operand.hbm [shape: f32[1,32], index: 15, kind: input, shape index: {}]   ;;  %s6894_s16 = inlined_call_operand.hbm [shape: f32[1,32], index: 16, kind: input, shape index: {}]   ;;  %s6895_s17 = inlined_call_operand.hbm [shape: bf16[32,128], index: 17, kind: input, shape index: {}]   ;;  %s6896_s18 = inlined_call_operand.hbm [shape: f32[1,128], index: 18, kind: input, shape index: {}]   ;;  %s6897_s19 = inlined_call_operand.vmem [shape: f32[1,8,128], index: 19, kind: output, shape index: {}]  }
   0x1   :  { %6899 = sst [smem:[#allocation38_spill]] %s6878_s0 }
   0x2   :  { %6900 = sst [smem:[#allocation39_spill]] %s6879_s1 }
   0x3   :  { %6901 = sst [smem:[#allocation40_spill]] %s6880_s2 }
   0x4   :  { %6902 = sst [smem:[#allocation41_spill]] %s6881_s3 }
   0x5   :  { %24 = vsyncpa [#allocation4], 0 }
   0x6   :  { %25 = vsyncpa [#allocation6], 0 }
   0x7   :  { %26 = vsyncpa [#allocation9], 0 }
   0x8   :  { %27 = vsyncpa [#allocation12], 0 }
   0x9   :  { %28 = vsyncpa [#allocation15], 0 }
   0xa   :  { %29 = vsyncpa [#allocation18], 0 }
   0xb   :  { %30 = vsyncpa [#allocation21], 0 }
   0xc   :  { %31 = vsyncpa [#allocation24], 0  ;;  %s6903_s20 = sld [smem:[#allocation40_spill]] }
  0x12   :  { %s53_s21 = sshll.u32 %s6903_s20, 4  ;;  %s54_s21 = int_to_ptr.hbm [resolvable:$true] %s53_s21 }
  0x13   :  { %32 = vsyncpa [#allocation27], 0  ;;  %s6250_s1 = smov [#allocation5]   ;;  %s75_s24 = sshll.u32 %s6882_s4, 4  ;;  %s76_s24 = int_to_ptr.hbm [resolvable:$true] %s75_s24 }
  0x14   :  { %s55_s22 = sshll.u32 %s6250_s1, 4  ;;  %s6251_s25 = smov [#allocation8]   ;;  %s56_s22 = int_to_ptr.vmem [resolvable:$true] %s55_s22 }
  0x15   :  { %58 = dma.hbm_to_vmem [thread:$0]  %s54_s21, 16, %s56_s22, [#allocation6]  }
  0x16   :  { %s77_s3 = sshll.u32 %s6251_s25, 4  ;;  %s99_s28 = sshll.u32 %s6884_s6, 4  ;;  %s78_s3 = int_to_ptr.vmem [resolvable:$true] %s77_s3  ;;  %s100_s28 = int_to_ptr.hbm [resolvable:$true] %s99_s28 }
  0x17   :  { %80 = dma.hbm_to_vmem [thread:$0]  %s76_s24, 16, %s78_s3, [#allocation9]  }
  0x18   :  { %s121_s30 = sshll.u32 %s6886_s8, 4  ;;  %s6252_s20 = smov [#allocation11]   ;;  %s122_s30 = int_to_ptr.hbm [resolvable:$true] %s121_s30 }
  0x19   :  { %s101_s1 = sshll.u32 %s6252_s20, 4  ;;  %s6253_s4 = smov [#allocation14]   ;;  %s102_s1 = int_to_ptr.vmem [resolvable:$true] %s101_s1 }
  0x1a   :  { %104 = dma.hbm_to_vmem [thread:$0]  %s100_s28, 16, %s102_s1, [#allocation12]  }
  0x1b   :  { %s123_s21 = sshll.u32 %s6253_s4, 4  ;;  %s145_s23 = sshll.u32 %s6888_s10, 4  ;;  %s124_s21 = int_to_ptr.vmem [resolvable:$true] %s123_s21  ;;  %s146_s23 = int_to_ptr.hbm [resolvable:$true] %s145_s23 }
  0x1c   :  { %126 = dma.hbm_to_vmem [thread:$0]  %s122_s30, 16, %s124_s21, [#allocation15]  }
  0x1d   :  { %s167_s25 = sshll.u32 %s6890_s12, 4  ;;  %s6254_s3 = smov [#allocation17]   ;;  %s168_s25 = int_to_ptr.hbm [resolvable:$true] %s167_s25 }
  0x1e   :  { %s147_s8 = sshll.u32 %s6254_s3, 4  ;;  %s6255_s26 = smov [#allocation20]   ;;  %s148_s8 = int_to_ptr.vmem [resolvable:$true] %s147_s8 }
  0x1f   :  { %150 = dma.hbm_to_vmem [thread:$0]  %s146_s23, 32, %s148_s8, [#allocation18]  }
  0x20   :  { %s169_s27 = sshll.u32 %s6255_s26, 4  ;;  %s191_s0 = sshll.u32 %s6893_s15, 4  ;;  %s170_s27 = int_to_ptr.vmem [resolvable:$true] %s169_s27  ;;  %s192_s0 = int_to_ptr.hbm [resolvable:$true] %s191_s0 }
  0x21   :  { %172 = dma.hbm_to_vmem [thread:$0]  %s168_s25, 32, %s170_s27, [#allocation21]  }
  0x22   :  { %s6256_s10 = smov [#allocation23]   ;;  %s212_s12 = sshll.u32 %s6895_s17, 4  ;;  %s213_s12 = int_to_ptr.hbm [resolvable:$true] %s212_s12 }
  0x23   :  { %s193_s30 = sshll.u32 %s6256_s10, 4  ;;  %s6257_s4 = smov [#allocation26]   ;;  %s194_s30 = int_to_ptr.vmem [resolvable:$true] %s193_s30 }
  0x24   :  { %196 = dma.hbm_to_vmem [thread:$0]  %s192_s0, 16, %s194_s30, [#allocation24]  }
  0x25   :  { %s214_s21 = sshll.u32 %s6257_s4, 4  ;;  %s6904_s23 = sld [smem:[#allocation39_spill]]  ;;  %s215_s21 = int_to_ptr.vmem [resolvable:$true] %s214_s21 }
  0x26   :  { %s6258_s15 = smov 64   ;;  %s6259_s24 = smov 4  }
  0x27   :  { %220 = dma.hbm_to_vmem [thread:$0]  %s213_s12, 256, %s215_s21, [#allocation27], %s6258_s15, %s6258_s15, %s6259_s24  }
  0x28   :  { %s6905_s8 = sld [smem:[#allocation41_spill]]  ;;  %s6260_s27 = smov [#allocation3]  }
  0x29   :  { %s41_s28 = sshll.u32 %s6260_s27, 4  ;;  %s6261_s17 = smov [#allocation7]   ;;  %s42_s28 = int_to_ptr.vmem [resolvable:$true] %s41_s28 }
  0x2a   :  { %s66_s29 = sshll.u32 %s6261_s17, 4  ;;  %s85_s30 = sshll.u32 %s6883_s5, 4  ;;  %s67_s29 = int_to_ptr.vmem [resolvable:$true] %s66_s29  ;;  %s86_s30 = int_to_ptr.hbm [resolvable:$true] %s85_s30 }
  0x2b   :  { %s39_s6 = sshll.u32 %s6904_s23, 4  ;;  %s110_s12 = sshll.u32 %s6885_s7, 4  ;;  %s40_s6 = int_to_ptr.hbm [resolvable:$true] %s39_s6  ;;  %s111_s12 = int_to_ptr.hbm [resolvable:$true] %s110_s12 }
  0x2c   :  { %47 = dma.hbm_to_vmem [thread:$0]  %s40_s6, 512, %s42_s28, [#allocation4], %s6258_s15, %s6258_s15, %s6259_s24  }
  0x2d   :  { %s6262_s4 = smov [#allocation10]   ;;  %s6263_s22 = smov [#allocation13]  }
  0x2e   :  { %s64_s26 = sshll.u32 %s6905_s8, 4  ;;  %s87_s21 = sshll.u32 %s6262_s4, 4  ;;  %s65_s26 = int_to_ptr.hbm [resolvable:$true] %s64_s26  ;;  %s88_s21 = int_to_ptr.vmem [resolvable:$true] %s87_s21 }
  0x2f   :  { %69 = dma.hbm_to_vmem [thread:$0]  %s65_s26, 16, %s67_s29, [#allocation6]  }
  0x30   :  { %93 = dma.hbm_to_vmem [thread:$0]  %s86_s30, 3072, %s88_s21, [#allocation9], %s6258_s15, %s6258_s15, %s6259_s24  }
  0x31   :  { %s112_s2 = sshll.u32 %s6263_s22, 4  ;;  %s131_s25 = sshll.u32 %s6887_s9, 4  ;;  %s113_s2 = int_to_ptr.vmem [resolvable:$true] %s112_s2  ;;  %s132_s25 = int_to_ptr.hbm [resolvable:$true] %s131_s25 }
  0x32   :  { %115 = dma.hbm_to_vmem [thread:$0]  %s111_s12, 16, %s113_s2, [#allocation12]  }
  0x33   :  { %s6264_s5 = smov [#allocation16]   ;;  %s156_s7 = sshll.u32 %s6889_s11, 4  ;;  %s157_s7 = int_to_ptr.hbm [resolvable:$true] %s156_s7 }
  0x34   :  { %s133_s3 = sshll.u32 %s6264_s5, 4  ;;  %s6265_s27 = smov 128   ;;  %s134_s3 = int_to_ptr.vmem [resolvable:$true] %s133_s3 }
  0x35   :  { %s6266_s28 = smov 8   ;;  %s6267_s15 = smov [#allocation19]  }
  0x36   :  { %139 = dma.hbm_to_vmem [thread:$0]  %s132_s25, 36864, %s134_s3, [#allocation15], %s6265_s27, %s6265_s27, %s6266_s28  }
  0x37   :  { %s158_s24 = sshll.u32 %s6267_s15, 4  ;;  %s180_s9 = sshll.u32 %s6892_s14, 4  ;;  %s159_s24 = int_to_ptr.vmem [resolvable:$true] %s158_s24  ;;  %s181_s9 = int_to_ptr.hbm [resolvable:$true] %s180_s9 }
  0x38   :  { %161 = dma.hbm_to_vmem [thread:$0]  %s157_s7, 32, %s159_s24, [#allocation18]  }
  0x39   :  { %s202_s30 = sshll.u32 %s6894_s16, 4  ;;  %s6268_s20 = smov [#allocation22]   ;;  %s203_s30 = int_to_ptr.hbm [resolvable:$true] %s202_s30 }
  0x3a   :  { %s182_s1 = sshll.u32 %s6268_s20, 4  ;;  %s6269_s11 = smov [#allocation25]   ;;  %s183_s1 = int_to_ptr.vmem [resolvable:$true] %s182_s1 }
  0x3b   :  { %185 = dma.hbm_to_vmem [thread:$0]  %s181_s9, 16, %s183_s1, [#allocation21]  }
  0x3c   :  { %s204_s12 = sshll.u32 %s6269_s11, 4  ;;  %s226_s22 = sshll.u32 %s6896_s18, 4  ;;  %s205_s12 = int_to_ptr.vmem [resolvable:$true] %s204_s12  ;;  %s227_s22 = int_to_ptr.hbm [resolvable:$true] %s226_s22 }
  0x3d   :  { %207 = dma.hbm_to_vmem [thread:$0]  %s203_s30, 16, %s205_s12, [#allocation24]  }
  0x3e   :  { %s6270_s14 = smov [#allocation28]  }
  0x3f   :  { %s228_s2 = sshll.u32 %s6270_s14, 4  ;;  %s229_s2 = int_to_ptr.vmem [resolvable:$true] %s228_s2 }
  0x40   :  { %231 = dma.hbm_to_vmem [thread:$0]  %s227_s22, 16, %s229_s2, [#allocation27]  }
  0x41   :  { %6232 = dma.done.wait [#allocation4], 512  }
  0x42   :  { %6233 = vsyncadd [#allocation4], 4294966784 }
  0x43   :  { %6234 = dma.done.wait [#allocation6], 32  }
  0x44   :  { %6235 = vsyncadd [#allocation6], 4294967264 }
  0x45   :  { %6236 = dma.done.wait [#allocation9], 3088  }
  0x46   :  { %6237 = vsyncadd [#allocation9], 4294964208 }
  0x47   :  { %6238 = dma.done.wait [#allocation12], 32  }
  0x48   :  { %6239 = vsyncadd [#allocation12], 4294967264 }
  0x49   :  { %6240 = dma.done.wait [#allocation15], 36880  }
  0x4a   :  { %6241 = vsyncadd [#allocation15], 4294930416 }
  0x4b   :  { %6242 = dma.done.wait [#allocation18], 64  }
  0x4c   :  { %6243 = vsyncadd [#allocation18], 4294967232 }
  0x4d   :  { %6244 = dma.done.wait [#allocation21], 48  }
  0x4e   :  { %6245 = vsyncadd [#allocation21], 4294967248 }
  0x4f   :  { %6246 = dma.done.wait [#allocation24], 32  }
  0x50   :  { %6247 = vsyncadd [#allocation24], 4294967264 }
  0x51   :  { %6248 = dma.done.wait [#allocation27], 272  }
  0x52   :  { %6249 = vsyncadd [#allocation27], 4294967024  ;;  %v5399_v0 = vld [vmem:[#allocation3 + $0x18] sm:$0xff]  ;;  %v5398_v1 = vld [vmem:[#allocation3 + $0x10] sm:$0xff]  ;;  %s6906_s23 = sld [smem:[#allocation38_spill]]  ;;  %vm477_vm0 = vcmask 523264  }
  0x53   :  { %542 = vmatpush.bf16.msra.mxu0 %v5399_v0  ;;  %v5397_v2 = vld [vmem:[#allocation3 + $0x8] sm:$0xff]  ;;  %v5396_v3 = vld [vmem:[#allocation3] sm:$0xff]  ;;  %v5406_v11 = vld [vmem:[#allocation10 + $0x30] sm:$0xff]  ;;  %vm3903_vm1 = vcmask 261120  }
  0x54   :  { %v5407_v10 = vld [vmem:[#allocation10 + $0x38] sm:$0xff]  ;;  %v5405_v12 = vld [vmem:[#allocation10 + $0x28] sm:$0xff]  ;;  %v5404_v15 = vld [vmem:[#allocation10 + $0x20] sm:$0xff] }
  0x55   :  { %1091 = vmatpush.bf16.msra.mxu2 %v5407_v10  ;;  %v5423_v13 = vld [vmem:[#allocation10 + $0xb8] sm:$0xff]  ;;  %v5422_v16 = vld [vmem:[#allocation10 + $0xb0] sm:$0xff]  ;;  %v5421_v18 = vld [vmem:[#allocation10 + $0xa8] sm:$0xff] }
  0x56   :  { %1230 = vmatpush.bf16.msra.mxu3 %v5423_v13  ;;  %v5403_v17 = vld [vmem:[#allocation10 + $0x18] sm:$0xff]  ;;  %v5402_v19 = vld [vmem:[#allocation10 + $0x10] sm:$0xff]  ;;  %v5420_v20 = vld [vmem:[#allocation10 + $0xa0] sm:$0xff] }
  0x57   :  { %543 = vmatpush.bf16.msra.mxu0 %v5398_v1  ;;  %v5401_v21 = vld [vmem:[#allocation10 + $0x8] sm:$0xff]  ;;  %v5419_v22 = vld [vmem:[#allocation10 + $0x98] sm:$0xff]  ;;  %v5400_v24 = vld [vmem:[#allocation10] sm:$0xff] }
  0x58   :  { %v5376_v4 = vld [vmem:[%s6906_s23] sm:$0xff]  ;;  %v5377_v5 = vld [vmem:[%s6906_s23 + $0x8] sm:$0xff]  ;;  %v5378_v6 = vld [vmem:[%s6906_s23 + $0x10] sm:$0xff] }
  0x59   :  { %v5379_v7 = vld [vmem:[%s6906_s23 + $0x18] sm:$0xff]  ;;  %v5380_v8 = vld [vmem:[%s6906_s23 + $0x20] sm:$0xff]  ;;  %v5381_v9 = vld [vmem:[%s6906_s23 + $0x28] sm:$0xff]  ;;  %1092 = vmatpush.bf16.msra.mxu2 %v5406_v11 }
  0x5a   :  { %v5382_v14 = vld [vmem:[%s6906_s23 + $0x30] sm:$0xff]  ;;  %1231 = vmatpush.bf16.msra.mxu3 %v5422_v16  ;;  %v5383_v23 = vld [vmem:[%s6906_s23 + $0x38] sm:$0xff]  ;;  %v6454_v28 = vld [vmem:[#allocation5] ss:$0 sm:$0xff] }
  0x5b   :  { %544 = vmatpush.bf16.msra.mxu0 %v5397_v2  ;;  %v5418_v25 = vld [vmem:[#allocation10 + $0x90] sm:$0xff]  ;;  %v5417_v26 = vld [vmem:[#allocation10 + $0x88] sm:$0xff]  ;;  %v5416_v27 = vld [vmem:[#allocation10 + $0x80] sm:$0xff] }
  0x5c   :  { %v5384_v29 = vld [vmem:[%s6906_s23 + $0x40] sm:$0xff]  ;;  %v6460_v33 = vld [vmem:[#allocation7] ss:$0 sm:$0xff]  ;;  %v6464_v35 = vld [vmem:[#allocation8] ss:$0 sm:$0xff] }
  0x5d   :  { %1093 = vmatpush.bf16.msra.mxu2 %v5405_v12  ;;  %v5385_v41 = vld [vmem:[%s6906_s23 + $0x48] sm:$0xff]  ;;  %v5386_v60 = vld [vmem:[%s6906_s23 + $0x50] sm:$0xff]  ;;  %v5387_v13 = vld [vmem:[%s6906_s23 + $0x58] sm:$0xff] }
  0x5e   :  { %1232 = vmatpush.bf16.msra.mxu3 %v5421_v18 }
  0x5f   :  { %545 = vmatpush.bf16.msra.mxu0 %v5396_v3 }
  0x61   :  { %1094 = vmatpush.bf16.msra.mxu2 %v5404_v15 }
  0x62   :  { %4035 = vmatmul.msk.bf16.vlgmr.msra.gmra.mxu0 %vm477_vm0, %v5376_v4  ;;  %1233 = vmatpush.bf16.msra.mxu3 %v5420_v20 }
  0x65   :  { %1095 = vmatpush.bf16.msra.mxu2 %v5403_v17 }
  0x66   :  { %1234 = vmatpush.bf16.msra.mxu3 %v5419_v22 }
  0x69   :  { %1096 = vmatpush.bf16.msra.mxu2 %v5402_v19 }
  0x6a   :  { %1235 = vmatpush.bf16.msra.mxu3 %v5418_v25 }
  0x6d   :  { %1097 = vmatpush.bf16.msra.mxu2 %v5401_v21 }
  0x6e   :  { %1236 = vmatpush.bf16.msra.mxu3 %v5417_v26 }
  0x71   :  { %1098 = vmatpush.bf16.msra.mxu2 %v5400_v24 }
  0x72   :  { %4036 = vmatmul.msk.bf16.gmra.mxu0 %vm477_vm0, %v5377_v5  ;;  %1237 = vmatpush.bf16.msra.mxu3 %v5416_v27 }
  0x82   :  { %4037 = vmatmul.msk.bf16.gmra.mxu0 %vm477_vm0, %v5378_v6 }
  0x92   :  { %4038 = vmatmul.msk.bf16.gmra.mxu0 %vm477_vm0, %v5379_v7 }
  0xa2   :  { %4039 = vmatmul.msk.bf16.gmra.mxu0 %vm477_vm0, %v5380_v8 }
  0xb2   :  { %4040 = vmatmul.msk.bf16.gmra.mxu0 %vm477_vm0, %v5381_v9 }
  0xc2   :  { %4041 = vmatmul.msk.bf16.gmra.mxu0 %vm477_vm0, %v5382_v14 }
  0xd2   :  { %4042 = vmatmul.msk.bf16.gmra.mxu0 %vm477_vm0, %v5383_v23 }
  0xdf   :  { %v547_v30 = vpop.f32.mrf.mxu0 }
  0xe0   :  { %v548_v31 = vadd.f32 %v6454_v28, %v547_v30 }
  0xe2   :  { %v644_v32 = vmax.f32 %v548_v31, 0.0  ;;  %4043 = vmatmul.msk.bf16.gmra.mxu0 %vm477_vm0, %v5384_v29  ;;  %v5388_v31 = vld [vmem:[%s6906_s23 + $0x60] sm:$0xff] }
  0xe4   :  { %v685_v34 = vmul.f32 %v6460_v33, %v644_v32 }
  0xe6   :  { %v726_v39 = vadd.f32 %v6464_v35, %v685_v34 }
  0xe7   :  { %v549_v36 = vpop.f32.mrf.mxu0 }
  0xe8   :  { %v550_v37 = vadd.f32 %v6454_v28, %v549_v36  ;;  %v763_v43 = vpack.c.bf16 %v726_v39, %v726_v39 }
  0xea   :  { %v645_v38 = vmax.f32 %v550_v37, 0.0  ;;  %v1007_v48 = vunpack.c.l.b16 %v763_v43 }
  0xec   :  { %v686_v40 = vmul.f32 %v6460_v33, %v645_v38 }
  0xee   :  { %v727_v42 = vadd.f32 %v6464_v35, %v686_v40 }
  0xef   :  { %v552_v44 = vpop.f32.mrf.mxu0 }
  0xf0   :  { %v553_v45 = vadd.f32 %v6454_v28, %v552_v44  ;;  %v764_v46 = vpack.c.bf16 %v727_v42, %v727_v42 }
  0xf2   :  { %v646_v47 = vmax.f32 %v553_v45, 0.0  ;;  %4044 = vmatmul.msk.bf16.gmra.mxu0 %vm477_vm0, %v5385_v41  ;;  %v1008_v49 = vunpack.c.l.b16 %v764_v46 }
  0xf4   :  { %v687_v50 = vmul.f32 %v6460_v33, %v646_v47  ;;  %v1025_v51 = vpack.c.b16 %v1008_v49, %v1007_v48 }
  0xf6   :  { %1099 = vmatmul.bf16.vlgmr.msra.gmra.mxu2 %v1025_v51  ;;  %v728_v52 = vadd.f32 %v6464_v35, %v687_v50  ;;  %v5389_v50 = vld [vmem:[%s6906_s23 + $0x68] sm:$0xff] }
  0xf7   :  { %v554_v53 = vpop.f32.mrf.mxu0 }
  0xf8   :  { %v555_v54 = vadd.f32 %v6454_v28, %v554_v53  ;;  %v765_v55 = vpack.c.bf16 %v728_v52, %v728_v52 }
  0xfa   :  { %v647_v56 = vmax.f32 %v555_v54, 0.0  ;;  %v1009_v57 = vunpack.c.l.b16 %v765_v55 }
  0xfc   :  { %v688_v58 = vmul.f32 %v6460_v33, %v647_v56  ;;  %v1164_v59 = vpack.c.b16 %v1009_v57, %v1008_v49 }
  0xfe   :  { %1238 = vmatmul.bf16.vlgmr.msra.gmra.mxu3 %v1164_v59  ;;  %v729_v61 = vadd.f32 %v6464_v35, %v688_v58 }
  0xff   :  { %v557_v62 = vpop.f32.mrf.mxu0 }
 0x100   :  { %v558_v63 = vadd.f32 %v6454_v28, %v557_v62  ;;  %v766_v0 = vpack.c.bf16 %v729_v61, %v729_v61 }
 0x102   :  { %v648_v1 = vmax.f32 %v558_v63, 0.0  ;;  %4045 = vmatmul.msk.bf16.gmra.mxu0 %vm477_vm0, %v5386_v60  ;;  %v1010_v2 = vunpack.c.l.b16 %v766_v0 }
 0x104   :  { %v689_v3 = vmul.f32 %v6460_v33, %v648_v1  ;;  %v1026_v4 = vpack.c.b16 %v1010_v2, %v1009_v57 }
 0x106   :  { %1104 = vmatmul.bf16.gmra.mxu2 %v1026_v4  ;;  %v730_v5 = vadd.f32 %v6464_v35, %v689_v3  ;;  %v5390_v3 = vld [vmem:[%s6906_s23 + $0x70] sm:$0xff] }
 0x107   :  { %v559_v6 = vpop.f32.mrf.mxu0 }
 0x108   :  { %v560_v7 = vadd.f32 %v6454_v28, %v559_v6  ;;  %v767_v8 = vpack.c.bf16 %v730_v5, %v730_v5 }
 0x10a   :  { %v649_v9 = vmax.f32 %v560_v7, 0.0  ;;  %v1011_v10 = vunpack.c.l.b16 %v767_v8 }
 0x10c   :  { %v690_v11 = vmul.f32 %v6460_v33, %v649_v9  ;;  %v1165_v12 = vpack.c.b16 %v1011_v10, %v1010_v2 }
 0x10e   :  { %1243 = vmatmul.bf16.gmra.mxu3 %v1165_v12  ;;  %v731_v14 = vadd.f32 %v6464_v35, %v690_v11 }
 0x10f   :  { %v562_v15 = vpop.f32.mrf.mxu0 }
 0x110   :  { %v563_v16 = vadd.f32 %v6454_v28, %v562_v15  ;;  %v768_v17 = vpack.c.bf16 %v731_v14, %v731_v14 }
 0x112   :  { %v650_v18 = vmax.f32 %v563_v16, 0.0  ;;  %4046 = vmatmul.msk.bf16.gmra.mxu0 %vm477_vm0, %v5387_v13  ;;  %v1012_v19 = vunpack.c.l.b16 %v768_v17 }
 0x114   :  { %v691_v20 = vmul.f32 %v6460_v33, %v650_v18  ;;  %v1027_v21 = vpack.c.b16 %v1012_v19, %v1011_v10 }
 0x116   :  { %1109 = vmatmul.bf16.gmra.mxu2 %v1027_v21  ;;  %v732_v22 = vadd.f32 %v6464_v35, %v691_v20  ;;  %v5391_v20 = vld [vmem:[%s6906_s23 + $0x78] sm:$0xff] }
 0x117   :  { %v564_v23 = vpop.f32.mrf.mxu0 }
 0x118   :  { %v565_v24 = vadd.f32 %v6454_v28, %v564_v23  ;;  %v769_v25 = vpack.c.bf16 %v732_v22, %v732_v22 }
 0x11a   :  { %v651_v26 = vmax.f32 %v565_v24, 0.0  ;;  %v1013_v27 = vunpack.c.l.b16 %v769_v25 }
 0x11c   :  { %v692_v29 = vmul.f32 %v6460_v33, %v651_v26  ;;  %v1166_v30 = vpack.c.b16 %v1013_v27, %v1012_v19 }
 0x11e   :  { %1248 = vmatmul.bf16.gmra.mxu3 %v1166_v30  ;;  %v733_v32 = vadd.f32 %v6464_v35, %v692_v29  ;;  %v5415_v30 = vld [vmem:[#allocation10 + $0x78] sm:$0xff] }
 0x11f   :  { %v567_v34 = vpop.f32.mrf.mxu0  ;;  %935 = vmatpush.bf16.msra.mxu1 %v5415_v30 }
 0x120   :  { %v568_v36 = vadd.f32 %v6454_v28, %v567_v34  ;;  %v770_v37 = vpack.c.bf16 %v733_v32, %v733_v32 }
 0x122   :  { %v652_v38 = vmax.f32 %v568_v36, 0.0  ;;  %4047 = vmatmul.msk.bf16.gmra.mxu0 %vm477_vm0, %v5388_v31  ;;  %v1014_v39 = vunpack.c.l.b16 %v770_v37  ;;  %v5414_v37 = vld [vmem:[#allocation10 + $0x70] sm:$0xff] }
 0x123   :  { %936 = vmatpush.bf16.msra.mxu1 %v5414_v37 }
 0x124   :  { %v693_v40 = vmul.f32 %v6460_v33, %v652_v38  ;;  %v1028_v41 = vpack.c.b16 %v1014_v39, %v1013_v27 }
 0x126   :  { %1114 = vmatmul.bf16.gmra.mxu2 %v1028_v41  ;;  %v734_v42 = vadd.f32 %v6464_v35, %v693_v40 }
 0x127   :  { %v569_v43 = vpop.f32.mrf.mxu0 }
 0x128   :  { %v570_v44 = vadd.f32 %v6454_v28, %v569_v43  ;;  %v771_v45 = vpack.c.bf16 %v734_v42, %v734_v42  ;;  %v5413_v42 = vld [vmem:[#allocation10 + $0x68] sm:$0xff]  ;;  %v5392_v43 = vld [vmem:[%s6906_s23 + $0x80] sm:$0xff] }
 0x129   :  { %937 = vmatpush.bf16.msra.mxu1 %v5413_v42 }
 0x12a   :  { %v653_v46 = vmax.f32 %v570_v44, 0.0  ;;  %v1015_v47 = vunpack.c.l.b16 %v771_v45 }
 0x12c   :  { %v694_v48 = vmul.f32 %v6460_v33, %v653_v46  ;;  %v1167_v49 = vpack.c.b16 %v1015_v47, %v1014_v39 }
 0x12e   :  { %1253 = vmatmul.bf16.gmra.mxu3 %v1167_v49  ;;  %v735_v51 = vadd.f32 %v6464_v35, %v694_v48  ;;  %v5412_v48 = vld [vmem:[#allocation10 + $0x60] sm:$0xff] }
 0x12f   :  { %v572_v52 = vpop.f32.mrf.mxu0  ;;  %938 = vmatpush.bf16.msra.mxu1 %v5412_v48  ;;  %v4651_v48 = vld [vmem:[#allocation16 + $0x3e8] sm:$0xf0] }
 0x130   :  { %v573_v53 = vadd.f32 %v6454_v28, %v572_v52  ;;  %v772_v54 = vpack.c.bf16 %v735_v51, %v735_v51 }
 0x132   :  { %v654_v55 = vmax.f32 %v573_v53, 0.0  ;;  %4048 = vmatmul.msk.bf16.gmra.mxu0 %vm477_vm0, %v5389_v50  ;;  %v1016_v56 = vunpack.c.l.b16 %v772_v54  ;;  %v5411_v53 = vld [vmem:[#allocation10 + $0x58] sm:$0xff] }
 0x133   :  { %939 = vmatpush.bf16.msra.mxu1 %v5411_v53 }
 0x134   :  { %v695_v57 = vmul.f32 %v6460_v33, %v654_v55  ;;  %v1029_v58 = vpack.c.b16 %v1016_v56, %v1015_v47 }
 0x136   :  { %1119 = vmatmul.bf16.gmra.mxu2 %v1029_v58  ;;  %v736_v59 = vadd.f32 %v6464_v35, %v695_v57  ;;  %v5410_v58 = vld [vmem:[#allocation10 + $0x50] sm:$0xff] }
 0x137   :  { %v574_v60 = vpop.f32.mrf.mxu0  ;;  %940 = vmatpush.bf16.msra.mxu1 %v5410_v58 }
 0x138   :  { %v575_v61 = vadd.f32 %v6454_v28, %v574_v60  ;;  %v773_v62 = vpack.c.bf16 %v736_v59, %v736_v59 }
 0x13a   :  { %v655_v63 = vmax.f32 %v575_v61, 0.0  ;;  %v1017_v0 = vunpack.c.l.b16 %v773_v62 }
 0x13c   :  { %v696_v1 = vmul.f32 %v6460_v33, %v655_v63  ;;  %v1168_v2 = vpack.c.b16 %v1017_v0, %v1016_v56  ;;  %v5409_v63 = vld [vmem:[#allocation10 + $0x48] sm:$0xff] }
 0x13d   :  { %941 = vmatpush.bf16.msra.mxu1 %v5409_v63 }
 0x13e   :  { %1258 = vmatmul.bf16.gmra.mxu3 %v1168_v2  ;;  %v737_v4 = vadd.f32 %v6464_v35, %v696_v1 }
 0x13f   :  { %v577_v5 = vpop.f32.mrf.mxu0 }
 0x140   :  { %v578_v6 = vadd.f32 %v6454_v28, %v577_v5  ;;  %v774_v7 = vpack.c.bf16 %v737_v4, %v737_v4  ;;  %v5408_v5 = vld [vmem:[#allocation10 + $0x40] sm:$0xff] }
 0x141   :  { %942 = vmatpush.bf16.msra.mxu1 %v5408_v5 }
 0x142   :  { %v656_v8 = vmax.f32 %v578_v6, 0.0  ;;  %4049 = vmatmul.msk.bf16.gmra.mxu0 %vm477_vm0, %v5390_v3  ;;  %v1018_v9 = vunpack.c.l.b16 %v774_v7 }
 0x144   :  { %v697_v10 = vmul.f32 %v6460_v33, %v656_v8  ;;  %v1030_v11 = vpack.c.b16 %v1018_v9, %v1017_v0  ;;  %v5393_v0 = vld [vmem:[%s6906_s23 + $0x88] sm:$0xff] }
 0x146   :  { %1124 = vmatmul.bf16.gmra.mxu2 %v1030_v11  ;;  %v738_v12 = vadd.f32 %v6464_v35, %v697_v10  ;;  %v5550_v10 = vld [vmem:[#allocation16 + $0x3f4] sm:$0xf]  ;;  %v4659_v11 = vld [vmem:[#allocation16 + $0x3f8] sm:$0xf0] }
 0x147   :  { %v579_v13 = vpop.f32.mrf.mxu0 }
 0x148   :  { %v580_v14 = vadd.f32 %v6454_v28, %v579_v13  ;;  %v775_v15 = vpack.c.bf16 %v738_v12, %v738_v12  ;;  %v4662_v12 = vor.u32 %v5550_v10, %v4659_v11 }
 0x14a   :  { %v657_v16 = vmax.f32 %v580_v14, 0.0  ;;  %v1019_v17 = vunpack.c.l.b16 %v775_v15  ;;  %2410 = vmatpush.bf16.msrb.mxu0 %v4662_v12 }
 0x14c   :  { %v698_v18 = vmul.f32 %v6460_v33, %v657_v16  ;;  %v1169_v19 = vpack.c.b16 %v1019_v17, %v1018_v9 }
 0x14e   :  { %1263 = vmatmul.bf16.gmra.mxu3 %v1169_v19  ;;  %v739_v21 = vadd.f32 %v6464_v35, %v698_v18  ;;  %v5394_v18 = vld [vmem:[%s6906_s23 + $0x90] sm:$0xff] }
 0x14f   :  { %v582_v22 = vpop.f32.mrf.mxu0 }
 0x150   :  { %v583_v23 = vadd.f32 %v6454_v28, %v582_v22  ;;  %v776_v24 = vpack.c.bf16 %v739_v21, %v739_v21 }
 0x152   :  { %v658_v25 = vmax.f32 %v583_v23, 0.0  ;;  %4050 = vmatmul.msk.bf16.gmra.mxu0 %vm477_vm0, %v5391_v20  ;;  %v1020_v26 = vunpack.c.l.b16 %v776_v24 }
 0x154   :  { %v699_v27 = vmul.f32 %v6460_v33, %v658_v25  ;;  %v1031_v29 = vpack.c.b16 %v1020_v26, %v1019_v17 }
 0x156   :  { %1129 = vmatmul.bf16.gmra.mxu2 %v1031_v29  ;;  %v740_v31 = vadd.f32 %v6464_v35, %v699_v27 }
 0x157   :  { %v584_v32 = vpop.f32.mrf.mxu0 }
 0x158   :  { %v585_v34 = vadd.f32 %v6454_v28, %v584_v32  ;;  %v777_v36 = vpack.c.bf16 %v740_v31, %v740_v31 }
 0x15a   :  { %v659_v38 = vmax.f32 %v585_v34, 0.0  ;;  %v1021_v39 = vunpack.c.l.b16 %v777_v36 }
 0x15c   :  { %v700_v40 = vmul.f32 %v6460_v33, %v659_v38  ;;  %v1170_v41 = vpack.c.b16 %v1021_v39, %v1020_v26 }
 0x15e   :  { %1268 = vmatmul.bf16.gmra.mxu3 %v1170_v41  ;;  %v741_v44 = vadd.f32 %v6464_v35, %v700_v40 }
 0x15f   :  { %v587_v45 = vpop.f32.mrf.mxu0 }
 0x160   :  { %v588_v46 = vadd.f32 %v6454_v28, %v587_v45  ;;  %v778_v47 = vpack.c.bf16 %v741_v44, %v741_v44 }
 0x162   :  { %v660_v49 = vmax.f32 %v588_v46, 0.0  ;;  %4051 = vmatmul.msk.bf16.gmra.mxu0 %vm477_vm0, %v5392_v43  ;;  %v1022_v50 = vunpack.c.l.b16 %v778_v47  ;;  %v5548_v47 = vld [vmem:[#allocation16 + $0x3e4] sm:$0xf] }
 0x164   :  { %v701_v51 = vmul.f32 %v6460_v33, %v660_v49  ;;  %v1032_v52 = vpack.c.b16 %v1022_v50, %v1021_v39  ;;  %v4654_v49 = vor.u32 %v5548_v47, %v4651_v48  ;;  %v5455_v47 = vld [vmem:[#allocation16 + $0xf4] sm:$0xf0]  ;;  %v5454_v48 = vld [vmem:[#allocation16 + $0xf4] sm:$0xf] }
 0x166   :  { %1134 = vmatmul.bf16.gmra.mxu2 %v1032_v52  ;;  %v742_v54 = vadd.f32 %v6464_v35, %v701_v51  ;;  %2411 = vmatpush.bf16.msrb.mxu0 %v4654_v49 }
 0x167   :  { %v589_v55 = vpop.f32.mrf.mxu0 }
 0x168   :  { %v590_v56 = vadd.f32 %v6454_v28, %v589_v55  ;;  %v779_v57 = vpack.c.bf16 %v742_v54, %v742_v54 }
 0x16a   :  { %v661_v59 = vmax.f32 %v590_v56, 0.0  ;;  %v1023_v60 = vunpack.c.l.b16 %v779_v57 }
 0x16c   :  { %v702_v61 = vmul.f32 %v6460_v33, %v661_v59  ;;  %v1171_v62 = vpack.c.b16 %v1023_v60, %v1022_v50 }
 0x16e   :  { %1273 = vmatmul.bf16.gmra.mxu3 %v1171_v62  ;;  %v743_v1 = vadd.f32 %v6464_v35, %v702_v61 }
 0x16f   :  { %v592_v2 = vpop.f32.mrf.mxu0 }
 0x170   :  { %v593_v3 = vadd.f32 %v6454_v28, %v592_v2  ;;  %v780_v4 = vpack.c.bf16 %v743_v1, %v743_v1 }
 0x172   :  { %v662_v6 = vmax.f32 %v593_v3, 0.0  ;;  %4052 = vmatmul.msk.bf16.gmra.mxu0 %vm477_vm0, %v5393_v0  ;;  %v1024_v7 = vunpack.c.l.b16 %v780_v4 }
 0x174   :  { %v703_v8 = vmul.f32 %v6460_v33, %v662_v6  ;;  %v1033_v9 = vpack.c.b16 %v1024_v7, %v1023_v60 }
 0x176   :  { %1139 = vmatmul.bf16.gmra.mxu2 %v1033_v9  ;;  %v744_v13 = vadd.f32 %v6464_v35, %v703_v8 }
 0x177   :  { %v594_v14 = vpop.f32.mrf.mxu0 }
 0x178   :  { %v781_v15 = vpack.c.bf16 %v744_v13, %v744_v13 }
 0x17a   :  { %v1163_v16 = vunpack.c.l.b16 %v781_v15 }
 0x17c   :  { %v1172_v17 = vpack.c.b16 %v1163_v16, %v1024_v7 }
 0x17e   :  { %1278 = vmatmul.bf16.gmra.mxu3 %v1172_v17 }
 0x17f   :  { %v596_v19 = vpop.f32.mrf.mxu0 }
 0x180   :  { %v597_v20 = vadd.f32 %v6454_v28, %v596_v19 }
 0x182   :  { %v663_v21 = vmax.f32 %v597_v20, 0.0  ;;  %4053 = vmatmul.msk.bf16.gmra.mxu0 %vm477_vm0, %v5394_v18 }
 0x184   :  { %v704_v22 = vmul.f32 %v6460_v33, %v663_v21 }
 0x186   :  { %v745_v26 = vadd.f32 %v6464_v35, %v704_v22 }
 0x187   :  { %v598_v23 = vpop.f32.mrf.mxu0 }
 0x188   :  { %v599_v24 = vadd.f32 %v6454_v28, %v598_v23  ;;  %v782_v30 = vpack.c.bf16 %v745_v26, %v745_v26  ;;  %v4643_v26 = vld [vmem:[#allocation16 + $0x3d8] sm:$0xf0] }
 0x18a   :  { %v664_v25 = vmax.f32 %v599_v24, 0.0  ;;  %v851_v37 = vunpack.c.l.b16 %v782_v30 }
 0x18c   :  { %v705_v27 = vmul.f32 %v6460_v33, %v664_v25  ;;  %v5546_v25 = vld [vmem:[#allocation16 + $0x3d4] sm:$0xf] }
 0x18e   :  { %v746_v29 = vadd.f32 %v6464_v35, %v705_v27  ;;  %v4646_v27 = vor.u32 %v5546_v25, %v4643_v26  ;;  %v4187_v26 = vld [vmem:[#allocation16 + $0xc8] sm:$0xf0] }
 0x18f   :  { %v601_v31 = vpop.f32.mrf.mxu0 }
 0x190   :  { %v602_v32 = vadd.f32 %v6454_v28, %v601_v31  ;;  %v783_v34 = vpack.c.bf16 %v746_v29, %v746_v29  ;;  %2412 = vmatpush.bf16.msrb.mxu0 %v4646_v27  ;;  %v4249_v27 = vld [vmem:[#allocation16 + $0x40] sm:$0xf] }
 0x192   :  { %v665_v36 = vmax.f32 %v602_v32, 0.0  ;;  %v852_v38 = vunpack.c.l.b16 %v783_v34 }
 0x194   :  { %v706_v39 = vmul.f32 %v6460_v33, %v665_v36  ;;  %v869_v40 = vpack.c.b16 %v852_v38, %v851_v37 }
 0x196   :  { %943 = vmatmul.bf16.vlgmr.msra.gmra.mxu1 %v869_v40  ;;  %v747_v43 = vadd.f32 %v6464_v35, %v706_v39 }
 0x197   :  { %v603_v41 = vpop.f32.mrf.mxu0 }
 0x198   :  { %v604_v42 = vadd.f32 %v6454_v28, %v603_v41  ;;  %v784_v46 = vpack.c.bf16 %v747_v43, %v747_v43 }
 0x19a   :  { %v666_v44 = vmax.f32 %v604_v42, 0.0  ;;  %v853_v54 = vunpack.c.l.b16 %v784_v46  ;;  %v4209_v46 = vld [vmem:[#allocation16 + $0xf0] sm:$0xf] }
 0x19b   :  { %v4210_v49 = vor.u32 %v5455_v47, %v4209_v46 }
 0x19c   :  { %v707_v45 = vmul.f32 %v6460_v33, %v666_v44 }
 0x19d   :  { %1537 = vmatpush.bf16.msrb.mxu1 %v4210_v49  ;;  %v5445_v49 = vld [vmem:[#allocation16 + $0xa4] sm:$0xf0] }
 0x19e   :  { %v748_v50 = vadd.f32 %v6464_v35, %v707_v45 }
 0x19f   :  { %v606_v51 = vpop.f32.mrf.mxu0 }
 0x1a0   :  { %v607_v52 = vadd.f32 %v6454_v28, %v606_v51  ;;  %v785_v53 = vpack.c.bf16 %v748_v50, %v748_v50  ;;  %v4211_v50 = vld [vmem:[#allocation16 + $0xf8] sm:$0xf0]  ;;  %v4273_v51 = vld [vmem:[#allocation16 + $0x70] sm:$0xf] }
 0x1a2   :  { %v667_v55 = vmax.f32 %v607_v52, 0.0  ;;  %v854_v56 = vunpack.c.l.b16 %v785_v53  ;;  %v5439_v52 = vld [vmem:[#allocation16 + $0x74] sm:$0xf0] }
 0x1a4   :  { %v708_v57 = vmul.f32 %v6460_v33, %v667_v55  ;;  %v870_v58 = vpack.c.b16 %v854_v56, %v853_v54  ;;  %v4214_v54 = vor.u32 %v5454_v48, %v4211_v50  ;;  %v4274_v55 = vor.u32 %v5439_v52, %v4273_v51  ;;  %v4169_v48 = vld [vmem:[#allocation16 + $0xa0] sm:$0xf]  ;;  %v5444_v50 = vld [vmem:[#allocation16 + $0xa4] sm:$0xf] }
 0x1a5   :  { %v4170_v52 = vor.u32 %v5445_v49, %v4169_v48 }
 0x1a6   :  { %948 = vmatmul.bf16.gmra.mxu1 %v870_v58  ;;  %v749_v61 = vadd.f32 %v6464_v35, %v708_v57  ;;  %1550 = vmatpush.bf16.msrb.mxu2 %v4214_v54  ;;  %v4201_v58 = vld [vmem:[#allocation16 + $0xe0] sm:$0xf] }
 0x1a7   :  { %v608_v59 = vpop.f32.mrf.mxu0  ;;  %1643 = vmatpush.bf16.msrb.mxu3 %v4274_v55  ;;  %v4233_v54 = vld [vmem:[#allocation16 + $0x20] sm:$0xf] }
 0x1a8   :  { %v609_v60 = vadd.f32 %v6454_v28, %v608_v59  ;;  %v786_v0 = vpack.c.bf16 %v749_v61, %v749_v61  ;;  %v5453_v59 = vld [vmem:[#allocation16 + $0xe4] sm:$0xf0] }
 0x1aa   :  { %v668_v62 = vmax.f32 %v609_v60, 0.0  ;;  %v855_v5 = vunpack.c.l.b16 %v786_v0  ;;  %v5452_v60 = vld [vmem:[#allocation16 + $0xe4] sm:$0xf]  ;;  %v4265_v0 = vld [vmem:[#allocation16 + $0x60] sm:$0xf] }
 0x1ac   :  { %v709_v63 = vmul.f32 %v6460_v33, %v668_v62  ;;  %v4202_v62 = vor.u32 %v5453_v59, %v4201_v58 }
 0x1ae   :  { %v750_v1 = vadd.f32 %v6464_v35, %v709_v63  ;;  %v4203_v63 = vld [vmem:[#allocation16 + $0xe8] sm:$0xf0]  ;;  %1538 = vmatpush.bf16.msrb.mxu1 %v4202_v62  ;;  %v4161_v62 = vld [vmem:[#allocation16 + $0x90] sm:$0xf] }
 0x1af   :  { %v611_v2 = vpop.f32.mrf.mxu0 }
 0x1b0   :  { %v612_v3 = vadd.f32 %v6454_v28, %v611_v2  ;;  %v787_v4 = vpack.c.bf16 %v750_v1, %v750_v1  ;;  %v4206_v1 = vor.u32 %v5452_v60, %v4203_v63  ;;  %v5437_v2 = vld [vmem:[#allocation16 + $0x64] sm:$0xf0]  ;;  %v5544_v60 = vld [vmem:[#allocation16 + $0x3c4] sm:$0xf] }
 0x1b2   :  { %v669_v6 = vmax.f32 %v612_v3, 0.0  ;;  %v856_v7 = vunpack.c.l.b16 %v787_v4  ;;  %1551 = vmatpush.bf16.msrb.mxu2 %v4206_v1  ;;  %v5442_v1 = vld [vmem:[#allocation16 + $0x94] sm:$0xf] }
 0x1b4   :  { %v710_v8 = vmul.f32 %v6460_v33, %v669_v6  ;;  %v871_v9 = vpack.c.b16 %v856_v7, %v855_v5  ;;  %v4266_v5 = vor.u32 %v5437_v2, %v4265_v0  ;;  %v4193_v6 = vld [vmem:[#allocation16 + $0xd0] sm:$0xf]  ;;  %v5451_v7 = vld [vmem:[#allocation16 + $0xd4] sm:$0xf0]  ;;  %v4163_v2 = vld [vmem:[#allocation16 + $0x98] sm:$0xf0] }
 0x1b5   :  { %v5443_v0 = vld [vmem:[#allocation16 + $0x94] sm:$0xf0] }
 0x1b6   :  { %953 = vmatmul.bf16.gmra.mxu1 %v871_v9  ;;  %v751_v12 = vadd.f32 %v6464_v35, %v710_v8  ;;  %v5450_v8 = vld [vmem:[#allocation16 + $0xd4] sm:$0xf]  ;;  %1644 = vmatpush.bf16.msrb.mxu3 %v4266_v5  ;;  %v4166_v5 = vor.u32 %v5442_v1, %v4163_v2 }
 0x1b7   :  { %v613_v10 = vpop.f32.mrf.mxu0 }
 0x1b8   :  { %v614_v11 = vadd.f32 %v6454_v28, %v613_v10  ;;  %v788_v15 = vpack.c.bf16 %v751_v12, %v751_v12  ;;  %v4194_v10 = vor.u32 %v5451_v7, %v4193_v6  ;;  %v4257_v12 = vld [vmem:[#allocation16 + $0x50] sm:$0xf]  ;;  %v5427_v7 = vld [vmem:[#allocation16 + $0x14] sm:$0xf0] }
 0x1b9   :  { %v4225_v6 = vld [vmem:[#allocation16 + $0x10] sm:$0xf] }
 0x1ba   :  { %v670_v13 = vmax.f32 %v614_v11, 0.0  ;;  %v857_v20 = vunpack.c.l.b16 %v788_v15  ;;  %v4195_v11 = vld [vmem:[#allocation16 + $0xd8] sm:$0xf0]  ;;  %1539 = vmatpush.bf16.msrb.mxu1 %v4194_v10 }
 0x1bb   :  { %v4198_v15 = vor.u32 %v5450_v8, %v4195_v11 }
 0x1bc   :  { %v711_v14 = vmul.f32 %v6460_v33, %v670_v13  ;;  %v5435_v13 = vld [vmem:[#allocation16 + $0x54] sm:$0xf0] }
 0x1bd   :  { %1552 = vmatpush.bf16.msrb.mxu2 %v4198_v15  ;;  %v5441_v15 = vld [vmem:[#allocation16 + $0x84] sm:$0xf0] }
 0x1be   :  { %v752_v16 = vadd.f32 %v6464_v35, %v711_v14 }
 0x1bf   :  { %v616_v17 = vpop.f32.mrf.mxu0 }
 0x1c0   :  { %v617_v18 = vadd.f32 %v6454_v28, %v616_v17  ;;  %v789_v19 = vpack.c.bf16 %v752_v16, %v752_v16  ;;  %v4258_v16 = vor.u32 %v5435_v13, %v4257_v12  ;;  %v6604_v13 = vpop.f32.mrf.mxu2 }
 0x1c2   :  { %v671_v21 = vmax.f32 %v617_v18, 0.0  ;;  %v858_v22 = vunpack.c.l.b16 %v789_v19  ;;  %1645 = vmatpush.bf16.msrb.mxu3 %v4258_v16  ;;  %v5440_v16 = vld [vmem:[#allocation16 + $0x84] sm:$0xf] }
 0x1c4   :  { %v712_v23 = vmul.f32 %v6460_v33, %v671_v21  ;;  %v872_v24 = vpack.c.b16 %v858_v22, %v857_v20  ;;  %v4185_v20 = vld [vmem:[#allocation16 + $0xc0] sm:$0xf]  ;;  %v5449_v21 = vld [vmem:[#allocation16 + $0xc4] sm:$0xf0]  ;;  %v5448_v22 = vld [vmem:[#allocation16 + $0xc4] sm:$0xf] }
 0x1c5   :  { %v4186_v25 = vor.u32 %v5449_v21, %v4185_v20  ;;  %v4155_v20 = vld [vmem:[#allocation16 + $0x88] sm:$0xf0]  ;;  %v4217_v21 = vld [vmem:[#allocation16] sm:$0xf] }
 0x1c6   :  { %958 = vmatmul.bf16.gmra.mxu1 %v872_v24  ;;  %v753_v31 = vadd.f32 %v6464_v35, %v712_v23 }
 0x1c7   :  { %v618_v29 = vpop.f32.mrf.mxu0  ;;  %1540 = vmatpush.bf16.msrb.mxu1 %v4186_v25  ;;  %v5438_v25 = vld [vmem:[#allocation16 + $0x74] sm:$0xf] }
 0x1c8   :  { %v619_v30 = vadd.f32 %v6454_v28, %v618_v29  ;;  %v790_v36 = vpack.c.bf16 %v753_v31, %v753_v31  ;;  %v4190_v29 = vor.u32 %v5448_v22, %v4187_v26  ;;  %v6606_v22 = vpop.f32.mrf.mxu3  ;;  %v4275_v26 = vld [vmem:[#allocation16 + $0x78] sm:$0xf0] }
 0x1ca   :  { %v672_v32 = vmax.f32 %v619_v30, 0.0  ;;  %v859_v41 = vunpack.c.l.b16 %v790_v36  ;;  %v5433_v30 = vld [vmem:[#allocation16 + $0x44] sm:$0xf0]  ;;  %1553 = vmatpush.bf16.msrb.mxu2 %v4190_v29  ;;  %v4177_v36 = vld [vmem:[#allocation16 + $0xb0] sm:$0xf] }
 0x1cc   :  { %v713_v34 = vmul.f32 %v6460_v33, %v672_v32 }
 0x1ce   :  { %v754_v37 = vadd.f32 %v6464_v35, %v713_v34  ;;  %v4250_v34 = vor.u32 %v5433_v30, %v4249_v27 }
 0x1cf   :  { %v621_v38 = vpop.f32.mrf.mxu0 }
 0x1d0   :  { %v622_v39 = vadd.f32 %v6454_v28, %v621_v38  ;;  %v791_v40 = vpack.c.bf16 %v754_v37, %v754_v37  ;;  %v5447_v37 = vld [vmem:[#allocation16 + $0xb4] sm:$0xf0]  ;;  %v5446_v38 = vld [vmem:[#allocation16 + $0xb4] sm:$0xf]  ;;  %1646 = vmatpush.bf16.msrb.mxu3 %v4250_v34 }
 0x1d1   :  { %v5471_v34 = vld [vmem:[#allocation16 + $0x174] sm:$0xf0] }
 0x1d2   :  { %v673_v42 = vmax.f32 %v622_v39, 0.0  ;;  %v860_v43 = vunpack.c.l.b16 %v791_v40  ;;  %v4178_v39 = vor.u32 %v5447_v37, %v4177_v36  ;;  %v4179_v40 = vld [vmem:[#allocation16 + $0xb8] sm:$0xf0]  ;;  %v5470_v36 = vld [vmem:[#allocation16 + $0x174] sm:$0xf] }
 0x1d4   :  { %v714_v44 = vmul.f32 %v6460_v33, %v673_v42  ;;  %v873_v45 = vpack.c.b16 %v860_v43, %v859_v41  ;;  %v4241_v41 = vld [vmem:[#allocation16 + $0x30] sm:$0xf]  ;;  %v5431_v42 = vld [vmem:[#allocation16 + $0x34] sm:$0xf0]  ;;  %1541 = vmatpush.bf16.msrb.mxu1 %v4178_v39 }
 0x1d6   :  { %963 = vmatmul.bf16.gmra.mxu1 %v873_v45  ;;  %v755_v57 = vadd.f32 %v6464_v35, %v714_v44  ;;  %v4182_v44 = vor.u32 %v5446_v38, %v4179_v40  ;;  %v4242_v45 = vor.u32 %v5431_v42, %v4241_v41  ;;  %v4339_v38 = vld [vmem:[#allocation16 + $0x178] sm:$0xf0]  ;;  %v5436_v40 = vld [vmem:[#allocation16 + $0x64] sm:$0xf]  ;;  %v4267_v41 = vld [vmem:[#allocation16 + $0x68] sm:$0xf0] }
 0x1d7   :  { %v623_v53 = vpop.f32.mrf.mxu0  ;;  %v4342_v39 = vor.u32 %v5470_v36, %v4339_v38 }
 0x1d8   :  { %v624_v56 = vadd.f32 %v6454_v28, %v623_v53  ;;  %v792_v4 = vpack.c.bf16 %v755_v57, %v755_v57  ;;  %1554 = vmatpush.bf16.msrb.mxu2 %v4182_v44  ;;  %1647 = vmatpush.bf16.msrb.mxu3 %v4242_v45  ;;  %v4171_v53 = vld [vmem:[#allocation16 + $0xa8] sm:$0xf0]  ;;  %v4270_v44 = vor.u32 %v5436_v40, %v4267_v41  ;;  %v4329_v45 = vld [vmem:[#allocation16 + $0x160] sm:$0xf]  ;;  %v5460_v40 = vld [vmem:[#allocation16 + $0x124] sm:$0xf] }
 0x1d9   :  { %v4174_v55 = vor.u32 %v5444_v50, %v4171_v53  ;;  %1542 = vmatpush.bf16.msrb.mxu1 %v4170_v52  ;;  %v4331_v50 = vld [vmem:[#allocation16 + $0x168] sm:$0xf0]  ;;  %v5434_v53 = vld [vmem:[#allocation16 + $0x54] sm:$0xf] }
 0x1da   :  { %v674_v61 = vmax.f32 %v624_v56, 0.0  ;;  %v861_v19 = vunpack.c.l.b16 %v792_v4  ;;  %v5429_v56 = vld [vmem:[#allocation16 + $0x24] sm:$0xf0]  ;;  %v4162_v4 = vor.u32 %v5443_v0, %v4161_v62  ;;  %v5466_v62 = vld [vmem:[#allocation16 + $0x154] sm:$0xf]  ;;  %v6614_v0 = vpop.f32.mrf.mxu3 }
 0x1db   :  { %v4234_v59 = vor.u32 %v5429_v56, %v4233_v54  ;;  %v6611_v54 = vpop.f32.mrf.mxu2  ;;  %v4259_v56 = vld [vmem:[#allocation16 + $0x58] sm:$0xf0]  ;;  %v5818_v41 = vld [vmem:[#allocation5] ss:$0 sm:$0xff] }
 0x1dc   :  { %v715_v3 = vmul.f32 %v6460_v33, %v674_v61  ;;  %v4635_v61 = vld [vmem:[#allocation16 + $0x3c8] sm:$0xf0]  ;;  %1555 = vmatpush.bf16.msrb.mxu2 %v4174_v55 }
 0x1dd   :  { %v4638_v63 = vor.u32 %v5544_v60, %v4635_v61  ;;  %1648 = vmatpush.bf16.msrb.mxu3 %v4234_v59  ;;  %1543 = vmatpush.bf16.msrb.mxu1 %v4162_v4  ;;  %v4262_v60 = vor.u32 %v5434_v53, %v4259_v56  ;;  %v4251_v4 = vld [vmem:[#allocation16 + $0x48] sm:$0xf0]  ;;  %v5458_v53 = vld [vmem:[#allocation16 + $0x114] sm:$0xf] }
 0x1de   :  { %v756_v9 = vadd.f32 %v6464_v35, %v715_v3 }
 0x1df   :  { %v626_v14 = vpop.f32.mrf.mxu0  ;;  %2413 = vmatpush.bf16.msrb.mxu0 %v4638_v63  ;;  %v4323_v63 = vld [vmem:[#allocation16 + $0x158] sm:$0xf0] }
 0x1e0   :  { %v627_v17 = vadd.f32 %v6454_v28, %v626_v14  ;;  %v793_v18 = vpack.c.bf16 %v756_v9, %v756_v9  ;;  %v4226_v9 = vor.u32 %v5427_v7, %v4225_v6  ;;  %1556 = vmatpush.bf16.msrb.mxu2 %v4166_v5  ;;  %v4153_v14 = vld [vmem:[#allocation16 + $0x80] sm:$0xf]  ;;  %v4326_v1 = vor.u32 %v5466_v62, %v4323_v63  ;;  %v5424_v62 = vld [vmem:[#allocation16 + $0x4] sm:$0xf]  ;;  %v4219_v63 = vld [vmem:[#allocation16 + $0x8] sm:$0xf0] }
 0x1e1   :  { %v4313_v5 = vld [vmem:[#allocation16 + $0x140] sm:$0xf] }
 0x1e2   :  { %v675_v23 = vmax.f32 %v627_v17, 0.0  ;;  %v862_v24 = vunpack.c.l.b16 %v793_v18  ;;  %1649 = vmatpush.bf16.msrb.mxu3 %v4226_v9  ;;  %v5465_v9 = vld [vmem:[#allocation16 + $0x144] sm:$0xf0]  ;;  %v6621_v36 = vpop.f32.mrf.mxu3 }
 0x1e4   :  { %v716_v31 = vmul.f32 %v6460_v33, %v675_v23  ;;  %v874_v32 = vpack.c.b16 %v862_v24, %v861_v19  ;;  %v4154_v19 = vor.u32 %v5441_v15, %v4153_v14  ;;  %v4158_v23 = vor.u32 %v5440_v16, %v4155_v20  ;;  %v5425_v24 = vld [vmem:[#allocation16 + $0x4] sm:$0xf0] }
 0x1e5   :  { %v4218_v30 = vor.u32 %v5425_v24, %v4217_v21  ;;  %v4314_v15 = vor.u32 %v5465_v9, %v4313_v5  ;;  %v4305_v21 = vld [vmem:[#allocation16 + $0x130] sm:$0xf]  ;;  %v5462_v24 = vld [vmem:[#allocation16 + $0x134] sm:$0xf]  ;;  %v5456_v5 = vld [vmem:[#allocation16 + $0x104] sm:$0xf] }
 0x1e6   :  { %968 = vmatmul.bf16.gmra.mxu1 %v874_v32  ;;  %v757_v47 = vadd.f32 %v6464_v35, %v716_v31  ;;  %v4278_v31 = vor.u32 %v5438_v25, %v4275_v26  ;;  %v4337_v32 = vld [vmem:[#allocation16 + $0x170] sm:$0xf]  ;;  %1557 = vmatpush.bf16.msrb.mxu2 %v4158_v23  ;;  %v5463_v23 = vld [vmem:[#allocation16 + $0x134] sm:$0xf0] }
 0x1e7   :  { %v628_v43 = vpop.f32.mrf.mxu0  ;;  %1544 = vmatpush.bf16.msrb.mxu1 %v4154_v19  ;;  %v4338_v37 = vor.u32 %v5471_v34, %v4337_v32  ;;  %1650 = vmatpush.bf16.msrb.mxu3 %v4218_v30  ;;  %v4243_v19 = vld [vmem:[#allocation16 + $0x38] sm:$0xf0]  ;;  %v4235_v32 = vld [vmem:[#allocation16 + $0x28] sm:$0xf0]  ;;  %v4297_v34 = vld [vmem:[#allocation16 + $0x120] sm:$0xf] }
 0x1e8   :  { %v629_v46 = vadd.f32 %v6454_v28, %v628_v43  ;;  %v794_v58 = vpack.c.bf16 %v757_v47, %v757_v47  ;;  %v5468_v47 = vld [vmem:[#allocation16 + $0x164] sm:$0xf] }
 0x1ea   :  { %v676_v51 = vmax.f32 %v629_v46, 0.0  ;;  %v863_v12 = vunpack.c.l.b16 %v794_v58  ;;  %1767 = vmatpush.bf16.msra.mxu2 %v4338_v37  ;;  %v5469_v46 = vld [vmem:[#allocation16 + $0x164] sm:$0xf0]  ;;  %v5467_v58 = vld [vmem:[#allocation16 + $0x154] sm:$0xf0] }
 0x1eb   :  { %1656 = vmatpush.bf16.msra.mxu1 %v4278_v31  ;;  %1780 = vmatpush.bf16.msra.mxu3 %v4342_v39  ;;  %v4330_v49 = vor.u32 %v5469_v46, %v4329_v45  ;;  %v5428_v31 = vld [vmem:[#allocation16 + $0x24] sm:$0xf]  ;;  %v5461_v39 = vld [vmem:[#allocation16 + $0x124] sm:$0xf0] }
 0x1ec   :  { %v717_v57 = vmul.f32 %v6460_v33, %v676_v51  ;;  %v4334_v51 = vor.u32 %v5468_v47, %v4331_v50  ;;  %v4238_v38 = vor.u32 %v5428_v31, %v4235_v32  ;;  %v4298_v45 = vor.u32 %v5461_v39, %v4297_v34  ;;  %v5538_v32 = vld [vmem:[#allocation16 + $0x394] sm:$0xf]  ;;  %v4611_v34 = vld [vmem:[#allocation16 + $0x398] sm:$0xf0] }
 0x1ee   :  { %v758_v3 = vadd.f32 %v6464_v35, %v717_v57  ;;  %1768 = vmatpush.bf16.msra.mxu2 %v4330_v49  ;;  %v4321_v57 = vld [vmem:[#allocation16 + $0x150] sm:$0xf]  ;;  %v4227_v49 = vld [vmem:[#allocation16 + $0x18] sm:$0xf0] }
 0x1ef   :  { %v631_v8 = vpop.f32.mrf.mxu0  ;;  %1657 = vmatpush.bf16.msra.mxu1 %v4270_v44  ;;  %1781 = vmatpush.bf16.msra.mxu3 %v4334_v51  ;;  %v4322_v61 = vor.u32 %v5467_v58, %v4321_v57  ;;  %v4289_v51 = vld [vmem:[#allocation16 + $0x110] sm:$0xf] }
 0x1f0   :  { %v632_v10 = vadd.f32 %v6454_v28, %v631_v8  ;;  %v795_v11 = vpack.c.bf16 %v758_v3, %v758_v3  ;;  %v5432_v3 = vld [vmem:[#allocation16 + $0x44] sm:$0xf] }
 0x1f1   :  { %v4254_v8 = vor.u32 %v5432_v3, %v4251_v4  ;;  %v4222_v3 = vor.u32 %v5424_v62, %v4219_v63  ;;  %v5457_v4 = vld [vmem:[#allocation16 + $0x104] sm:$0xf0]  ;;  %v5486_v62 = vld [vmem:[#allocation16 + $0x1f4] sm:$0xf] }
 0x1f2   :  { %v677_v17 = vmax.f32 %v632_v10, 0.0  ;;  %v864_v18 = vunpack.c.l.b16 %v795_v11  ;;  %1769 = vmatpush.bf16.msra.mxu2 %v4322_v61  ;;  %v5464_v10 = vld [vmem:[#allocation16 + $0x144] sm:$0xf]  ;;  %v4315_v11 = vld [vmem:[#allocation16 + $0x148] sm:$0xf0] }
 0x1f3   :  { %1658 = vmatpush.bf16.msra.mxu1 %v4262_v60  ;;  %1782 = vmatpush.bf16.msra.mxu3 %v4326_v1  ;;  %v4318_v16 = vor.u32 %v5464_v10, %v4315_v11  ;;  %v4281_v1 = vld [vmem:[#allocation16 + $0x100] sm:$0xf]  ;;  %v6625_v11 = vpop.f32.mrf.mxu3  ;;  %v5578_v63 = vld [vmem:[#allocation16 + $0x4d4] sm:$0xf] }
 0x1f4   :  { %v718_v27 = vmul.f32 %v6460_v33, %v677_v17  ;;  %v875_v29 = vpack.c.b16 %v864_v18, %v863_v12  ;;  %v4282_v9 = vor.u32 %v5457_v4, %v4281_v1  ;;  %v4771_v1 = vld [vmem:[#allocation16 + $0x4d8] sm:$0xf0]  ;;  %v4465_v4 = vld [vmem:[#allocation16 + $0x270] sm:$0xf] }
 0x1f6   :  { %973 = vmatmul.bf16.gmra.mxu1 %v875_v29  ;;  %v759_v43 = vadd.f32 %v6464_v35, %v718_v27  ;;  %1770 = vmatpush.bf16.msra.mxu2 %v4314_v15  ;;  %v4306_v27 = vor.u32 %v5463_v23, %v4305_v21  ;;  %v6619_v29 = vpop.f32.mrf.mxu2 }
 0x1f7   :  { %v633_v42 = vpop.f32.mrf.mxu0  ;;  %1659 = vmatpush.bf16.msra.mxu1 %v4254_v8  ;;  %1783 = vmatpush.bf16.msra.mxu3 %v4318_v16 }
 0x1f8   :  { %v634_v48 = vadd.f32 %v6454_v28, %v633_v42  ;;  %v796_v55 = vpack.c.bf16 %v759_v43, %v759_v43  ;;  %v5819_v43 = vld [vmem:[#allocation8] ss:$0 sm:$0xff] }
 0x1fa   :  { %v678_v52 = vmax.f32 %v634_v48, 0.0  ;;  %v865_v7 = vunpack.c.l.b16 %v796_v55  ;;  %1771 = vmatpush.bf16.msra.mxu2 %v4306_v27  ;;  %v5426_v48 = vld [vmem:[#allocation16 + $0x14] sm:$0xf] }
 0x1fb   :  { %v4230_v50 = vor.u32 %v5426_v48, %v4227_v49  ;;  %v5820_v55 = vld [vmem:[#allocation7] ss:$0 sm:$0xff] }
 0x1fc   :  { %v719_v59 = vmul.f32 %v6460_v33, %v678_v52  ;;  %v5459_v52 = vld [vmem:[#allocation16 + $0x114] sm:$0xf0] }
 0x1fd   :  { %v4290_v58 = vor.u32 %v5459_v52, %v4289_v51 }
 0x1fe   :  { %v760_v2 = vadd.f32 %v6464_v35, %v719_v59  ;;  %v5430_v35 = vld [vmem:[#allocation16 + $0x34] sm:$0xf]  ;;  %1772 = vmatpush.bf16.msra.mxu2 %v4298_v45  ;;  %v4291_v59 = vld [vmem:[#allocation16 + $0x118] sm:$0xf0] }
 0x1ff   :  { %v636_v6 = vpop.f32.mrf.mxu0  ;;  %v4246_v20 = vor.u32 %v5430_v35, %v4243_v19  ;;  %v4294_v60 = vor.u32 %v5458_v53, %v4291_v59  ;;  %v5542_v35 = vld [vmem:[#allocation16 + $0x3b4] sm:$0xf]  ;;  %v4627_v19 = vld [vmem:[#allocation16 + $0x3b8] sm:$0xf0]  ;;  %v4401_v59 = vld [vmem:[#allocation16 + $0x1f0] sm:$0xf] }
 0x200   :  { %v637_v12 = vadd.f32 %v6454_v28, %v636_v6  ;;  %v797_v14 = vpack.c.bf16 %v760_v2, %v760_v2  ;;  %v4307_v28 = vld [vmem:[#allocation16 + $0x138] sm:$0xf0]  ;;  %v6623_v2 = vpop.f32.mrf.mxu2  ;;  %v4283_v6 = vld [vmem:[#allocation16 + $0x108] sm:$0xf0] }
 0x201   :  { %v4310_v30 = vor.u32 %v5462_v24, %v4307_v28  ;;  %1660 = vmatpush.bf16.msra.mxu1 %v4246_v20  ;;  %v4286_v10 = vor.u32 %v5456_v5, %v4283_v6  ;;  %v4630_v20 = vor.u32 %v5542_v35, %v4627_v19  ;;  %v6634_v24 = vpop.f32.mrf.mxu3  ;;  %v5503_v5 = vld [vmem:[#allocation16 + $0x274] sm:$0xf0]  ;;  %v4774_v6 = vor.u32 %v5578_v63, %v4771_v1  ;;  %v4395_v35 = vld [vmem:[#allocation16 + $0x1e8] sm:$0xf0]  ;;  %v4457_v19 = vld [vmem:[#allocation16 + $0x260] sm:$0xf] }
 0x202   :  { %v679_v17 = vmax.f32 %v637_v12, 0.0  ;;  %v866_v18 = vunpack.c.l.b16 %v797_v14  ;;  %1773 = vmatpush.bf16.msra.mxu2 %v4290_v58  ;;  %v4747_v63 = vld [vmem:[#allocation16 + $0x4a8] sm:$0xf0] }
 0x203   :  { %1784 = vmatpush.bf16.msra.mxu3 %v4310_v30  ;;  %2414 = vmatpush.bf16.msrb.mxu0 %v4630_v20  ;;  %v6637_v30 = vld [vmem:[#allocation13] ss:$0 sm:$0xff]  ;;  %v5501_v20 = vld [vmem:[#allocation16 + $0x264] sm:$0xf0] }
 0x204   :  { %v720_v25 = vmul.f32 %v6460_v33, %v679_v17  ;;  %v876_v26 = vpack.c.b16 %v866_v18, %v865_v7  ;;  %v4299_v33 = vld [vmem:[#allocation16 + $0x128] sm:$0xf0]  ;;  %v6629_v18 = vld [vmem:[#allocation11] ss:$0 sm:$0xff] }
 0x205   :  { %v4302_v46 = vor.u32 %v5460_v40, %v4299_v33  ;;  %1661 = vmatpush.bf16.msra.mxu1 %v4238_v38  ;;  %v4614_v38 = vor.u32 %v5538_v32, %v4611_v34  ;;  %v6642_v40 = vld [vmem:[#allocation14] ss:$0 sm:$0xff]  ;;  %v4385_v32 = vld [vmem:[#allocation16 + $0x1d0] sm:$0xf]  ;;  %v5483_v34 = vld [vmem:[#allocation16 + $0x1d4] sm:$0xf0] }
 0x206   :  { %978 = vmatmul.bf16.gmra.mxu1 %v876_v26  ;;  %v761_v44 = vadd.f32 %v5819_v43, %v720_v25  ;;  %1774 = vmatpush.bf16.msra.mxu2 %v4282_v9  ;;  %v5540_v26 = vld [vmem:[#allocation16 + $0x3a4] sm:$0xf] }
 0x207   :  { %v638_v37 = vpop.f32.mrf.mxu0  ;;  %1785 = vmatpush.bf16.msra.mxu3 %v4302_v46  ;;  %v5582_v46 = vld [vmem:[#allocation16 + $0x4f4] sm:$0xf] }
 0x208   :  { %v639_v42 = vadd.f32 %v5818_v41, %v638_v37  ;;  %v798_v57 = vpack.c.bf16 %v761_v44, %v761_v44  ;;  %v6631_v21 = vpop.f32.mrf.mxu2 }
 0x209   :  { %1662 = vmatpush.bf16.msra.mxu1 %v4230_v50  ;;  %v6648_v48 = vpop.f32.mrf.mxu3 }
 0x20a   :  { %v680_v47 = vmax.f32 %v639_v42, 0.0  ;;  %v867_v8 = vunpack.c.l.b16 %v798_v57  ;;  %v5536_v42 = vld [vmem:[#allocation16 + $0x384] sm:$0xf] }
 0x20b   :  { %1786 = vmatpush.bf16.msra.mxu3 %v4294_v60  ;;  %v5487_v60 = vld [vmem:[#allocation16 + $0x1f4] sm:$0xf0] }
 0x20c   :  { %v721_v56 = vmul.f32 %v5820_v55, %v680_v47  ;;  %v4787_v47 = vld [vmem:[#allocation16 + $0x4f8] sm:$0xf0]  ;;  %v5580_v55 = vld [vmem:[#allocation16 + $0x4e4] sm:$0xf] }
 0x20d   :  { %1663 = vmatpush.bf16.msra.mxu1 %v4222_v3  ;;  %v4790_v49 = vor.u32 %v5582_v46, %v4787_v47  ;;  %v4755_v46 = vld [vmem:[#allocation16 + $0x4b8] sm:$0xf0] }
 0x20e   :  { %v762_v61 = vadd.f32 %v5819_v43, %v721_v56  ;;  %v4603_v43 = vld [vmem:[#allocation16 + $0x388] sm:$0xf0] }
 0x20f   :  { %1787 = vmatpush.bf16.msra.mxu3 %v4286_v10  ;;  %v4606_v45 = vor.u32 %v5536_v42, %v4603_v43  ;;  %v4779_v56 = vld [vmem:[#allocation16 + $0x4e8] sm:$0xf0]  ;;  %v4402_v10 = vor.u32 %v5487_v60, %v4401_v59  ;;  %v5482_v42 = vld [vmem:[#allocation16 + $0x1d4] sm:$0xf]  ;;  %v4387_v43 = vld [vmem:[#allocation16 + $0x1d8] sm:$0xf0] }
 0x210   :  { %v799_v7 = vpack.c.bf16 %v762_v61, %v762_v61  ;;  %v6644_v41 = vpop.f32.mrf.mxu2  ;;  %v4782_v57 = vor.u32 %v5580_v55, %v4779_v56  ;;  %v5481_v55 = vld [vmem:[#allocation16 + $0x1c4] sm:$0xf0]  ;;  %v4379_v59 = vld [vmem:[#allocation16 + $0x1c8] sm:$0xf0]  ;;  %v4441_v60 = vld [vmem:[#allocation16 + $0x240] sm:$0xf] }
 0x211   :  { %v6658_v9 = vpop.f32.mrf.mxu3 }
 0x212   :  { %v868_v12 = vunpack.c.l.b16 %v799_v7 }
 0x213   :  { %v944_v14 = vpop.f32.mrf.mxu1 }
 0x214   :  { %v1101_v15 = vadd.f32 %v6604_v13, %v944_v14  ;;  %v877_v16 = vpack.c.b16 %v868_v12, %v867_v8  ;;  %v4619_v13 = vld [vmem:[#allocation16 + $0x3a8] sm:$0xf0]  ;;  %v4393_v12 = vld [vmem:[#allocation16 + $0x1e0] sm:$0xf]  ;;  %v5485_v14 = vld [vmem:[#allocation16 + $0x1e4] sm:$0xf0] }
 0x215   :  { %v4622_v28 = vor.u32 %v5540_v26, %v4619_v13  ;;  %v5576_v26 = vld [vmem:[#allocation16 + $0x4c4] sm:$0xf] }
 0x216   :  { %v1284_v17 = vadd.f32 %v6606_v22, %v1101_v15  ;;  %983 = vmatmul.bf16.gmra.mxu1 %v877_v16  ;;  %v5484_v15 = vld [vmem:[#allocation16 + $0x1e4] sm:$0xf] }
 0x217   :  { %2415 = vmatpush.bf16.msrb.mxu0 %v4622_v28 }
 0x218   :  { %v1306_v23 = vadd.f32 %v6629_v18, %v1284_v17  ;;  %v6655_v3 = vpop.f32.mrf.mxu2  ;;  %v4466_v17 = vor.u32 %v5503_v5, %v4465_v4 }
 0x21a   :  { %v1324_v22 = vmax.f32 %v1306_v23, 0.0 }
 0x21b   :  { %v946_v25 = vpop.f32.mrf.mxu1  ;;  %2416 = vmatpush.bf16.msrb.mxu0 %v4614_v38  ;;  %v5395_v38 = vld [vmem:[%s6906_s23 + $0x98] sm:$0xff] }
 0x21c   :  { %v1103_v27 = vadd.f32 %v6611_v54, %v946_v25  ;;  %v1346_v39 = vmul.f32 %v6637_v30, %v1324_v22  ;;  %v4394_v22 = vor.u32 %v5485_v14, %v4393_v12  ;;  %4054 = vmatmul.msk.bf16.gmra.mxu0 %vm477_vm0, %v5395_v38  ;;  %v5478_v14 = vld [vmem:[#allocation16 + $0x1b4] sm:$0xf]  ;;  %v5493_v38 = vld [vmem:[#allocation16 + $0x224] sm:$0xf0] }
 0x21e   :  { %v1285_v31 = vadd.f32 %v6614_v0, %v1103_v27  ;;  %v1368_v50 = vadd.f32 %v6642_v40, %v1346_v39  ;;  %v4763_v27 = vld [vmem:[#allocation16 + $0x4c8] sm:$0xf0] }
 0x21f   :  { %2417 = vmatpush.bf16.msrb.mxu0 %v4606_v45  ;;  %v5574_v45 = vld [vmem:[#allocation16 + $0x4b4] sm:$0xf] }
 0x220   :  { %v1307_v37 = vadd.f32 %v6629_v18, %v1285_v31  ;;  %v4398_v31 = vor.u32 %v5484_v15, %v4395_v35  ;;  %v4371_v15 = vld [vmem:[#allocation16 + $0x1b8] sm:$0xf0] }
 0x221   :  { %v4739_v35 = vld [vmem:[#allocation16 + $0x498] sm:$0xf0] }
 0x222   :  { %v1325_v33 = vmax.f32 %v1307_v37, 0.0  ;;  %v4766_v37 = vor.u32 %v5576_v26, %v4763_v27 }
 0x223   :  { %v949_v54 = vpop.f32.mrf.mxu1  ;;  %2662 = vmatpush.bf16.msra.mxu0 %v4790_v49 }
 0x224   :  { %v1347_v44 = vmul.f32 %v6637_v30, %v1325_v33  ;;  %v1106_v0 = vadd.f32 %v6619_v29, %v949_v54  ;;  %v4458_v54 = vor.u32 %v5501_v20, %v4457_v19 }
 0x226   :  { %v1369_v51 = vadd.f32 %v6642_v40, %v1347_v44  ;;  %v1286_v52 = vadd.f32 %v6621_v36, %v1106_v0  ;;  %v4403_v36 = vld [vmem:[#allocation16 + $0x1f8] sm:$0xf0]  ;;  %v4449_v44 = vld [vmem:[#allocation16 + $0x250] sm:$0xf]  ;;  %v5499_v0 = vld [vmem:[#allocation16 + $0x254] sm:$0xf0] }
 0x227   :  { %2663 = vmatpush.bf16.msra.mxu0 %v4782_v57  ;;  %v4406_v16 = vor.u32 %v5486_v62, %v4403_v36  ;;  %v4390_v57 = vor.u32 %v5482_v42, %v4387_v43  ;;  %v5572_v62 = vld [vmem:[#allocation16 + $0x4a4] sm:$0xf] }
 0x228   :  { %v5733_v53 = vpack.c.bf16 %v1369_v51, %v1368_v50  ;;  %v1308_v29 = vadd.f32 %v6629_v18, %v1286_v52  ;;  %v4758_v51 = vor.u32 %v5574_v45, %v4755_v46  ;;  %v6674_v52 = vpop.f32.mrf.mxu2  ;;  %v4750_v36 = vor.u32 %v5572_v62, %v4747_v63  ;;  %v5472_v63 = vld [vmem:[#allocation16 + $0x184] sm:$0xf] }
 0x22a   :  { %5734 = vst [vmem:[#allocation2] sm:$0xff] %v5733_v53   ;;  %v1326_v7 = vmax.f32 %v1308_v29, 0.0  ;;  %v4377_v53 = vld [vmem:[#allocation16 + $0x1c0] sm:$0xf]  ;;  %v4450_v29 = vor.u32 %v5499_v0, %v4449_v44 }
 0x22b   :  { %v951_v58 = vpop.f32.mrf.mxu1  ;;  %2664 = vmatpush.bf16.msra.mxu0 %v4774_v6  ;;  %v4378_v5 = vor.u32 %v5481_v55, %v4377_v53  ;;  %v4369_v6 = vld [vmem:[#allocation16 + $0x1b0] sm:$0xf]  ;;  %v5491_v55 = vld [vmem:[#allocation16 + $0x214] sm:$0xf0] }
 0x22c   :  { %v1108_v61 = vadd.f32 %v6623_v2, %v951_v58  ;;  %v5480_v58 = vld [vmem:[#allocation16 + $0x1c4] sm:$0xf]  ;;  %v4417_v53 = vld [vmem:[#allocation16 + $0x210] sm:$0xf] }
 0x22d   :  { %v4418_v62 = vor.u32 %v5491_v55, %v4417_v53  ;;  %v5496_v55 = vld [vmem:[#allocation16 + $0x244] sm:$0xf] }
 0x22e   :  { %v1287_v8 = vadd.f32 %v6625_v11, %v1108_v61  ;;  %v1348_v11 = vmul.f32 %v6637_v30, %v1326_v7  ;;  %v6676_v61 = vpop.f32.mrf.mxu3  ;;  %v5479_v7 = vld [vmem:[#allocation16 + $0x1b4] sm:$0xf0] }
 0x22f   :  { %2665 = vmatpush.bf16.msra.mxu0 %v4766_v37  ;;  %v4370_v26 = vor.u32 %v5479_v7, %v4369_v6  ;;  %v4467_v6 = vld [vmem:[#allocation16 + $0x278] sm:$0xf0] }
 0x230   :  { %v1309_v2 = vadd.f32 %v6629_v18, %v1287_v8  ;;  %v1370_v47 = vadd.f32 %v6642_v40, %v1348_v11  ;;  %v4361_v11 = vld [vmem:[#allocation16 + $0x1a0] sm:$0xf] }
 0x231   :  { %v1439_v23 = vld [vmem:[#allocation2 + $0x4] sm:$0xf]  ;;  %v6661_v25 = vld [vmem:[#allocation2] sm:$0xf] }
 0x232   :  { %v1327_v13 = vmax.f32 %v1309_v2, 0.0  ;;  %1545 = vmatmul.bf16.vlgmr.msrb.gmra.mxu1 %v1439_v23  ;;  %1558 = vmatmul.bf16.vlgmr.msrb.gmra.mxu2 %v1439_v23  ;;  %v4433_v2 = vld [vmem:[#allocation16 + $0x230] sm:$0xf] }
 0x233   :  { %1651 = vmatmul.bf16.vlgmr.msrb.gmra.mxu3 %v6661_v25  ;;  %1893 = vmatpush.bf16.msrb.mxu1 %v4402_v10  ;;  %v954_v28 = vpop.f32.mrf.mxu1  ;;  %v4382_v10 = vor.u32 %v5480_v58, %v4379_v59  ;;  %v4345_v59 = vld [vmem:[#allocation16 + $0x180] sm:$0xf] }
 0x234   :  { %v1349_v39 = vmul.f32 %v6637_v30, %v1327_v13  ;;  %1906 = vmatpush.bf16.msrb.mxu2 %v4406_v16  ;;  %2019 = vmatpush.bf16.msrb.mxu3 %v4466_v17  ;;  %v1111_v33 = vadd.f32 %v6631_v21, %v954_v28  ;;  %v4386_v21 = vor.u32 %v5483_v34, %v4385_v32  ;;  %v5495_v16 = vld [vmem:[#allocation16 + $0x234] sm:$0xf0]  ;;  %v5570_v17 = vld [vmem:[#allocation16 + $0x494] sm:$0xf]  ;;  %v5477_v13 = vld [vmem:[#allocation16 + $0x1a4] sm:$0xf0]  ;;  %v6682_v34 = vpop.f32.mrf.mxu2 }
 0x235   :  { %2666 = vmatpush.bf16.msra.mxu0 %v4758_v51  ;;  %v4742_v23 = vor.u32 %v5570_v17, %v4739_v35  ;;  %v4434_v28 = vor.u32 %v5495_v16, %v4433_v2  ;;  %v4425_v32 = vld [vmem:[#allocation16 + $0x220] sm:$0xf]  ;;  %v4362_v44 = vor.u32 %v5477_v13, %v4361_v11  ;;  %v5475_v51 = vld [vmem:[#allocation16 + $0x194] sm:$0xf0]  ;;  %v4531_v2 = vld [vmem:[#allocation16 + $0x2f8] sm:$0xf0] }
 0x236   :  { %v1371_v49 = vadd.f32 %v6642_v40, %v1349_v39  ;;  %v1288_v50 = vadd.f32 %v6634_v24, %v1111_v33  ;;  %v5497_v24 = vld [vmem:[#allocation16 + $0x244] sm:$0xf0]  ;;  %v6686_v42 = vpop.f32.mrf.mxu3  ;;  %v4459_v11 = vld [vmem:[#allocation16 + $0x268] sm:$0xf0] }
 0x237   :  { %1894 = vmatpush.bf16.msrb.mxu1 %v4394_v22  ;;  %v4442_v12 = vor.u32 %v5497_v24, %v4441_v60  ;;  %v5476_v22 = vld [vmem:[#allocation16 + $0x1a4] sm:$0xf]  ;;  %v5473_v60 = vld [vmem:[#allocation16 + $0x184] sm:$0xf0] }
 0x238   :  { %v5738_v56 = vpack.c.bf16 %v1371_v49, %v1370_v47  ;;  %1907 = vmatpush.bf16.msrb.mxu2 %v4398_v31  ;;  %2020 = vmatpush.bf16.msrb.mxu3 %v4458_v54  ;;  %v1310_v1 = vadd.f32 %v6629_v18, %v1288_v50  ;;  %v4363_v31 = vld [vmem:[#allocation16 + $0x1a8] sm:$0xf0]  ;;  %v4426_v49 = vor.u32 %v5493_v38, %v4425_v32  ;;  %v4353_v50 = vld [vmem:[#allocation16 + $0x190] sm:$0xf] }
 0x239   :  { %2667 = vmatpush.bf16.msra.mxu0 %v4750_v36  ;;  %v4731_v54 = vld [vmem:[#allocation16 + $0x488] sm:$0xf0]  ;;  %v4366_v0 = vor.u32 %v5476_v22, %v4363_v31  ;;  %v4354_v58 = vor.u32 %v5475_v51, %v4353_v50  ;;  %v4409_v36 = vld [vmem:[#allocation16 + $0x200] sm:$0xf]  ;;  %v5517_v22 = vld [vmem:[#allocation16 + $0x2e4] sm:$0xf0] }
 0x23a   :  { %5775 = vst [vmem:[#allocation2 + $0x8] sm:$0xff] %v5738_v56   ;;  %v1328_v19 = vmax.f32 %v1310_v1, 0.0  ;;  %v4347_v1 = vld [vmem:[#allocation16 + $0x188] sm:$0xf0]  ;;  %v5516_v31 = vld [vmem:[#allocation16 + $0x2e4] sm:$0xf] }
 0x23b   :  { %1895 = vmatpush.bf16.msrb.mxu1 %v4386_v21  ;;  %v956_v4 = vpop.f32.mrf.mxu1  ;;  %v4355_v21 = vld [vmem:[#allocation16 + $0x198] sm:$0xf0]  ;;  %v4350_v17 = vor.u32 %v5472_v63, %v4347_v1  ;;  %v4523_v32 = vld [vmem:[#allocation16 + $0x2e8] sm:$0xf0] }
 0x23c   :  { %1908 = vmatpush.bf16.msrb.mxu2 %v4390_v57  ;;  %2021 = vmatpush.bf16.msrb.mxu3 %v4450_v29  ;;  %v1113_v8 = vadd.f32 %v6644_v41, %v956_v4  ;;  %v4374_v41 = vor.u32 %v5478_v14, %v4371_v15  ;;  %v1350_v39 = vmul.f32 %v6637_v30, %v1328_v19  ;;  %v5489_v4 = vld [vmem:[#allocation16 + $0x204] sm:$0xf0]  ;;  %v5518_v15 = vld [vmem:[#allocation16 + $0x2f4] sm:$0xf] }
 0x23d   :  { %2668 = vmatpush.bf16.msra.mxu0 %v4742_v23  ;;  %v4346_v14 = vor.u32 %v5473_v60, %v4345_v59  ;;  %v4410_v35 = vor.u32 %v5489_v4, %v4409_v36  ;;  %v4443_v59 = vld [vmem:[#allocation16 + $0x248] sm:$0xf0]  ;;  %v4505_v60 = vld [vmem:[#allocation16 + $0x2c0] sm:$0xf]  ;;  %v5494_v4 = vld [vmem:[#allocation16 + $0x234] sm:$0xf] }
 0x23e   :  { %v1289_v20 = vadd.f32 %v6648_v48, %v1113_v8  ;;  %v5568_v48 = vld [vmem:[#allocation16 + $0x484] sm:$0xf]  ;;  %v1372_v56 = vadd.f32 %v6642_v40, %v1350_v39  ;;  %v4529_v8 = vld [vmem:[#allocation16 + $0x2f0] sm:$0xf]  ;;  %v6697_v19 = vpop.f32.mrf.mxu3  ;;  %v4446_v1 = vor.u32 %v5496_v55, %v4443_v59  ;;  %v5610_v55 = vld [vmem:[#allocation16 + $0x5d4] sm:$0xf] }
 0x23f   :  { %1896 = vmatpush.bf16.msrb.mxu1 %v4378_v5  ;;  %v4734_v45 = vor.u32 %v5568_v48, %v4731_v54  ;;  %v5502_v5 = vld [vmem:[#allocation16 + $0x274] sm:$0xf]  ;;  %v4451_v54 = vld [vmem:[#allocation16 + $0x258] sm:$0xf0]  ;;  %v4411_v59 = vld [vmem:[#allocation16 + $0x208] sm:$0xf0] }
 0x240   :  { %v1311_v27 = vadd.f32 %v6629_v18, %v1289_v20  ;;  %1909 = vmatpush.bf16.msrb.mxu2 %v4382_v10  ;;  %2022 = vmatpush.bf16.msrb.mxu3 %v4442_v12  ;;  %v6694_v10 = vpop.f32.mrf.mxu2  ;;  %v4470_v20 = vor.u32 %v5502_v5, %v4467_v6  ;;  %v4435_v5 = vld [vmem:[#allocation16 + $0x238] sm:$0xf0] }
 0x241   :  { %v1669_v37 = vld [vmem:[#allocation2 + $0x8] sm:$0xf]  ;;  %2669 = vmatpush.bf16.msra.mxu0 %v4734_v45  ;;  %v1795_v38 = vld [vmem:[#allocation2 + $0xc] sm:$0xf] }
 0x242   :  { %v1329_v33 = vmax.f32 %v1311_v27, 0.0  ;;  %1664 = vmatmul.bf16.vlgmr.msra.gmra.mxu1 %v6661_v25  ;;  %1775 = vmatmul.bf16.vlgmr.msra.gmra.mxu2 %v1669_v37  ;;  %v5474_v25 = vld [vmem:[#allocation16 + $0x194] sm:$0xf]  ;;  %v5515_v45 = vld [vmem:[#allocation16 + $0x2d4] sm:$0xf0] }
 0x243   :  { %1788 = vmatmul.bf16.vlgmr.msra.gmra.mxu3 %v1669_v37  ;;  %1897 = vmatpush.bf16.msrb.mxu1 %v4370_v26  ;;  %v959_v43 = vpop.f32.mrf.mxu1  ;;  %v5500_v26 = vld [vmem:[#allocation16 + $0x264] sm:$0xf] }
 0x244   :  { %v1351_v46 = vmul.f32 %v6637_v30, %v1329_v33  ;;  %1910 = vmatpush.bf16.msrb.mxu2 %v4374_v41  ;;  %2023 = vmatpush.bf16.msrb.mxu3 %v4434_v28  ;;  %v1116_v47 = vadd.f32 %v6655_v3, %v959_v43  ;;  %v4358_v3 = vor.u32 %v5474_v25, %v4355_v21  ;;  %v4521_v28 = vld [vmem:[#allocation16 + $0x2e0] sm:$0xf] }
 0x245   :  { %v4534_v41 = vor.u32 %v5518_v15, %v4531_v2  ;;  %v4462_v39 = vor.u32 %v5500_v26, %v4459_v11  ;;  %v4522_v33 = vor.u32 %v5517_v22, %v4521_v28  ;;  %v5614_v2 = vld [vmem:[#allocation16 + $0x5f4] sm:$0xf] }
 0x246   :  { %v1373_v57 = vadd.f32 %v6642_v40, %v1351_v46  ;;  %v1290_v29 = vadd.f32 %v6658_v9, %v1116_v47  ;;  %v5519_v9 = vld [vmem:[#allocation16 + $0x2f4] sm:$0xf0]  ;;  %v5514_v47 = vld [vmem:[#allocation16 + $0x2d4] sm:$0xf] }
 0x247   :  { %1898 = vmatpush.bf16.msrb.mxu1 %v4362_v44  ;;  %v4530_v23 = vor.u32 %v5519_v9, %v4529_v8  ;;  %v4526_v44 = vor.u32 %v5516_v31, %v4523_v32  ;;  %v5511_v8 = vld [vmem:[#allocation16 + $0x2b4] sm:$0xf0]  ;;  %v5508_v31 = vld [vmem:[#allocation16 + $0x2a4] sm:$0xf] }
 0x248   :  { %v5743_v24 = vpack.c.bf16 %v1373_v57, %v1372_v56  ;;  %1911 = vmatpush.bf16.msrb.mxu2 %v4366_v0  ;;  %2024 = vmatpush.bf16.msrb.mxu3 %v4426_v49  ;;  %v1312_v7 = vadd.f32 %v6629_v18, %v1290_v29  ;;  %v4513_v0 = vld [vmem:[#allocation16 + $0x2d0] sm:$0xf]  ;;  %v4515_v49 = vld [vmem:[#allocation16 + $0x2d8] sm:$0xf0]  ;;  %v6707_v25 = vpop.f32.mrf.mxu2 }
 0x249   :  { %v4514_v53 = vor.u32 %v5515_v45, %v4513_v0  ;;  %v4481_v45 = vld [vmem:[#allocation16 + $0x290] sm:$0xf] }
 0x24a   :  { %5776 = vst [vmem:[#allocation2 + $0x10] sm:$0xff] %v5743_v24   ;;  %v1330_v13 = vmax.f32 %v1312_v7, 0.0  ;;  %v5513_v24 = vld [vmem:[#allocation16 + $0x2c4] sm:$0xf0]  ;;  %v4497_v7 = vld [vmem:[#allocation16 + $0x2b0] sm:$0xf] }
 0x24b   :  { %1899 = vmatpush.bf16.msrb.mxu1 %v4354_v58  ;;  %v961_v12 = vpop.f32.mrf.mxu1  ;;  %v4518_v58 = vor.u32 %v5514_v47, %v4515_v49  ;;  %v4506_v36 = vor.u32 %v5513_v24, %v4505_v60  ;;  %v4473_v60 = vld [vmem:[#allocation16 + $0x280] sm:$0xf] }
 0x24c   :  { %1912 = vmatpush.bf16.msrb.mxu2 %v4358_v3  ;;  %2025 = vmatpush.bf16.msrb.mxu3 %v4418_v62  ;;  %v1118_v16 = vadd.f32 %v6674_v52, %v961_v12  ;;  %v5498_v52 = vld [vmem:[#allocation16 + $0x254] sm:$0xf]  ;;  %v6712_v3 = vpop.f32.mrf.mxu3  ;;  %v4507_v62 = vld [vmem:[#allocation16 + $0x2c8] sm:$0xf0] }
 0x24d   :  { %v4454_v21 = vor.u32 %v5498_v52, %v4451_v54  ;;  %v5510_v12 = vld [vmem:[#allocation16 + $0x2b4] sm:$0xf]  ;;  %v4907_v52 = vld [vmem:[#allocation16 + $0x5e8] sm:$0xf0] }
 0x24e   :  { %v1291_v27 = vadd.f32 %v6676_v61, %v1118_v16  ;;  %v1352_v61 = vmul.f32 %v6637_v30, %v1330_v13  ;;  %v4915_v16 = vld [vmem:[#allocation16 + $0x5f8] sm:$0xf0]  ;;  %v5490_v54 = vld [vmem:[#allocation16 + $0x214] sm:$0xf] }
 0x24f   :  { %1900 = vmatpush.bf16.msrb.mxu1 %v4346_v14  ;;  %v4499_v14 = vld [vmem:[#allocation16 + $0x2b8] sm:$0xf0]  ;;  %v4918_v22 = vor.u32 %v5614_v2, %v4915_v16 }
 0x250   :  { %v1313_v37 = vadd.f32 %v6629_v18, %v1291_v27  ;;  %1913 = vmatpush.bf16.msrb.mxu2 %v4350_v17  ;;  %2026 = vmatpush.bf16.msrb.mxu3 %v4410_v35  ;;  %v1374_v56 = vadd.f32 %v6642_v40, %v1352_v61  ;;  %v4438_v17 = vor.u32 %v5494_v4, %v4435_v5  ;;  %v4489_v27 = vld [vmem:[#allocation16 + $0x2a0] sm:$0xf]  ;;  %v6717_v28 = vpop.f32.mrf.mxu2  ;;  %v4419_v61 = vld [vmem:[#allocation16 + $0x218] sm:$0xf0]  ;;  %v4593_v5 = vld [vmem:[#allocation16 + $0x370] sm:$0xf] }
 0x251   :  { %v6701_v48 = vld [vmem:[#allocation2 + $0x10] sm:$0xf]  ;;  %v4498_v35 = vor.u32 %v5511_v8, %v4497_v7  ;;  %v4502_v13 = vor.u32 %v5510_v12, %v4499_v14  ;;  %v5551_v12 = vld [vmem:[#allocation16 + $0x3f4] sm:$0xf0] }
 0x252   :  { %v1331_v43 = vmax.f32 %v1313_v37, 0.0  ;;  %1901 = vmatmul.bf16.vlgmr.msrb.gmra.mxu1 %v1795_v38  ;;  %v5612_v37 = vld [vmem:[#allocation16 + $0x5e4] sm:$0xf]  ;;  %v4595_v8 = vld [vmem:[#allocation16 + $0x378] sm:$0xf0] }
 0x253   :  { %2032 = vmatpush.bf16.msra.mxu1 %v4470_v20  ;;  %1914 = vmatmul.bf16.vlgmr.msrb.gmra.mxu2 %v1795_v38  ;;  %v964_v46 = vpop.f32.mrf.mxu1  ;;  %v5492_v20 = vld [vmem:[#allocation16 + $0x224] sm:$0xf]  ;;  %v4910_v49 = vor.u32 %v5612_v37, %v4907_v52  ;;  %v5549_v37 = vld [vmem:[#allocation16 + $0x3e4] sm:$0xf0]  ;;  %v2047_v52 = vld [vmem:[#allocation2 + $0x14] sm:$0xf] }
 0x254   :  { %2145 = vmatpush.bf16.msra.mxu2 %v4530_v23  ;;  %2158 = vmatpush.bf16.msra.mxu3 %v4534_v41  ;;  %v1353_v50 = vmul.f32 %v6637_v30, %v1331_v43  ;;  %v1121_v51 = vadd.f32 %v6682_v34, %v964_v46  ;;  %v5512_v34 = vld [vmem:[#allocation16 + $0x2c4] sm:$0xf]  ;;  %v4427_v23 = vld [vmem:[#allocation16 + $0x228] sm:$0xf0]  ;;  %v5509_v41 = vld [vmem:[#allocation16 + $0x2a4] sm:$0xf0]  ;;  %v6720_v38 = vpop.f32.mrf.mxu3 }
 0x255   :  { %2027 = vmatmul.bf16.vlgmr.msrb.gmra.mxu3 %v6701_v48  ;;  %v5507_v46 = vld [vmem:[#allocation16 + $0x294] sm:$0xf0] }
 0x256   :  { %v1375_v57 = vadd.f32 %v6642_v40, %v1353_v50  ;;  %v1292_v29 = vadd.f32 %v6686_v42, %v1121_v51  ;;  %v4510_v42 = vor.u32 %v5512_v34, %v4507_v62  ;;  %v5506_v50 = vld [vmem:[#allocation16 + $0x294] sm:$0xf]  ;;  %v4483_v51 = vld [vmem:[#allocation16 + $0x298] sm:$0xf0] }
 0x257   :  { %2033 = vmatpush.bf16.msra.mxu1 %v4462_v39 }
 0x258   :  { %2146 = vmatpush.bf16.msra.mxu2 %v4522_v33  ;;  %2159 = vmatpush.bf16.msra.mxu3 %v4526_v44  ;;  %v5748_v63 = vpack.c.bf16 %v1375_v57, %v1374_v56  ;;  %v1314_v6 = vadd.f32 %v6629_v18, %v1292_v29  ;;  %v4490_v33 = vor.u32 %v5509_v41, %v4489_v27  ;;  %v4899_v56 = vld [vmem:[#allocation16 + $0x5d8] sm:$0xf0]  ;;  %v6731_v14 = vpop.f32.mrf.mxu2  ;;  %v4585_v27 = vld [vmem:[#allocation16 + $0x360] sm:$0xf]  ;;  %v5533_v41 = vld [vmem:[#allocation16 + $0x364] sm:$0xf0] }
 0x259   :  { %v4422_v57 = vor.u32 %v5490_v54, %v4419_v61  ;;  %v4482_v29 = vor.u32 %v5507_v46, %v4481_v45  ;;  %v4902_v4 = vor.u32 %v5610_v55, %v4899_v56  ;;  %v4586_v61 = vor.u32 %v5533_v41, %v4585_v27  ;;  %v5531_v46 = vld [vmem:[#allocation16 + $0x354] sm:$0xf0]  ;;  %v5600_v41 = vld [vmem:[#allocation16 + $0x584] sm:$0xf] }
 0x25a   :  { %5777 = vst [vmem:[#allocation2 + $0x18] sm:$0xff] %v5748_v63   ;;  %v1332_v26 = vmax.f32 %v1314_v6, 0.0  ;;  %v4486_v63 = vor.u32 %v5506_v50, %v4483_v51  ;;  %v5535_v6 = vld [vmem:[#allocation16 + $0x374] sm:$0xf0]  ;;  %v4579_v50 = vld [vmem:[#allocation16 + $0x358] sm:$0xf0] }
 0x25b   :  { %2034 = vmatpush.bf16.msra.mxu1 %v4454_v21  ;;  %v966_v9 = vpop.f32.mrf.mxu1  ;;  %v4641_v51 = vld [vmem:[#allocation16 + $0x3d0] sm:$0xf] }
 0x25c   :  { %2147 = vmatpush.bf16.msra.mxu2 %v4514_v53  ;;  %2160 = vmatpush.bf16.msra.mxu3 %v4518_v58  ;;  %v1123_v15 = vadd.f32 %v6694_v10, %v966_v9  ;;  %v4491_v10 = vld [vmem:[#allocation16 + $0x2a8] sm:$0xf0]  ;;  %v1354_v43 = vmul.f32 %v6637_v30, %v1332_v26  ;;  %v5488_v58 = vld [vmem:[#allocation16 + $0x204] sm:$0xf]  ;;  %v4657_v9 = vld [vmem:[#allocation16 + $0x3f0] sm:$0xf] }
 0x25d   :  { %v4494_v0 = vor.u32 %v5508_v31, %v4491_v10  ;;  %v4587_v10 = vld [vmem:[#allocation16 + $0x368] sm:$0xf0] }
 0x25e   :  { %v1293_v11 = vadd.f32 %v6697_v19, %v1123_v15  ;;  %v4430_v19 = vor.u32 %v5492_v20, %v4427_v23  ;;  %v1376_v24 = vadd.f32 %v6642_v40, %v1354_v43  ;;  %v4414_v15 = vor.u32 %v5488_v58, %v4411_v59  ;;  %v4891_v20 = vld [vmem:[#allocation16 + $0x5c8] sm:$0xf0]  ;;  %v6734_v23 = vpop.f32.mrf.mxu3  ;;  %v5606_v43 = vld [vmem:[#allocation16 + $0x5b4] sm:$0xf] }
 0x25f   :  { %2035 = vmatpush.bf16.msra.mxu1 %v4446_v1  ;;  %v5505_v1 = vld [vmem:[#allocation16 + $0x284] sm:$0xf0]  ;;  %v4875_v58 = vld [vmem:[#allocation16 + $0x5a8] sm:$0xf0] }
 0x260   :  { %2148 = vmatpush.bf16.msra.mxu2 %v4506_v36  ;;  %2161 = vmatpush.bf16.msra.mxu3 %v4510_v42  ;;  %v1315_v32 = vadd.f32 %v6629_v18, %v1293_v11  ;;  %v5504_v36 = vld [vmem:[#allocation16 + $0x284] sm:$0xf]  ;;  %v5534_v42 = vld [vmem:[#allocation16 + $0x374] sm:$0xf]  ;;  %v1132_v59 = vpop.f32.mrf.mxu2 }
 0x261   :  { %v6722_v39 = vld [vmem:[#allocation2 + $0x1c] sm:$0xf]  ;;  %v4598_v11 = vor.u32 %v5534_v42, %v4595_v8 }
 0x262   :  { %v1333_v44 = vmax.f32 %v1315_v32, 0.0  ;;  %2418 = vmatmul.bf16.vlgmr.msrb.gmra.mxu0 %v6722_v39  ;;  %v4649_v32 = vld [vmem:[#allocation16 + $0x3e0] sm:$0xf] }
 0x263   :  { %2036 = vmatpush.bf16.msra.mxu1 %v4438_v17  ;;  %2914 = vmatpush.bf16.msrb.mxu0 %v4918_v22  ;;  %v969_v47 = vpop.f32.mrf.mxu1  ;;  %v4594_v17 = vor.u32 %v5535_v6, %v4593_v5  ;;  %v5532_v22 = vld [vmem:[#allocation16 + $0x364] sm:$0xf]  ;;  %v4650_v45 = vor.u32 %v5549_v37, %v4649_v32  ;;  %v5545_v5 = vld [vmem:[#allocation16 + $0x3c4] sm:$0xf0]  ;;  %v5043_v32 = vld [vmem:[#allocation16 + $0x6f8] sm:$0xf0] }
 0x264   :  { %2149 = vmatpush.bf16.msra.mxu2 %v4498_v35  ;;  %2162 = vmatpush.bf16.msra.mxu3 %v4502_v13  ;;  %v1355_v21 = vmul.f32 %v6637_v30, %v1333_v44  ;;  %v1126_v53 = vadd.f32 %v6707_v25, %v969_v47  ;;  %v4475_v25 = vld [vmem:[#allocation16 + $0x288] sm:$0xf0]  ;;  %v5608_v35 = vld [vmem:[#allocation16 + $0x5c4] sm:$0xf]  ;;  %v4658_v13 = vor.u32 %v5551_v12, %v4657_v9  ;;  %v4883_v44 = vld [vmem:[#allocation16 + $0x5b8] sm:$0xf0] }
 0x265   :  { %v4478_v16 = vor.u32 %v5504_v36, %v4475_v25  ;;  %v5530_v47 = vld [vmem:[#allocation16 + $0x354] sm:$0xf]  ;;  %v4571_v25 = vld [vmem:[#allocation16 + $0x348] sm:$0xf0] }
 0x266   :  { %v1377_v34 = vadd.f32 %v6642_v40, %v1355_v21  ;;  %v1294_v62 = vadd.f32 %v6712_v3, %v1126_v53  ;;  %v4474_v3 = vor.u32 %v5505_v1, %v4473_v60  ;;  %v4886_v53 = vor.u32 %v5606_v43, %v4883_v44  ;;  %v1271_v6 = vpop.f32.mrf.mxu3  ;;  %v4555_v44 = vld [vmem:[#allocation16 + $0x328] sm:$0xf0] }
 0x267   :  { %2037 = vmatpush.bf16.msra.mxu1 %v4430_v19  ;;  %2915 = vmatpush.bf16.msrb.mxu0 %v4910_v49  ;;  %v4894_v19 = vor.u32 %v5608_v35, %v4891_v20  ;;  %v4582_v60 = vor.u32 %v5530_v47, %v4579_v50  ;;  %v5526_v35 = vld [vmem:[#allocation16 + $0x334] sm:$0xf] }
 0x268   :  { %2150 = vmatpush.bf16.msra.mxu2 %v4490_v33  ;;  %2163 = vmatpush.bf16.msra.mxu3 %v4494_v0  ;;  %v5753_v7 = vpack.c.bf16 %v1377_v34, %v1376_v24  ;;  %v1316_v2 = vadd.f32 %v6629_v18, %v1294_v62  ;;  %v4590_v0 = vor.u32 %v5532_v22, %v4587_v10  ;;  %v4569_v34 = vld [vmem:[#allocation16 + $0x340] sm:$0xf]  ;;  %v5529_v62 = vld [vmem:[#allocation16 + $0x344] sm:$0xf0]  ;;  %v4859_v22 = vld [vmem:[#allocation16 + $0x588] sm:$0xf0] }
 0x269   :  { %v4570_v12 = vor.u32 %v5529_v62, %v4569_v34  ;;  %v5646_v10 = vld [vmem:[#allocation16 + $0x6f4] sm:$0xf]  ;;  %v5539_v34 = vld [vmem:[#allocation16 + $0x394] sm:$0xf0] }
 0x26a   :  { %5778 = vst [vmem:[#allocation2 + $0x20] sm:$0xff] %v5753_v7   ;;  %v1334_v33 = vmax.f32 %v1316_v2, 0.0  ;;  %v5046_v50 = vor.u32 %v5646_v10, %v5043_v32 }
 0x26b   :  { %2038 = vmatpush.bf16.msra.mxu1 %v4422_v57  ;;  %2916 = vmatpush.bf16.msrb.mxu0 %v4902_v4  ;;  %v971_v26 = vpop.f32.mrf.mxu1  ;;  %v4633_v4 = vld [vmem:[#allocation16 + $0x3c0] sm:$0xf] }
 0x26c   :  { %2151 = vmatpush.bf16.msra.mxu2 %v4482_v29  ;;  %2164 = vmatpush.bf16.msra.mxu3 %v4486_v63  ;;  %v1128_v31 = vadd.f32 %v6717_v28, %v971_v26  ;;  %v4577_v28 = vld [vmem:[#allocation16 + $0x350] sm:$0xf]  ;;  %v1356_v55 = vmul.f32 %v6637_v30, %v1334_v33  ;;  %v5604_v29 = vld [vmem:[#allocation16 + $0x5a4] sm:$0xf]  ;;  %v4563_v26 = vld [vmem:[#allocation16 + $0x338] sm:$0xf0] }
 0x26d   :  { %v4578_v57 = vor.u32 %v5531_v46, %v4577_v28  ;;  %v5528_v63 = vld [vmem:[#allocation16 + $0x344] sm:$0xf]  ;;  %v4878_v42 = vor.u32 %v5604_v29, %v4875_v58  ;;  %v4553_v33 = vld [vmem:[#allocation16 + $0x320] sm:$0xf]  ;;  %v1135_v28 = vpop.f32.mrf.mxu2  ;;  %v4862_v46 = vor.u32 %v5600_v41, %v4859_v22  ;;  %v4545_v29 = vld [vmem:[#allocation16 + $0x310] sm:$0xf] }
 0x26e   :  { %v1295_v54 = vadd.f32 %v6720_v38, %v1128_v31  ;;  %v5547_v38 = vld [vmem:[#allocation16 + $0x3d4] sm:$0xf0]  ;;  %v1378_v7 = vadd.f32 %v6642_v40, %v1356_v55  ;;  %v4574_v2 = vor.u32 %v5528_v63, %v4571_v25  ;;  %v1274_v55 = vpop.f32.mrf.mxu3  ;;  %v5642_v63 = vld [vmem:[#allocation16 + $0x6d4] sm:$0xf]  ;;  %v4785_v22 = vld [vmem:[#allocation16 + $0x4f0] sm:$0xf] }
 0x26f   :  { %2039 = vmatpush.bf16.msra.mxu1 %v4414_v15  ;;  %2917 = vmatpush.bf16.msrb.mxu0 %v4894_v19  ;;  %v4642_v24 = vor.u32 %v5547_v38, %v4641_v51  ;;  %v5602_v15 = vld [vmem:[#allocation16 + $0x594] sm:$0xf]  ;;  %v5644_v38 = vld [vmem:[#allocation16 + $0x6e4] sm:$0xf]  ;;  %v5523_v58 = vld [vmem:[#allocation16 + $0x314] sm:$0xf0] }
 0x270   :  { %2152 = vmatpush.bf16.msra.mxu2 %v4474_v3  ;;  %2165 = vmatpush.bf16.msra.mxu3 %v4478_v16  ;;  %v1317_v49 = vadd.f32 %v6629_v18, %v1295_v54  ;;  %v4867_v3 = vld [vmem:[#allocation16 + $0x598] sm:$0xf0]  ;;  %v4561_v16 = vld [vmem:[#allocation16 + $0x330] sm:$0xf]  ;;  %v5525_v54 = vld [vmem:[#allocation16 + $0x324] sm:$0xf0] }
 0x271   :  { %v6740_v21 = vld [vmem:[#allocation2 + $0x24] sm:$0xf]  ;;  %v4870_v27 = vor.u32 %v5602_v15, %v4867_v3  ;;  %v4554_v51 = vor.u32 %v5525_v54, %v4553_v33  ;;  %v5019_v33 = vld [vmem:[#allocation16 + $0x6c8] sm:$0xf0]  ;;  %v4713_v54 = vld [vmem:[#allocation16 + $0x460] sm:$0xf] }
 0x272   :  { %2040 = vmatmul.bf16.vlgmr.msra.gmra.mxu1 %v6701_v48  ;;  %v1335_v56 = vmax.f32 %v1317_v49, 0.0  ;;  %2670 = vmatmul.bf16.vlgmr.msra.gmra.mxu0 %v6740_v21 }
 0x273   :  { %2271 = vmatpush.bf16.msrb.mxu1 %v4594_v17  ;;  %2153 = vmatmul.bf16.vlgmr.msra.gmra.mxu2 %v2047_v52  ;;  %v974_v48 = vpop.f32.mrf.mxu1  ;;  %v5527_v17 = vld [vmem:[#allocation16 + $0x334] sm:$0xf0] }
 0x274   :  { %2284 = vmatpush.bf16.msrb.mxu2 %v4598_v11  ;;  %2397 = vmatpush.bf16.msrb.mxu3 %v4658_v13  ;;  %v1357_v1 = vmul.f32 %v6637_v30, %v1335_v56  ;;  %v1131_v36 = vadd.f32 %v6731_v14, %v974_v48  ;;  %v4634_v14 = vor.u32 %v5545_v5, %v4633_v4  ;;  %v4625_v11 = vld [vmem:[#allocation16 + $0x3b0] sm:$0xf]  ;;  %v5543_v13 = vld [vmem:[#allocation16 + $0x3b4] sm:$0xf0] }
 0x275   :  { %2166 = vmatmul.bf16.vlgmr.msra.gmra.mxu3 %v2047_v52  ;;  %2918 = vmatpush.bf16.msrb.mxu0 %v4886_v53  ;;  %v4562_v31 = vor.u32 %v5527_v17, %v4561_v16  ;;  %v4566_v52 = vor.u32 %v5526_v35, %v4563_v26  ;;  %v4626_v19 = vor.u32 %v5543_v13, %v4625_v11  ;;  %v5035_v53 = vld [vmem:[#allocation16 + $0x6e8] sm:$0xf0]  ;;  %v4721_v16 = vld [vmem:[#allocation16 + $0x470] sm:$0xf]  ;;  %v5566_v26 = vld [vmem:[#allocation16 + $0x474] sm:$0xf] }
 0x276   :  { %v1379_v8 = vadd.f32 %v6642_v40, %v1357_v1  ;;  %v1296_v9 = vadd.f32 %v6734_v23, %v1131_v36  ;;  %v5027_v1 = vld [vmem:[#allocation16 + $0x6d8] sm:$0xf0]  ;;  %v5038_v4 = vor.u32 %v5644_v38, %v5035_v53  ;;  %v4546_v5 = vor.u32 %v5523_v58, %v4545_v29  ;;  %v4705_v29 = vld [vmem:[#allocation16 + $0x450] sm:$0xf] }
 0x277   :  { %2272 = vmatpush.bf16.msrb.mxu1 %v4586_v61  ;;  %v5524_v61 = vld [vmem:[#allocation16 + $0x324] sm:$0xf]  ;;  %v5030_v17 = vor.u32 %v5642_v63, %v5027_v1  ;;  %v4723_v11 = vld [vmem:[#allocation16 + $0x478] sm:$0xf0]  ;;  %v4769_v63 = vld [vmem:[#allocation16 + $0x4d0] sm:$0xf] }
 0x278   :  { %2285 = vmatpush.bf16.msrb.mxu2 %v4590_v0  ;;  %2398 = vmatpush.bf16.msrb.mxu3 %v4650_v45  ;;  %v5758_v20 = vpack.c.bf16 %v1379_v8, %v1378_v7  ;;  %v1318_v23 = vadd.f32 %v6629_v18, %v1296_v9  ;;  %v4617_v0 = vld [vmem:[#allocation16 + $0x3a0] sm:$0xf]  ;;  %v5541_v45 = vld [vmem:[#allocation16 + $0x3a4] sm:$0xf0]  ;;  %v4558_v56 = vor.u32 %v5524_v61, %v4555_v44  ;;  %v5520_v9 = vld [vmem:[#allocation16 + $0x304] sm:$0xf]  ;;  %v1276_v61 = vpop.f32.mrf.mxu3 }
 0x279   :  { %2919 = vmatpush.bf16.msrb.mxu0 %v4878_v42  ;;  %v5521_v42 = vld [vmem:[#allocation16 + $0x304] sm:$0xf0]  ;;  %v5579_v1 = vld [vmem:[#allocation16 + $0x4d4] sm:$0xf0] }
 0x27a   :  { %5779 = vst [vmem:[#allocation2 + $0x28] sm:$0xff] %v5758_v20   ;;  %v1336_v47 = vmax.f32 %v1318_v23, 0.0  ;;  %v5567_v20 = vld [vmem:[#allocation16 + $0x474] sm:$0xf0]  ;;  %v1137_v23 = vpop.f32.mrf.mxu2  ;;  %v5565_v44 = vld [vmem:[#allocation16 + $0x464] sm:$0xf0] }
 0x27b   :  { %2273 = vmatpush.bf16.msrb.mxu1 %v4578_v57  ;;  %v976_v37 = vpop.f32.mrf.mxu1  ;;  %v4618_v57 = vor.u32 %v5541_v45, %v4617_v0  ;;  %v4715_v0 = vld [vmem:[#allocation16 + $0x468] sm:$0xf0]  ;;  %v6758_v45 = vld [vmem:[#allocation11] ss:$0 sm:$0xff]  ;;  %v4714_v53 = vor.u32 %v5565_v44, %v4713_v54  ;;  %v4753_v54 = vld [vmem:[#allocation16 + $0x4b0] sm:$0xf] }
 0x27c   :  { %2286 = vmatpush.bf16.msrb.mxu2 %v4582_v60  ;;  %2399 = vmatpush.bf16.msrb.mxu3 %v4642_v24  ;;  %v1133_v43 = vadd.f32 %v1132_v59, %v976_v37  ;;  %v5522_v59 = vld [vmem:[#allocation16 + $0x314] sm:$0xf]  ;;  %v4547_v60 = vld [vmem:[#allocation16 + $0x318] sm:$0xf0]  ;;  %v4609_v24 = vld [vmem:[#allocation16 + $0x390] sm:$0xf]  ;;  %v1358_v36 = vmul.f32 %v6637_v30, %v1336_v47  ;;  %v4722_v37 = vor.u32 %v5567_v20, %v4721_v16 }
 0x27d   :  { %2920 = vmatpush.bf16.msrb.mxu0 %v4870_v27  ;;  %v4550_v7 = vor.u32 %v5522_v59, %v4547_v60  ;;  %v4610_v8 = vor.u32 %v5539_v34, %v4609_v24  ;;  %v5581_v47 = vld [vmem:[#allocation16 + $0x4e4] sm:$0xf0]  ;;  %v5563_v59 = vld [vmem:[#allocation16 + $0x454] sm:$0xf0]  ;;  %v4707_v60 = vld [vmem:[#allocation16 + $0x458] sm:$0xf0] }
 0x27e   :  { %v1297_v49 = vadd.f32 %v1271_v6, %v1133_v43  ;;  %v4537_v6 = vld [vmem:[#allocation16 + $0x300] sm:$0xf]  ;;  %v1380_v13 = vadd.f32 %v6642_v40, %v1358_v36  ;;  %v5577_v16 = vld [vmem:[#allocation16 + $0x4c4] sm:$0xf0]  ;;  %v5632_v44 = vld [vmem:[#allocation16 + $0x684] sm:$0xf] }
 0x27f   :  { %2274 = vmatpush.bf16.msrb.mxu1 %v4570_v12  ;;  %v4539_v12 = vld [vmem:[#allocation16 + $0x308] sm:$0xf0]  ;;  %v4538_v35 = vor.u32 %v5521_v42, %v4537_v6 }
 0x280   :  { %2287 = vmatpush.bf16.msrb.mxu2 %v4574_v2  ;;  %2400 = vmatpush.bf16.msrb.mxu3 %v4634_v14  ;;  %v1319_v48 = vadd.f32 %v6629_v18, %v1297_v49  ;;  %v4601_v2 = vld [vmem:[#allocation16 + $0x380] sm:$0xf]  ;;  %v5537_v14 = vld [vmem:[#allocation16 + $0x384] sm:$0xf0]  ;;  %v5003_v42 = vld [vmem:[#allocation16 + $0x6a8] sm:$0xf0] }
 0x281   :  { %2921 = vmatpush.bf16.msrb.mxu0 %v4862_v46  ;;  %v6751_v62 = vld [vmem:[#allocation2 + $0x2c] sm:$0xf]  ;;  %v4602_v10 = vor.u32 %v5537_v14, %v4601_v2  ;;  %v4777_v46 = vld [vmem:[#allocation16 + $0x4e0] sm:$0xf] }
 0x282   :  { %v1337_v25 = vmax.f32 %v1319_v48, 0.0  ;;  %v4778_v58 = vor.u32 %v5581_v47, %v4777_v46  ;;  %v5562_v48 = vld [vmem:[#allocation16 + $0x454] sm:$0xf]  ;;  %v4761_v14 = vld [vmem:[#allocation16 + $0x4c0] sm:$0xf] }
 0x283   :  { %2275 = vmatpush.bf16.msrb.mxu1 %v4562_v31  ;;  %v979_v18 = vpop.f32.mrf.mxu1  ;;  %v4542_v31 = vor.u32 %v5520_v9, %v4539_v12  ;;  %v4710_v6 = vor.u32 %v5562_v48, %v4707_v60  ;;  %v4770_v9 = vor.u32 %v5579_v1, %v4769_v63  ;;  %v5560_v12 = vld [vmem:[#allocation16 + $0x444] sm:$0xf]  ;;  %v5678_v47 = vld [vmem:[#allocation16 + $0x7f4] sm:$0xf]  ;;  %v5163_v1 = vld [vmem:[#allocation16 + $0x7e8] sm:$0xf0] }
 0x284   :  { %2288 = vmatpush.bf16.msrb.mxu2 %v4566_v52  ;;  %2401 = vmatpush.bf16.msrb.mxu3 %v4626_v19  ;;  %v1359_v15 = vmul.f32 %v6637_v30, %v1337_v25  ;;  %v1136_v3 = vadd.f32 %v1135_v28, %v979_v18  ;;  %v5583_v30 = vld [vmem:[#allocation16 + $0x4f4] sm:$0xf0]  ;;  %v4726_v52 = vor.u32 %v5566_v26, %v4723_v11  ;;  %v5640_v19 = vld [vmem:[#allocation16 + $0x6c4] sm:$0xf]  ;;  %v4697_v18 = vld [vmem:[#allocation16 + $0x440] sm:$0xf] }
 0x285   :  { %3166 = vmatpush.bf16.msra.mxu0 %v5046_v50  ;;  %v4786_v43 = vor.u32 %v5583_v30, %v4785_v22  ;;  %v2173_v50 = vld [vmem:[#allocation2 + $0x18] sm:$0xf]  ;;  %v4995_v22 = vld [vmem:[#allocation16 + $0x698] sm:$0xf0]  ;;  %v4689_v30 = vld [vmem:[#allocation16 + $0x430] sm:$0xf] }
 0x286   :  { %2922 = vmatmul.bf16.vlgmr.msrb.gmra.mxu0 %v6751_v62  ;;  %v1381_v27 = vadd.f32 %v6642_v40, %v1359_v15  ;;  %v1298_v41 = vadd.f32 %v1274_v55, %v1136_v3  ;;  %v5564_v40 = vld [vmem:[#allocation16 + $0x464] sm:$0xf]  ;;  %v4699_v15 = vld [vmem:[#allocation16 + $0x448] sm:$0xf0] }
 0x287   :  { %2276 = vmatpush.bf16.msrb.mxu1 %v4554_v51  ;;  %v5022_v51 = vor.u32 %v5640_v19, %v5019_v33  ;;  %v4718_v55 = vor.u32 %v5564_v40, %v4715_v0  ;;  %v5636_v25 = vld [vmem:[#allocation16 + $0x6a4] sm:$0xf]  ;;  %v4987_v40 = vld [vmem:[#allocation16 + $0x688] sm:$0xf0] }
 0x288   :  { %2289 = vmatpush.bf16.msrb.mxu2 %v4558_v56  ;;  %2402 = vmatpush.bf16.msrb.mxu3 %v4618_v57  ;;  %v5763_v32 = vpack.c.bf16 %v1381_v27, %v1380_v13  ;;  %v1320_v28 = vadd.f32 %v6758_v45, %v1298_v41  ;;  %v5638_v56 = vld [vmem:[#allocation16 + $0x6b4] sm:$0xf]  ;;  %v5011_v57 = vld [vmem:[#allocation16 + $0x6b8] sm:$0xf0]  ;;  %v5006_v20 = vor.u32 %v5636_v25, %v5003_v42  ;;  %v5676_v63 = vld [vmem:[#allocation16 + $0x7e4] sm:$0xf] }
 0x289   :  { %3167 = vmatpush.bf16.msra.mxu0 %v5038_v4  ;;  %v5014_v36 = vor.u32 %v5638_v56, %v5011_v57  ;;  %v4702_v27 = vor.u32 %v5560_v12, %v4699_v15  ;;  %v5634_v41 = vld [vmem:[#allocation16 + $0x694] sm:$0xf]  ;;  %v4745_v57 = vld [vmem:[#allocation16 + $0x4a0] sm:$0xf]  ;;  %v4990_v48 = vor.u32 %v5632_v44, %v4987_v40  ;;  %v5571_v12 = vld [vmem:[#allocation16 + $0x494] sm:$0xf0] }
 0x28a   :  { %5780 = vst [vmem:[#allocation2 + $0x30] sm:$0xff] %v5763_v32   ;;  %v1338_v24 = vmax.f32 %v1320_v28, 0.0  ;;  %v4691_v32 = vld [vmem:[#allocation16 + $0x438] sm:$0xf0]  ;;  %v5554_v42 = vld [vmem:[#allocation16 + $0x414] sm:$0xf] }
 0x28b   :  { %2277 = vmatpush.bf16.msrb.mxu1 %v4546_v5  ;;  %v981_v49 = vpop.f32.mrf.mxu1  ;;  %v4706_v5 = vor.u32 %v5563_v59, %v4705_v29  ;;  %v5573_v29 = vld [vmem:[#allocation16 + $0x4a4] sm:$0xf0]  ;;  %v5674_v15 = vld [vmem:[#allocation16 + $0x7d4] sm:$0xf] }
 0x28c   :  { %2290 = vmatpush.bf16.msrb.mxu2 %v4550_v7  ;;  %2403 = vmatpush.bf16.msrb.mxu3 %v4610_v8  ;;  %v1138_v38 = vadd.f32 %v1137_v23, %v981_v49  ;;  %v5561_v7 = vld [vmem:[#allocation16 + $0x444] sm:$0xf0]  ;;  %v1140_v8 = vpop.f32.mrf.mxu2  ;;  %v4762_v23 = vor.u32 %v5577_v16, %v4761_v14  ;;  %v5171_v49 = vld [vmem:[#allocation16 + $0x7f8] sm:$0xf0]  ;;  %v5166_v14 = vor.u32 %v5676_v63, %v5163_v1  ;;  %v5595_v63 = vld [vmem:[#allocation16 + $0x554] sm:$0xf0] }
 0x28d   :  { %3168 = vmatpush.bf16.msra.mxu0 %v5030_v17  ;;  %v1279_v17 = vpop.f32.mrf.mxu3  ;;  %v4698_v26 = vor.u32 %v5561_v7, %v4697_v18  ;;  %v4675_v18 = vld [vmem:[#allocation16 + $0x418] sm:$0xf0]  ;;  %v5594_v1 = vld [vmem:[#allocation16 + $0x554] sm:$0xf] }
 0x28e   :  { %v1299_v34 = vadd.f32 %v1276_v61, %v1138_v38  ;;  %v5575_v61 = vld [vmem:[#allocation16 + $0x4b4] sm:$0xf0]  ;;  %v5557_v38 = vld [vmem:[#allocation16 + $0x424] sm:$0xf0] }
 0x28f   :  { %2278 = vmatpush.bf16.msrb.mxu1 %v4538_v35 }
 0x290   :  { %2291 = vmatpush.bf16.msrb.mxu2 %v4542_v31  ;;  %2404 = vmatpush.bf16.msrb.mxu3 %v4602_v10  ;;  %v1321_v4 = vadd.f32 %v6758_v45, %v1299_v34  ;;  %v5559_v31 = vld [vmem:[#allocation16 + $0x434] sm:$0xf0]  ;;  %v5558_v10 = vld [vmem:[#allocation16 + $0x434] sm:$0xf] }
 0x291   :  { %3169 = vmatpush.bf16.msra.mxu0 %v5022_v51  ;;  %v4690_v28 = vor.u32 %v5559_v31, %v4689_v30  ;;  %v4694_v46 = vor.u32 %v5558_v10, %v4691_v32  ;;  %v4754_v51 = vor.u32 %v5575_v61, %v4753_v54  ;;  %v5599_v31 = vld [vmem:[#allocation16 + $0x574] sm:$0xf0]  ;;  %v5598_v10 = vld [vmem:[#allocation16 + $0x574] sm:$0xf]  ;;  %v4851_v32 = vld [vmem:[#allocation16 + $0x578] sm:$0xf0] }
 0x292   :  { %2279 = vmatmul.bf16.vlgmr.msrb.gmra.mxu1 %v2173_v50  ;;  %v1339_v2 = vmax.f32 %v1321_v4, 0.0  ;;  %v4913_v54 = vld [vmem:[#allocation16 + $0x5f0] sm:$0xf]  ;;  %v5615_v61 = vld [vmem:[#allocation16 + $0x5f4] sm:$0xf0] }
 0x293   :  { %2523 = vmatpush.bf16.msra.mxu1 %v4722_v37  ;;  %2292 = vmatmul.bf16.vlgmr.msrb.gmra.mxu2 %v2173_v50  ;;  %v984_v35 = vpop.f32.mrf.mxu1  ;;  %v6767_v37 = vld [vmem:[#allocation14] ss:$0 sm:$0xff]  ;;  %v4681_v50 = vld [vmem:[#allocation16 + $0x420] sm:$0xf] }
 0x294   :  { %2536 = vmatpush.bf16.msra.mxu2 %v4726_v52  ;;  %2649 = vmatpush.bf16.msra.mxu3 %v4786_v43  ;;  %v1141_v13 = vadd.f32 %v1140_v8, %v984_v35  ;;  %v4998_v43 = vor.u32 %v5634_v41, %v4995_v22  ;;  %v4682_v34 = vor.u32 %v5557_v38, %v4681_v50  ;;  %v5553_v35 = vld [vmem:[#allocation16 + $0x404] sm:$0xf0]  ;;  %v4729_v41 = vld [vmem:[#allocation16 + $0x480] sm:$0xf]  ;;  %v5596_v38 = vld [vmem:[#allocation16 + $0x564] sm:$0xf] }
 0x295   :  { %2405 = vmatmul.bf16.vlgmr.msrb.gmra.mxu3 %v6722_v39  ;;  %v6763_v39 = vld [vmem:[#allocation13] ss:$0 sm:$0xff]  ;;  %3170 = vmatpush.bf16.msra.mxu0 %v5014_v36  ;;  %v4673_v36 = vld [vmem:[#allocation16 + $0x410] sm:$0xf]  ;;  %v1281_v25 = vpop.f32.mrf.mxu3  ;;  %v4841_v50 = vld [vmem:[#allocation16 + $0x560] sm:$0xf] }
 0x296   :  { %v1360_v3 = vmul.f32 %v6763_v39, %v1338_v24  ;;  %v1361_v11 = vmul.f32 %v6763_v39, %v1339_v2  ;;  %v1300_v33 = vadd.f32 %v1279_v17, %v1141_v13  ;;  %v5174_v24 = vor.u32 %v5678_v47, %v5171_v49  ;;  %v4665_v17 = vld [vmem:[#allocation16 + $0x400] sm:$0xf]  ;;  %v5672_v47 = vld [vmem:[#allocation16 + $0x7c4] sm:$0xf]  ;;  %v5147_v49 = vld [vmem:[#allocation16 + $0x7c8] sm:$0xf0] }
 0x297   :  { %2524 = vmatpush.bf16.msra.mxu1 %v4714_v53  ;;  %v5556_v53 = vld [vmem:[#allocation16 + $0x424] sm:$0xf] }
 0x298   :  { %2537 = vmatpush.bf16.msra.mxu2 %v4718_v55  ;;  %2650 = vmatpush.bf16.msra.mxu3 %v4778_v58  ;;  %v1382_v52 = vadd.f32 %v6767_v37, %v1360_v3  ;;  %v1383_v19 = vadd.f32 %v6767_v37, %v1361_v11  ;;  %v4683_v55 = vld [vmem:[#allocation16 + $0x428] sm:$0xf0]  ;;  %v1322_v56 = vadd.f32 %v6758_v45, %v1300_v33  ;;  %v1142_v58 = vpop.f32.mrf.mxu2  ;;  %v5155_v3 = vld [vmem:[#allocation16 + $0x7d8] sm:$0xf0] }
 0x299   :  { %3171 = vmatpush.bf16.msra.mxu0 %v5006_v20  ;;  %v4686_v4 = vor.u32 %v5556_v53, %v4683_v55  ;;  %v5552_v20 = vld [vmem:[#allocation16 + $0x404] sm:$0xf]  ;;  %v4678_v11 = vor.u32 %v5554_v42, %v4675_v18  ;;  %v4666_v33 = vor.u32 %v5553_v35, %v4665_v17  ;;  %v4843_v53 = vld [vmem:[#allocation16 + $0x568] sm:$0xf0] }
 0x29a   :  { %v5768_v0 = vpack.c.bf16 %v1383_v19, %v1382_v52  ;;  %v1340_v7 = vmax.f32 %v1322_v56, 0.0  ;;  %v5158_v19 = vor.u32 %v5674_v15, %v5155_v3  ;;  %v4905_v56 = vld [vmem:[#allocation16 + $0x5e0] sm:$0xf]  ;;  %v5668_v18 = vld [vmem:[#allocation16 + $0x7a4] sm:$0xf] }
 0x29b   :  { %2525 = vmatpush.bf16.msra.mxu1 %v4706_v5  ;;  %v986_v59 = vpop.f32.mrf.mxu1  ;;  %v4746_v5 = vor.u32 %v5573_v29, %v4745_v57  ;;  %v5613_v57 = vld [vmem:[#allocation16 + $0x5e4] sm:$0xf0]  ;;  %v2425_v29 = vld [vmem:[#allocation2 + $0x20] sm:$0xf]  ;;  %v5592_v3 = vld [vmem:[#allocation16 + $0x544] sm:$0xf] }
 0x29c   :  { %2538 = vmatpush.bf16.msra.mxu2 %v4710_v6  ;;  %2651 = vmatpush.bf16.msra.mxu3 %v4770_v9  ;;  %5781 = vst [vmem:[#allocation2 + $0x38] sm:$0xff] %v5768_v0   ;;  %v1143_v60 = vadd.f32 %v1142_v58, %v986_v59  ;;  %v5555_v6 = vld [vmem:[#allocation16 + $0x414] sm:$0xf0]  ;;  %v4737_v9 = vld [vmem:[#allocation16 + $0x490] sm:$0xf]  ;;  %v1362_v22 = vmul.f32 %v6763_v39, %v1340_v7 }
 0x29d   :  { %3172 = vmatpush.bf16.msra.mxu0 %v4998_v43  ;;  %v4674_v16 = vor.u32 %v5555_v6, %v4673_v36  ;;  %v4738_v13 = vor.u32 %v5571_v12, %v4737_v9  ;;  %v5150_v58 = vor.u32 %v5672_v47, %v5147_v49  ;;  %v5670_v59 = vld [vmem:[#allocation16 + $0x7b4] sm:$0xf]  ;;  %v4835_v36 = vld [vmem:[#allocation16 + $0x558] sm:$0xf0]  ;;  %v5131_v7 = vld [vmem:[#allocation16 + $0x7a8] sm:$0xf0] }
 0x29e   :  { %v1301_v8 = vadd.f32 %v1281_v25, %v1143_v60  ;;  %v1384_v40 = vadd.f32 %v6767_v37, %v1362_v22  ;;  %v5139_v60 = vld [vmem:[#allocation16 + $0x7b8] sm:$0xf0]  ;;  %v4897_v25 = vld [vmem:[#allocation16 + $0x5d0] sm:$0xf]  ;;  %v4838_v42 = vor.u32 %v5594_v1, %v4835_v36  ;;  %v5593_v15 = vld [vmem:[#allocation16 + $0x544] sm:$0xf0] }
 0x29f   :  { %2526 = vmatpush.bf16.msra.mxu1 %v4698_v26  ;;  %v6773_v26 = vld [vmem:[#allocation2 + $0x34] sm:$0xf]  ;;  %v5590_v22 = vld [vmem:[#allocation16 + $0x534] sm:$0xf]  ;;  %v5589_v47 = vld [vmem:[#allocation16 + $0x524] sm:$0xf0] }
 0x2a0   :  { %2539 = vmatpush.bf16.msra.mxu2 %v4702_v27  ;;  %2652 = vmatpush.bf16.msra.mxu3 %v4762_v23  ;;  %v1323_v2 = vadd.f32 %v6758_v45, %v1301_v8  ;;  %v4667_v27 = vld [vmem:[#allocation16 + $0x408] sm:$0xf0]  ;;  %v5569_v45 = vld [vmem:[#allocation16 + $0x484] sm:$0xf0]  ;;  %v4849_v23 = vld [vmem:[#allocation16 + $0x570] sm:$0xf] }
 0x2a1   :  { %3173 = vmatpush.bf16.msra.mxu0 %v4990_v48  ;;  %v4670_v43 = vor.u32 %v5552_v20, %v4667_v27  ;;  %v4730_v44 = vor.u32 %v5569_v45, %v4729_v41  ;;  %v4846_v48 = vor.u32 %v5596_v38, %v4843_v53  ;;  %v4825_v8 = vld [vmem:[#allocation16 + $0x540] sm:$0xf]  ;;  %v5666_v20 = vld [vmem:[#allocation16 + $0x794] sm:$0xf]  ;;  %v5591_v41 = vld [vmem:[#allocation16 + $0x534] sm:$0xf0]  ;;  %v641_v45 = vpop.f32.mrf.mxu0 }
 0x2a2   :  { %v1341_v30 = vmax.f32 %v1323_v2, 0.0  ;;  %v4827_v2 = vld [vmem:[#allocation16 + $0x548] sm:$0xf0]  ;;  %v4826_v17 = vor.u32 %v5593_v15, %v4825_v8  ;;  %v5588_v49 = vld [vmem:[#allocation16 + $0x524] sm:$0xf] }
 0x2a3   :  { %2527 = vmatpush.bf16.msra.mxu1 %v4690_v28  ;;  %v4850_v28 = vor.u32 %v5599_v31, %v4849_v23  ;;  %v4830_v35 = vor.u32 %v5592_v3, %v4827_v2  ;;  %v4881_v23 = vld [vmem:[#allocation16 + $0x5b0] sm:$0xf]  ;;  %v5607_v31 = vld [vmem:[#allocation16 + $0x5b4] sm:$0xf0]  ;;  %v6783_v1 = vld [vmem:[#allocation2 + $0x3c] sm:$0xf] }
 0x2a4   :  { %2540 = vmatpush.bf16.msra.mxu2 %v4694_v46  ;;  %2653 = vmatpush.bf16.msra.mxu3 %v4754_v51  ;;  %v1363_v52 = vmul.f32 %v6763_v39, %v1341_v30  ;;  %v4854_v46 = vor.u32 %v5598_v10, %v4851_v32  ;;  %v4914_v39 = vor.u32 %v5615_v61, %v4913_v54  ;;  %v5597_v51 = vld [vmem:[#allocation16 + $0x564] sm:$0xf0]  ;;  %v4819_v30 = vld [vmem:[#allocation16 + $0x538] sm:$0xf0]  ;;  %v5115_v61 = vld [vmem:[#allocation16 + $0x788] sm:$0xf0] }
 0x2a5   :  { %3418 = vmatpush.bf16.msrb.mxu0 %v5174_v24  ;;  %v4833_v24 = vld [vmem:[#allocation16 + $0x550] sm:$0xf]  ;;  %v4822_v54 = vor.u32 %v5590_v22, %v4819_v30  ;;  %v5584_v15 = vld [vmem:[#allocation16 + $0x504] sm:$0xf]  ;;  %v4795_v3 = vld [vmem:[#allocation16 + $0x508] sm:$0xf0] }
 0x2a6   :  { %3174 = vmatmul.bf16.vlgmr.msra.gmra.mxu0 %v6773_v26  ;;  %v1385_v0 = vadd.f32 %v6767_v37, %v1363_v52  ;;  %v4842_v37 = vor.u32 %v5597_v51, %v4841_v50  ;;  %v4834_v6 = vor.u32 %v5595_v63, %v4833_v24  ;;  %v5664_v52 = vld [vmem:[#allocation16 + $0x784] sm:$0xf]  ;;  %v4811_v50 = vld [vmem:[#allocation16 + $0x528] sm:$0xf0]  ;;  %v5605_v51 = vld [vmem:[#allocation16 + $0x5a4] sm:$0xf0]  ;;  %v4798_v22 = vor.u32 %v5584_v15, %v4795_v3 }
 0x2a7   :  { %2528 = vmatpush.bf16.msra.mxu1 %v4682_v34  ;;  %v4906_v34 = vor.u32 %v5613_v57, %v4905_v56  ;;  %v5118_v38 = vor.u32 %v5664_v52, %v5115_v61  ;;  %v5708_v56 = vld [vmem:[#allocation16 + $0x8e4] sm:$0xf]  ;;  %v5291_v57 = vld [vmem:[#allocation16 + $0x8e8] sm:$0xf0]  ;;  %v4803_v24 = vld [vmem:[#allocation16 + $0x518] sm:$0xf0] }
 0x2a8   :  { %2541 = vmatpush.bf16.msra.mxu2 %v4686_v4  ;;  %2654 = vmatpush.bf16.msra.mxu3 %v4746_v5  ;;  %v5773_v55 = vpack.c.bf16 %v1385_v0, %v1384_v40  ;;  %v5611_v4 = vld [vmem:[#allocation16 + $0x5d4] sm:$0xf0]  ;;  %v5142_v5 = vor.u32 %v5670_v59, %v5139_v60  ;;  %v4882_v0 = vor.u32 %v5607_v31, %v4881_v23  ;;  %v4801_v59 = vld [vmem:[#allocation16 + $0x510] sm:$0xf]  ;;  %v5704_v31 = vld [vmem:[#allocation16 + $0x8c4] sm:$0xf] }
 0x2a9   :  { %3419 = vmatpush.bf16.msrb.mxu0 %v5166_v14  ;;  %v4898_v9 = vor.u32 %v5611_v4, %v4897_v25  ;;  %v4889_v14 = vld [vmem:[#allocation16 + $0x5c0] sm:$0xf]  ;;  %v642_v60 = vpop.f32.mrf.mxu0  ;;  %v5603_v63 = vld [vmem:[#allocation16 + $0x594] sm:$0xf0]  ;;  %v5294_v4 = vor.u32 %v5708_v56, %v5291_v57  ;;  %v4971_v61 = vld [vmem:[#allocation16 + $0x668] sm:$0xf0] }
 0x2aa   :  { %5782 = vst [vmem:[#allocation2 + $0x40] sm:$0xff] %v5773_v55   ;;  %v5627_v56 = vld [vmem:[#allocation16 + $0x654] sm:$0xf0]  ;;  %v5626_v57 = vld [vmem:[#allocation16 + $0x654] sm:$0xf] }
 0x2ab   :  { %2529 = vmatpush.bf16.msra.mxu1 %v4674_v16  ;;  %v5609_v16 = vld [vmem:[#allocation16 + $0x5c4] sm:$0xf0]  ;;  %v5698_v3 = vld [vmem:[#allocation16 + $0x894] sm:$0xf] }
 0x2ac   :  { %2542 = vmatpush.bf16.msra.mxu2 %v4678_v11  ;;  %2655 = vmatpush.bf16.msra.mxu3 %v4738_v13  ;;  %v5123_v11 = vld [vmem:[#allocation16 + $0x798] sm:$0xf0]  ;;  %v4817_v13 = vld [vmem:[#allocation16 + $0x530] sm:$0xf]  ;;  %v4890_v27 = vor.u32 %v5609_v16, %v4889_v14  ;;  %v4857_v14 = vld [vmem:[#allocation16 + $0x580] sm:$0xf] }
 0x2ad   :  { %3420 = vmatpush.bf16.msrb.mxu0 %v5158_v19  ;;  %v5126_v10 = vor.u32 %v5666_v20, %v5123_v11  ;;  %v5601_v16 = vld [vmem:[#allocation16 + $0x584] sm:$0xf0]  ;;  %v4979_v20 = vld [vmem:[#allocation16 + $0x678] sm:$0xf0] }
 0x2ae   :  { %v4858_v30 = vor.u32 %v5601_v16, %v4857_v14  ;;  %v4945_v14 = vld [vmem:[#allocation16 + $0x630] sm:$0xf] }
 0x2af   :  { %2530 = vmatpush.bf16.msra.mxu1 %v4666_v33  ;;  %v1546_v12 = vpop.f32.mrf.mxu1  ;;  %v4818_v33 = vor.u32 %v5591_v41, %v4817_v13  ;;  %v5647_v41 = vld [vmem:[#allocation16 + $0x6f4] sm:$0xf0] }
 0x2b0   :  { %2543 = vmatpush.bf16.msra.mxu2 %v4670_v43  ;;  %2656 = vmatpush.bf16.msra.mxu3 %v4730_v44  ;;  %v5710_v43 = vld [vmem:[#allocation16 + $0x8f4] sm:$0xf]  ;;  %v5299_v44 = vld [vmem:[#allocation16 + $0x8f8] sm:$0xf0] }
 0x2b1   :  { %3421 = vmatpush.bf16.msrb.mxu0 %v5150_v58  ;;  %v5302_v53 = vor.u32 %v5710_v43, %v5299_v44 }
 0x2b2   :  { %2531 = vmatmul.bf16.vlgmr.msra.gmra.mxu1 %v2425_v29 }
 0x2b3   :  { %2775 = vmatpush.bf16.msrb.mxu1 %v4850_v28  ;;  %2544 = vmatmul.bf16.vlgmr.msra.gmra.mxu2 %v2425_v29  ;;  %v4814_v29 = vor.u32 %v5588_v49, %v4811_v50 }
 0x2b4   :  { %2788 = vmatpush.bf16.msrb.mxu2 %v4854_v46  ;;  %2901 = vmatpush.bf16.msrb.mxu3 %v4914_v39  ;;  %v4809_v46 = vld [vmem:[#allocation16 + $0x520] sm:$0xf] }
 0x2b5   :  { %2657 = vmatmul.bf16.vlgmr.msra.gmra.mxu3 %v6740_v21  ;;  %3422 = vmatpush.bf16.msrb.mxu0 %v5142_v5  ;;  %v5134_v21 = vor.u32 %v5668_v18, %v5131_v7  ;;  %v1559_v32 = vpop.f32.mrf.mxu2  ;;  %v4873_v39 = vld [vmem:[#allocation16 + $0x5a0] sm:$0xf]  ;;  %v4810_v55 = vor.u32 %v5589_v47, %v4809_v46  ;;  %v2677_v47 = vld [vmem:[#allocation2 + $0x28] sm:$0xf] }
 0x2b6   :  { %v1652_v19 = vpop.f32.mrf.mxu3  ;;  %v4874_v58 = vor.u32 %v5605_v51, %v4873_v39  ;;  %v4793_v18 = vld [vmem:[#allocation16 + $0x500] sm:$0xf] }
 0x2b7   :  { %2776 = vmatpush.bf16.msrb.mxu1 %v4842_v37  ;;  %v6781_v40 = vadd.f32 %v1652_v19, %v1546_v12  ;;  %v1548_v28 = vpop.f32.mrf.mxu1  ;;  %v5587_v37 = vld [vmem:[#allocation16 + $0x514] sm:$0xf0]  ;;  %v5585_v12 = vld [vmem:[#allocation16 + $0x504] sm:$0xf0] }
 0x2b8   :  { %2789 = vmatpush.bf16.msrb.mxu2 %v4846_v48  ;;  %2902 = vmatpush.bf16.msrb.mxu3 %v4906_v34  ;;  %v5586_v48 = vld [vmem:[#allocation16 + $0x514] sm:$0xf]  ;;  %v4865_v34 = vld [vmem:[#allocation16 + $0x590] sm:$0xf]  ;;  %v4802_v5 = vor.u32 %v5587_v37, %v4801_v59  ;;  %v4794_v13 = vor.u32 %v5585_v12, %v4793_v18  ;;  %v5645_v28 = vld [vmem:[#allocation16 + $0x6e4] sm:$0xf0] }
 0x2b9   :  { %3423 = vmatpush.bf16.msrb.mxu0 %v5134_v21  ;;  %v4806_v7 = vor.u32 %v5586_v48, %v4803_v24  ;;  %v4866_v8 = vor.u32 %v5603_v63, %v4865_v34  ;;  %v4977_v21 = vld [vmem:[#allocation16 + $0x670] sm:$0xf]  ;;  %v5643_v59 = vld [vmem:[#allocation16 + $0x6d4] sm:$0xf0]  ;;  %v5700_v24 = vld [vmem:[#allocation16 + $0x8a4] sm:$0xf] }
 0x2ba   :  { %v5259_v34 = vld [vmem:[#allocation16 + $0x8a8] sm:$0xf0]  ;;  %v4953_v63 = vld [vmem:[#allocation16 + $0x640] sm:$0xf] }
 0x2bb   :  { %2777 = vmatpush.bf16.msrb.mxu1 %v4834_v6  ;;  %v5706_v6 = vld [vmem:[#allocation16 + $0x8d4] sm:$0xf]  ;;  %v5017_v18 = vld [vmem:[#allocation16 + $0x6c0] sm:$0xf] }
 0x2bc   :  { %2790 = vmatpush.bf16.msrb.mxu2 %v4838_v42  ;;  %2903 = vmatpush.bf16.msrb.mxu3 %v4898_v9  ;;  %v5283_v42 = vld [vmem:[#allocation16 + $0x8d8] sm:$0xf0] }
 0x2bd   :  { %3424 = vmatpush.bf16.msrb.mxu0 %v5126_v10  ;;  %v1561_v36 = vpop.f32.mrf.mxu2  ;;  %v5286_v11 = vor.u32 %v5706_v6, %v5283_v42  ;;  %v5275_v10 = vld [vmem:[#allocation16 + $0x8c8] sm:$0xf0] }
 0x2be   :  { %v1654_v25 = vpop.f32.mrf.mxu3  ;;  %v5278_v49 = vor.u32 %v5704_v31, %v5275_v10  ;;  %v4955_v6 = vld [vmem:[#allocation16 + $0x648] sm:$0xf0]  ;;  %v5621_v31 = vld [vmem:[#allocation16 + $0x624] sm:$0xf0]  ;;  %v5620_v10 = vld [vmem:[#allocation16 + $0x624] sm:$0xf] }
 0x2bf   :  { %2778 = vmatpush.bf16.msrb.mxu1 %v4826_v17  ;;  %v1665_v9 = vpop.f32.mrf.mxu1  ;;  %v5631_v17 = vld [vmem:[#allocation16 + $0x674] sm:$0xf0] }
 0x2c0   :  { %2791 = vmatpush.bf16.msrb.mxu2 %v4830_v35  ;;  %2904 = vmatpush.bf16.msrb.mxu3 %v4890_v27  ;;  %v1666_v2 = vadd.f32 %v1665_v9, %v1559_v32  ;;  %v5630_v35 = vld [vmem:[#allocation16 + $0x674] sm:$0xf]  ;;  %v5041_v27 = vld [vmem:[#allocation16 + $0x6f0] sm:$0xf]  ;;  %v4978_v45 = vor.u32 %v5631_v17, %v4977_v21  ;;  %v4969_v32 = vld [vmem:[#allocation16 + $0x660] sm:$0xf] }
 0x2c1   :  { %3425 = vmatpush.bf16.msrb.mxu0 %v5118_v38  ;;  %v4982_v23 = vor.u32 %v5630_v35, %v4979_v20  ;;  %v5042_v52 = vor.u32 %v5647_v41, %v5041_v27  ;;  %v5702_v38 = vld [vmem:[#allocation16 + $0x8b4] sm:$0xf]  ;;  %v5623_v21 = vld [vmem:[#allocation16 + $0x634] sm:$0xf0]  ;;  %v4947_v35 = vld [vmem:[#allocation16 + $0x638] sm:$0xf0] }
 0x2c2   :  { %v5622_v17 = vld [vmem:[#allocation16 + $0x634] sm:$0xf]  ;;  %v5009_v20 = vld [vmem:[#allocation16 + $0x6b0] sm:$0xf]  ;;  %v4946_v27 = vor.u32 %v5623_v21, %v4945_v14  ;;  %v5099_v14 = vld [vmem:[#allocation16 + $0x768] sm:$0xf0] }
 0x2c3   :  { %2779 = vmatpush.bf16.msrb.mxu1 %v4818_v33  ;;  %v5629_v33 = vld [vmem:[#allocation16 + $0x664] sm:$0xf0]  ;;  %v4950_v41 = vor.u32 %v5622_v17, %v4947_v35  ;;  %v2929_v17 = vld [vmem:[#allocation2 + $0x30] sm:$0xf] }
 0x2c4   :  { %2792 = vmatpush.bf16.msrb.mxu2 %v4822_v54  ;;  %2905 = vmatpush.bf16.msrb.mxu3 %v4882_v0  ;;  %v5628_v54 = vld [vmem:[#allocation16 + $0x664] sm:$0xf]  ;;  %v5033_v0 = vld [vmem:[#allocation16 + $0x6e0] sm:$0xf]  ;;  %v4970_v39 = vor.u32 %v5629_v33, %v4969_v32  ;;  %v4939_v32 = vld [vmem:[#allocation16 + $0x628] sm:$0xf0] }
 0x2c5   :  { %3670 = vmatpush.bf16.msra.mxu0 %v5302_v53  ;;  %v1776_v19 = vpop.f32.mrf.mxu2  ;;  %v4974_v51 = vor.u32 %v5628_v54, %v4971_v61  ;;  %v5267_v53 = vld [vmem:[#allocation16 + $0x8b8] sm:$0xf0]  ;;  %v5001_v33 = vld [vmem:[#allocation16 + $0x6a0] sm:$0xf]  ;;  %v5637_v54 = vld [vmem:[#allocation16 + $0x6a4] sm:$0xf0] }
 0x2c6   :  { %3426 = vmatmul.bf16.vlgmr.msrb.gmra.mxu0 %v6783_v1  ;;  %v1793_v43 = vadd.f32 %v1776_v19, %v6781_v40  ;;  %v1789_v44 = vpop.f32.mrf.mxu3  ;;  %v5034_v40 = vor.u32 %v5645_v28, %v5033_v0  ;;  %v5270_v37 = vor.u32 %v5702_v38, %v5267_v53  ;;  %v4931_v38 = vld [vmem:[#allocation16 + $0x618] sm:$0xf0]  ;;  %v4993_v53 = vld [vmem:[#allocation16 + $0x690] sm:$0xf]  ;;  %v5677_v21 = vld [vmem:[#allocation16 + $0x7e4] sm:$0xf0] }
 0x2c7   :  { %2780 = vmatpush.bf16.msrb.mxu1 %v4810_v55  ;;  %v6787_v46 = vadd.f32 %v1789_v44, %v1666_v2  ;;  %v1667_v50 = vpop.f32.mrf.mxu1  ;;  %v4961_v55 = vld [vmem:[#allocation16 + $0x650] sm:$0xf]  ;;  %v5251_v2 = vld [vmem:[#allocation16 + $0x898] sm:$0xf0] }
 0x2c8   :  { %2793 = vmatpush.bf16.msrb.mxu2 %v4814_v29  ;;  %2906 = vmatpush.bf16.msrb.mxu3 %v4874_v58  ;;  %v4963_v29 = vld [vmem:[#allocation16 + $0x658] sm:$0xf0]  ;;  %v5025_v58 = vld [vmem:[#allocation16 + $0x6d0] sm:$0xf]  ;;  %v4962_v48 = vor.u32 %v5627_v56, %v4961_v55  ;;  %v5002_v50 = vor.u32 %v5637_v54, %v5001_v33  ;;  %v5635_v55 = vld [vmem:[#allocation16 + $0x694] sm:$0xf0] }
 0x2c9   :  { %3671 = vmatpush.bf16.msra.mxu0 %v5294_v4  ;;  %v4966_v60 = vor.u32 %v5626_v57, %v4963_v29  ;;  %v5026_v36 = vor.u32 %v5643_v59, %v5025_v58  ;;  %v5625_v4 = vld [vmem:[#allocation16 + $0x644] sm:$0xf0]  ;;  %v4921_v57 = vld [vmem:[#allocation16 + $0x600] sm:$0xf]  ;;  %v5616_v58 = vld [vmem:[#allocation16 + $0x604] sm:$0xf]  ;;  %v4994_v59 = vor.u32 %v5635_v55, %v4993_v53 }
 0x2ca   :  { %v4954_v12 = vor.u32 %v5625_v4, %v4953_v63  ;;  %v5617_v29 = vld [vmem:[#allocation16 + $0x604] sm:$0xf0]  ;;  %v5105_v63 = vld [vmem:[#allocation16 + $0x770] sm:$0xf]  ;;  %v5656_v33 = vld [vmem:[#allocation16 + $0x744] sm:$0xf] }
 0x2cb   :  { %2781 = vmatpush.bf16.msrb.mxu1 %v4802_v5  ;;  %v5624_v5 = vld [vmem:[#allocation16 + $0x644] sm:$0xf]  ;;  %v5083_v54 = vld [vmem:[#allocation16 + $0x748] sm:$0xf0]  ;;  %v5075_v55 = vld [vmem:[#allocation16 + $0x738] sm:$0xf0] }
 0x2cc   :  { %2794 = vmatpush.bf16.msrb.mxu2 %v4806_v7  ;;  %2907 = vmatpush.bf16.msrb.mxu3 %v4866_v8  ;;  %v5262_v7 = vor.u32 %v5700_v24, %v5259_v34  ;;  %v4958_v15 = vor.u32 %v5624_v5, %v4955_v6  ;;  %v5107_v5 = vld [vmem:[#allocation16 + $0x778] sm:$0xf0]  ;;  %v5169_v6 = vld [vmem:[#allocation16 + $0x7f0] sm:$0xf] }
 0x2cd   :  { %3672 = vmatpush.bf16.msra.mxu0 %v5286_v11  ;;  %v1778_v25 = vpop.f32.mrf.mxu2  ;;  %v5639_v11 = vld [vmem:[#allocation16 + $0x6b4] sm:$0xf0] }
 0x2ce   :  { %v1791_v42 = vpop.f32.mrf.mxu3  ;;  %v5662_v25 = vld [vmem:[#allocation16 + $0x774] sm:$0xf] }
 0x2cf   :  { %2782 = vmatpush.bf16.msrb.mxu1 %v4794_v13  ;;  %v1902_v8 = vpop.f32.mrf.mxu1  ;;  %v5254_v13 = vor.u32 %v5698_v3, %v5251_v2  ;;  %v5679_v42 = vld [vmem:[#allocation16 + $0x7f4] sm:$0xf0]  ;;  %v5661_v3 = vld [vmem:[#allocation16 + $0x764] sm:$0xf0]  ;;  %v5660_v2 = vld [vmem:[#allocation16 + $0x764] sm:$0xf] }
 0x2d0   :  { %2795 = vmatpush.bf16.msrb.mxu2 %v4798_v22  ;;  %2908 = vmatpush.bf16.msrb.mxu3 %v4858_v30  ;;  %v1919_v9 = vadd.f32 %v1902_v8, %v1793_v43  ;;  %v5696_v22 = vld [vmem:[#allocation16 + $0x884] sm:$0xf]  ;;  %v5243_v30 = vld [vmem:[#allocation16 + $0x888] sm:$0xf0] }
 0x2d1   :  { %3673 = vmatpush.bf16.msra.mxu0 %v5278_v49  ;;  %v5246_v44 = vor.u32 %v5696_v22, %v5243_v30  ;;  %v4929_v49 = vld [vmem:[#allocation16 + $0x610] sm:$0xf]  ;;  %v5091_v30 = vld [vmem:[#allocation16 + $0x758] sm:$0xf0] }
 0x2d2   :  { %2783 = vmatmul.bf16.vlgmr.msrb.gmra.mxu1 %v2677_v47 }
 0x2d3   :  { %3027 = vmatpush.bf16.msra.mxu1 %v4978_v45  ;;  %2796 = vmatmul.bf16.vlgmr.msrb.gmra.mxu2 %v2677_v47  ;;  %v4937_v45 = vld [vmem:[#allocation16 + $0x620] sm:$0xf]  ;;  %v4942_v47 = vor.u32 %v5620_v10, %v4939_v32 }
 0x2d4   :  { %3040 = vmatpush.bf16.msra.mxu2 %v4982_v23  ;;  %3153 = vmatpush.bf16.msra.mxu3 %v5042_v52  ;;  %v5010_v23 = vor.u32 %v5639_v11, %v5009_v20  ;;  %v4938_v28 = vor.u32 %v5621_v31, %v4937_v45  ;;  %v5102_v20 = vor.u32 %v5660_v2, %v5099_v14  ;;  %v5153_v45 = vld [vmem:[#allocation16 + $0x7d0] sm:$0xf]  ;;  %v5049_v2 = vld [vmem:[#allocation16 + $0x700] sm:$0xf] }
 0x2d5   :  { %2909 = vmatmul.bf16.vlgmr.msrb.gmra.mxu3 %v6751_v62  ;;  %v5641_v62 = vld [vmem:[#allocation16 + $0x6c4] sm:$0xf0]  ;;  %3674 = vmatpush.bf16.msra.mxu0 %v5270_v37  ;;  %v4923_v37 = vld [vmem:[#allocation16 + $0x608] sm:$0xf0] }
 0x2d6   :  { %v5018_v16 = vor.u32 %v5641_v62, %v5017_v18  ;;  %v1915_v52 = vpop.f32.mrf.mxu2  ;;  %v4922_v18 = vor.u32 %v5617_v29, %v4921_v57  ;;  %v4926_v62 = vor.u32 %v5616_v58, %v4923_v37  ;;  %v5653_v37 = vld [vmem:[#allocation16 + $0x724] sm:$0xf0] }
 0x2d7   :  { %3028 = vmatpush.bf16.msra.mxu1 %v4970_v39  ;;  %v6791_v61 = vadd.f32 %v1915_v52, %v6787_v46  ;;  %v1904_v0 = vpop.f32.mrf.mxu1  ;;  %v5619_v39 = vld [vmem:[#allocation16 + $0x614] sm:$0xf0]  ;;  %v5081_v52 = vld [vmem:[#allocation16 + $0x740] sm:$0xf] }
 0x2d8   :  { %3041 = vmatpush.bf16.msra.mxu2 %v4974_v51  ;;  %3154 = vmatpush.bf16.msra.mxu3 %v5034_v40  ;;  %v2028_v19 = vpop.f32.mrf.mxu3  ;;  %v5618_v51 = vld [vmem:[#allocation16 + $0x614] sm:$0xf]  ;;  %v6795_v40 = vld [vmem:[#allocation2 + $0x44] sm:$0xf]  ;;  %v4930_v46 = vor.u32 %v5619_v39, %v4929_v49  ;;  %v5673_v0 = vld [vmem:[#allocation16 + $0x7c4] sm:$0xf0] }
 0x2d9   :  { %3675 = vmatpush.bf16.msra.mxu0 %v5262_v7  ;;  %v6793_v43 = vadd.f32 %v2028_v19, %v1919_v9  ;;  %v4934_v56 = vor.u32 %v5618_v51, %v4931_v38  ;;  %v5110_v9 = vor.u32 %v5662_v25, %v5107_v5  ;;  %v5657_v19 = vld [vmem:[#allocation16 + $0x744] sm:$0xf0]  ;;  %v5073_v39 = vld [vmem:[#allocation16 + $0x730] sm:$0xf]  ;;  %v5655_v51 = vld [vmem:[#allocation16 + $0x734] sm:$0xf0] }
 0x2da   :  { %v5654_v38 = vld [vmem:[#allocation16 + $0x734] sm:$0xf]  ;;  %v5074_v57 = vor.u32 %v5655_v51, %v5073_v39  ;;  %v3181_v39 = vld [vmem:[#allocation2 + $0x38] sm:$0xf] }
 0x2db   :  { %3029 = vmatpush.bf16.msra.mxu1 %v4962_v48  ;;  %v4985_v48 = vld [vmem:[#allocation16 + $0x680] sm:$0xf]  ;;  %v5078_v29 = vor.u32 %v5654_v38, %v5075_v55  ;;  %v5217_v55 = vld [vmem:[#allocation16 + $0x850] sm:$0xf] }
 0x2dc   :  { %3042 = vmatpush.bf16.msra.mxu2 %v4966_v60  ;;  %3155 = vmatpush.bf16.msra.mxu3 %v5026_v36  ;;  %v5633_v60 = vld [vmem:[#allocation16 + $0x684] sm:$0xf0]  ;;  %v5663_v36 = vld [vmem:[#allocation16 + $0x774] sm:$0xf0] }
 0x2dd   :  { %3676 = vmatpush.bf16.msra.mxu0 %v5254_v13  ;;  %v4986_v7 = vor.u32 %v5633_v60, %v4985_v48  ;;  %v5106_v8 = vor.u32 %v5663_v36, %v5105_v63  ;;  %v5089_v13 = vld [vmem:[#allocation16 + $0x750] sm:$0xf]  ;;  %v5652_v48 = vld [vmem:[#allocation16 + $0x724] sm:$0xf]  ;;  %v5067_v60 = vld [vmem:[#allocation16 + $0x728] sm:$0xf0] }
 0x2de   :  { %v1917_v24 = vpop.f32.mrf.mxu2 }
 0x2df   :  { %3030 = vmatpush.bf16.msra.mxu1 %v4954_v12  ;;  %v6798_v4 = vpop.f32.mrf.mxu0  ;;  %v5170_v12 = vor.u32 %v5679_v42, %v5169_v6  ;;  %v5129_v24 = vld [vmem:[#allocation16 + $0x7a0] sm:$0xf]  ;;  %v5070_v42 = vor.u32 %v5652_v48, %v5067_v60 }
 0x2e0   :  { %3043 = vmatpush.bf16.msra.mxu2 %v4958_v15  ;;  %3156 = vmatpush.bf16.msra.mxu3 %v5018_v16  ;;  %v2030_v34 = vpop.f32.mrf.mxu3  ;;  %v5097_v15 = vld [vmem:[#allocation16 + $0x760] sm:$0xf] }
 0x2e1   :  { %3677 = vmatpush.bf16.msra.mxu0 %v5246_v44  ;;  %v5161_v16 = vld [vmem:[#allocation16 + $0x7e0] sm:$0xf]  ;;  %v5098_v35 = vor.u32 %v5661_v3, %v5097_v15  ;;  %v5669_v34 = vld [vmem:[#allocation16 + $0x7a4] sm:$0xf0]  ;;  %v5121_v15 = vld [vmem:[#allocation16 + $0x790] sm:$0xf] }
 0x2e2   :  { %v5162_v11 = vor.u32 %v5677_v21, %v5161_v16  ;;  %v5145_v44 = vld [vmem:[#allocation16 + $0x7c0] sm:$0xf]  ;;  %v5667_v3 = vld [vmem:[#allocation16 + $0x794] sm:$0xf0]  ;;  %v5649_v21 = vld [vmem:[#allocation16 + $0x704] sm:$0xf0] }
 0x2e3   :  { %3031 = vmatpush.bf16.msra.mxu1 %v4946_v27  ;;  %v5659_v27 = vld [vmem:[#allocation16 + $0x754] sm:$0xf0]  ;;  %v5122_v16 = vor.u32 %v5667_v3, %v5121_v15  ;;  %v5686_v15 = vld [vmem:[#allocation16 + $0x834] sm:$0xf]  ;;  %v5203_v3 = vld [vmem:[#allocation16 + $0x838] sm:$0xf0] }
 0x2e4   :  { %3044 = vmatpush.bf16.msra.mxu2 %v4950_v41  ;;  %3157 = vmatpush.bf16.msra.mxu3 %v5010_v23  ;;  %v5658_v41 = vld [vmem:[#allocation16 + $0x754] sm:$0xf]  ;;  %v5675_v23 = vld [vmem:[#allocation16 + $0x7d4] sm:$0xf0]  ;;  %v5090_v31 = vor.u32 %v5659_v27, %v5089_v13  ;;  %v5665_v13 = vld [vmem:[#allocation16 + $0x784] sm:$0xf0] }
 0x2e5   :  { %3678 = vmatmul.bf16.vlgmr.msra.gmra.mxu0 %v6795_v40  ;;  %v5094_v10 = vor.u32 %v5658_v41, %v5091_v30  ;;  %v5154_v32 = vor.u32 %v5675_v23, %v5153_v45  ;;  %v5233_v27 = vld [vmem:[#allocation16 + $0x870] sm:$0xf]  ;;  %v5694_v30 = vld [vmem:[#allocation16 + $0x874] sm:$0xf]  ;;  %v5235_v45 = vld [vmem:[#allocation16 + $0x878] sm:$0xf0]  ;;  %v5050_v23 = vor.u32 %v5649_v21, %v5049_v2 }
 0x2e6   :  { %v5703_v2 = vld [vmem:[#allocation16 + $0x8b4] sm:$0xf0]  ;;  %v5193_v21 = vld [vmem:[#allocation16 + $0x820] sm:$0xf] }
 0x2e7   :  { %3032 = vmatpush.bf16.msra.mxu1 %v4938_v28  ;;  %v2421_v22 = vpop.f32.mrf.mxu0 }
 0x2e8   :  { %3045 = vmatpush.bf16.msra.mxu2 %v4942_v47  ;;  %3158 = vmatpush.bf16.msra.mxu3 %v5002_v50  ;;  %v5082_v47 = vor.u32 %v5657_v19, %v5081_v52  ;;  %v5146_v50 = vor.u32 %v5673_v0, %v5145_v44  ;;  %v5695_v22 = vld [vmem:[#allocation16 + $0x874] sm:$0xf0]  ;;  %v5693_v0 = vld [vmem:[#allocation16 + $0x864] sm:$0xf0] }
 0x2e9   :  { %v5234_v19 = vor.u32 %v5695_v22, %v5233_v27  ;;  %v5257_v27 = vld [vmem:[#allocation16 + $0x8a0] sm:$0xf] }
 0x2eb   :  { %3033 = vmatpush.bf16.msra.mxu1 %v4930_v46  ;;  %v5137_v46 = vld [vmem:[#allocation16 + $0x7b0] sm:$0xf] }
 0x2ec   :  { %3046 = vmatpush.bf16.msra.mxu2 %v4934_v56  ;;  %3159 = vmatpush.bf16.msra.mxu3 %v4994_v59  ;;  %v5671_v56 = vld [vmem:[#allocation16 + $0x7b4] sm:$0xf0]  ;;  %v5065_v59 = vld [vmem:[#allocation16 + $0x720] sm:$0xf] }
 0x2ed   :  { %v5138_v58 = vor.u32 %v5671_v56, %v5137_v46  ;;  %v5066_v6 = vor.u32 %v5653_v37, %v5065_v59  ;;  %v5691_v56 = vld [vmem:[#allocation16 + $0x854] sm:$0xf0] }
 0x2ee   :  { %v5707_v59 = vld [vmem:[#allocation16 + $0x8d4] sm:$0xf0]  ;;  %v5218_v37 = vor.u32 %v5691_v56, %v5217_v55  ;;  %v5697_v56 = vld [vmem:[#allocation16 + $0x884] sm:$0xf0] }
 0x2ef   :  { %3034 = vmatpush.bf16.msra.mxu1 %v4922_v18  ;;  %v2041_v28 = vpop.f32.mrf.mxu1  ;;  %v6802_v53 = vpop.f32.mrf.mxu0  ;;  %v5130_v18 = vor.u32 %v5669_v34, %v5129_v24  ;;  %v5689_v24 = vld [vmem:[#allocation16 + $0x844] sm:$0xf0]  ;;  %v5688_v34 = vld [vmem:[#allocation16 + $0x844] sm:$0xf] }
 0x2f0   :  { %3047 = vmatpush.bf16.msra.mxu2 %v4926_v62  ;;  %3160 = vmatpush.bf16.msra.mxu3 %v4986_v7  ;;  %v2046_v49 = vadd.f32 %v2041_v28, %v6791_v61  ;;  %v5057_v62 = vld [vmem:[#allocation16 + $0x710] sm:$0xf]  ;;  %v5651_v7 = vld [vmem:[#allocation16 + $0x714] sm:$0xf0]  ;;  %v5692_v28 = vld [vmem:[#allocation16 + $0x864] sm:$0xf] }
 0x2f2   :  { %3035 = vmatmul.bf16.vlgmr.msra.gmra.mxu1 %v2929_v17 }
 0x2f3   :  { %3279 = vmatpush.bf16.msrb.mxu1 %v5106_v8  ;;  %3048 = vmatmul.bf16.vlgmr.msra.gmra.mxu2 %v2929_v17  ;;  %v5650_v8 = vld [vmem:[#allocation16 + $0x714] sm:$0xf]  ;;  %v5648_v17 = vld [vmem:[#allocation16 + $0x704] sm:$0xf] }
 0x2f4   :  { %3292 = vmatpush.bf16.msrb.mxu2 %v5110_v9  ;;  %3405 = vmatpush.bf16.msrb.mxu3 %v5170_v12  ;;  %v5059_v12 = vld [vmem:[#allocation16 + $0x718] sm:$0xf0] }
 0x2f5   :  { %3161 = vmatmul.bf16.vlgmr.msra.gmra.mxu3 %v6773_v26  ;;  %v5086_v26 = vor.u32 %v5656_v33, %v5083_v54  ;;  %v5062_v14 = vor.u32 %v5650_v8, %v5059_v12  ;;  %v5238_v33 = vor.u32 %v5694_v30, %v5235_v45  ;;  %v5225_v54 = vld [vmem:[#allocation16 + $0x860] sm:$0xf]  ;;  %v5201_v8 = vld [vmem:[#allocation16 + $0x830] sm:$0xf]  ;;  %v5687_v12 = vld [vmem:[#allocation16 + $0x834] sm:$0xf0] }
 0x2f6   :  { %v2154_v61 = vpop.f32.mrf.mxu2  ;;  %v5226_v51 = vor.u32 %v5693_v0, %v5225_v54  ;;  %v5699_v0 = vld [vmem:[#allocation16 + $0x894] sm:$0xf0] }
 0x2f7   :  { %3280 = vmatpush.bf16.msrb.mxu1 %v5098_v35  ;;  %v6805_v63 = vadd.f32 %v2154_v61, %v6793_v43  ;;  %v2043_v5 = vpop.f32.mrf.mxu1  ;;  %v2673_v9 = vpop.f32.mrf.mxu0  ;;  %v5058_v43 = vor.u32 %v5651_v7, %v5057_v62  ;;  %v5051_v35 = vld [vmem:[#allocation16 + $0x708] sm:$0xf0]  ;;  %v5209_v61 = vld [vmem:[#allocation16 + $0x840] sm:$0xf] }
 0x2f8   :  { %3293 = vmatpush.bf16.msrb.mxu2 %v5102_v20  ;;  %3406 = vmatpush.bf16.msrb.mxu3 %v5162_v11  ;;  %v2167_v36 = vpop.f32.mrf.mxu3  ;;  %v5113_v11 = vld [vmem:[#allocation16 + $0x780] sm:$0xf]  ;;  %v5210_v62 = vor.u32 %v5689_v24, %v5209_v61 }
 0x2f9   :  { %v6807_v25 = vadd.f32 %v2167_v36, %v2046_v49  ;;  %v5114_v52 = vor.u32 %v5665_v13, %v5113_v11  ;;  %v5211_v36 = vld [vmem:[#allocation16 + $0x848] sm:$0xf0] }
 0x2fa   :  { %v5214_v7 = vor.u32 %v5688_v34, %v5211_v36 }
 0x2fb   :  { %3281 = vmatpush.bf16.msrb.mxu1 %v5090_v31  ;;  %v5297_v31 = vld [vmem:[#allocation16 + $0x8f0] sm:$0xf] }
 0x2fc   :  { %3294 = vmatpush.bf16.msrb.mxu2 %v5094_v10  ;;  %3407 = vmatpush.bf16.msrb.mxu3 %v5154_v32  ;;  %v5711_v10 = vld [vmem:[#allocation16 + $0x8f4] sm:$0xf0]  ;;  %v5054_v32 = vor.u32 %v5648_v17, %v5051_v35  ;;  %v5685_v35 = vld [vmem:[#allocation16 + $0x824] sm:$0xf0] }
 0x2fd   :  { %v5298_v44 = vor.u32 %v5711_v10, %v5297_v31  ;;  %v5185_v10 = vld [vmem:[#allocation16 + $0x810] sm:$0xf] }
 0x2fe   :  { %v2156_v20 = vpop.f32.mrf.mxu2 }
 0x2ff   :  { %3282 = vmatpush.bf16.msrb.mxu1 %v5082_v47  ;;  %v5227_v47 = vld [vmem:[#allocation16 + $0x868] sm:$0xf0]  ;;  %v5684_v20 = vld [vmem:[#allocation16 + $0x824] sm:$0xf] }
 0x300   :  { %3295 = vmatpush.bf16.msrb.mxu2 %v5086_v26  ;;  %3408 = vmatpush.bf16.msrb.mxu3 %v5146_v50  ;;  %v2169_v41 = vpop.f32.mrf.mxu3  ;;  %v5289_v26 = vld [vmem:[#allocation16 + $0x8e0] sm:$0xf]  ;;  %v5709_v50 = vld [vmem:[#allocation16 + $0x8e4] sm:$0xf0]  ;;  %v5230_v38 = vor.u32 %v5692_v28, %v5227_v47 }
 0x301   :  { %v5290_v46 = vor.u32 %v5709_v50, %v5289_v26  ;;  %v5701_v41 = vld [vmem:[#allocation16 + $0x8a4] sm:$0xf0]  ;;  %v5177_v47 = vld [vmem:[#allocation16 + $0x800] sm:$0xf] }
 0x302   :  { %v5681_v50 = vld [vmem:[#allocation16 + $0x804] sm:$0xf0] }
 0x303   :  { %3283 = vmatpush.bf16.msrb.mxu1 %v5074_v57  ;;  %v6809_v49 = vpop.f32.mrf.mxu0  ;;  %v5690_v57 = vld [vmem:[#allocation16 + $0x854] sm:$0xf] }
 0x304   :  { %3296 = vmatpush.bf16.msrb.mxu2 %v5078_v29  ;;  %3409 = vmatpush.bf16.msrb.mxu3 %v5138_v58  ;;  %v5219_v29 = vld [vmem:[#allocation16 + $0x858] sm:$0xf0]  ;;  %v5281_v58 = vld [vmem:[#allocation16 + $0x8d0] sm:$0xf] }
 0x305   :  { %v5222_v48 = vor.u32 %v5690_v57, %v5219_v29  ;;  %v5282_v60 = vor.u32 %v5707_v59, %v5281_v58  ;;  %v5178_v57 = vor.u32 %v5681_v50, %v5177_v47  ;;  %v3433_v59 = vld [vmem:[#allocation2 + $0x40] sm:$0xf] }
 0x306   :  { %v5720_v50 = vld [vmem:[%s6891_s13 + $0x40] sm:$0xff] }
 0x307   :  { %3284 = vmatpush.bf16.msrb.mxu1 %v5066_v6  ;;  %v5273_v6 = vld [vmem:[#allocation16 + $0x8c0] sm:$0xf] }
 0x308   :  { %3297 = vmatpush.bf16.msrb.mxu2 %v5070_v42  ;;  %3410 = vmatpush.bf16.msrb.mxu3 %v5130_v18  ;;  %v5705_v42 = vld [vmem:[#allocation16 + $0x8c4] sm:$0xf0] }
 0x309   :  { %v5274_v9 = vor.u32 %v5705_v42, %v5273_v6 }
 0x30b   :  { %3285 = vmatpush.bf16.msrb.mxu1 %v5058_v43  ;;  %v2925_v5 = vpop.f32.mrf.mxu0  ;;  %v5265_v43 = vld [vmem:[#allocation16 + $0x8b0] sm:$0xf] }
 0x30c   :  { %3298 = vmatpush.bf16.msrb.mxu2 %v5062_v14  ;;  %3411 = vmatpush.bf16.msrb.mxu3 %v5122_v16  ;;  %v5202_v14 = vor.u32 %v5687_v12, %v5201_v8  ;;  %v5206_v16 = vor.u32 %v5686_v15, %v5203_v3  ;;  %v5266_v17 = vor.u32 %v5703_v2, %v5265_v43 }
 0x30f   :  { %3286 = vmatpush.bf16.msrb.mxu1 %v5050_v23  ;;  %v2280_v18 = vpop.f32.mrf.mxu1  ;;  %v5194_v23 = vor.u32 %v5685_v35, %v5193_v21 }
 0x310   :  { %3299 = vmatpush.bf16.msrb.mxu2 %v5054_v32  ;;  %3412 = vmatpush.bf16.msrb.mxu3 %v5114_v52  ;;  %v5258_v32 = vor.u32 %v5701_v41, %v5257_v27  ;;  %v5683_v52 = vld [vmem:[#allocation16 + $0x814] sm:$0xf0]  ;;  %v5726_v27 = vld [vmem:[%s6891_s13 + $0x70] sm:$0xff] }
 0x311   :  { %v5186_v28 = vor.u32 %v5683_v52, %v5185_v10  ;;  %v5714_v52 = vld [vmem:[%s6891_s13 + $0x10] sm:$0xff] }
 0x312   :  { %3287 = vmatmul.bf16.vlgmr.msrb.gmra.mxu1 %v3181_v39 }
 0x313   :  { %3531 = vmatpush.bf16.msra.mxu1 %v5234_v19  ;;  %3300 = vmatmul.bf16.vlgmr.msrb.gmra.mxu2 %v3181_v39  ;;  %v5682_v19 = vld [vmem:[#allocation16 + $0x814] sm:$0xf]  ;;  %v5680_v39 = vld [vmem:[#allocation16 + $0x804] sm:$0xf] }
 0x314   :  { %3544 = vmatpush.bf16.msra.mxu2 %v5238_v33  ;;  %3657 = vmatpush.bf16.msra.mxu3 %v5298_v44  ;;  %v5187_v33 = vld [vmem:[#allocation16 + $0x818] sm:$0xf0]  ;;  %v5249_v44 = vld [vmem:[#allocation16 + $0x890] sm:$0xf] }
 0x315   :  { %3413 = vmatmul.bf16.vlgmr.msrb.gmra.mxu3 %v6783_v1  ;;  %v2297_v1 = vadd.f32 %v2280_v18, %v6805_v63  ;;  %v5195_v63 = vld [vmem:[#allocation16 + $0x828] sm:$0xf0]  ;;  %v5250_v26 = vor.u32 %v5699_v0, %v5249_v44  ;;  %v5713_v0 = vld [vmem:[%s6891_s13 + $0x8] sm:$0xff] }
 0x316   :  { %v2293_v11 = vpop.f32.mrf.mxu2  ;;  %v5198_v31 = vor.u32 %v5684_v20, %v5195_v63  ;;  %v5719_v20 = vld [vmem:[%s6891_s13 + $0x38] sm:$0xff] }
 0x317   :  { %3532 = vmatpush.bf16.msra.mxu1 %v5226_v51  ;;  %v2298_v22 = vadd.f32 %v2293_v11, %v6807_v25  ;;  %v2282_v45 = vpop.f32.mrf.mxu1  ;;  %v5190_v25 = vor.u32 %v5682_v19, %v5187_v33  ;;  %v5179_v51 = vld [vmem:[#allocation16 + $0x808] sm:$0xf0]  ;;  %v5727_v63 = vld [vmem:[%s6891_s13 + $0x78] sm:$0xff] }
 0x318   :  { %3545 = vmatpush.bf16.msra.mxu2 %v5230_v38  ;;  %3658 = vmatpush.bf16.msra.mxu3 %v5290_v46  ;;  %v2406_v13 = vpop.f32.mrf.mxu3  ;;  %v5241_v46 = vld [vmem:[#allocation16 + $0x880] sm:$0xf]  ;;  %v5716_v45 = vld [vmem:[%s6891_s13 + $0x20] sm:$0xff] }
 0x319   :  { %v2423_v30 = vadd.f32 %v2406_v13, %v2297_v1  ;;  %v2424_v54 = vadd.f32 %v6798_v4, %v2298_v22  ;;  %v5182_v4 = vor.u32 %v5680_v39, %v5179_v51  ;;  %v5242_v29 = vor.u32 %v5697_v56, %v5241_v46  ;;  %v5718_v13 = vld [vmem:[%s6891_s13 + $0x30] sm:$0xff]  ;;  %v5717_v22 = vld [vmem:[%s6891_s13 + $0x28] sm:$0xff] }
 0x31b   :  { %3533 = vmatpush.bf16.msra.mxu1 %v5218_v37 }
 0x31c   :  { %3546 = vmatpush.bf16.msra.mxu2 %v5222_v48  ;;  %3659 = vmatpush.bf16.msra.mxu3 %v5282_v60 }
 0x31e   :  { %v2295_v38 = vpop.f32.mrf.mxu2 }
 0x31f   :  { %3534 = vmatpush.bf16.msra.mxu1 %v5210_v62 }
 0x320   :  { %3547 = vmatpush.bf16.msra.mxu2 %v5214_v7  ;;  %3660 = vmatpush.bf16.msra.mxu3 %v5274_v9  ;;  %v2408_v55 = vpop.f32.mrf.mxu3 }
 0x323   :  { %3535 = vmatpush.bf16.msra.mxu1 %v5202_v14  ;;  %v6815_v58 = vpop.f32.mrf.mxu0 }
 0x324   :  { %3548 = vmatpush.bf16.msra.mxu2 %v5206_v16  ;;  %3661 = vmatpush.bf16.msra.mxu3 %v5266_v17 }
 0x327   :  { %3536 = vmatpush.bf16.msra.mxu1 %v5194_v23  ;;  %v5724_v23 = vld [vmem:[%s6891_s13 + $0x60] sm:$0xff] }
 0x328   :  { %3549 = vmatpush.bf16.msra.mxu2 %v5198_v31  ;;  %3662 = vmatpush.bf16.msra.mxu3 %v5258_v32  ;;  %v5715_v31 = vld [vmem:[%s6891_s13 + $0x18] sm:$0xff] }
 0x329   :  { %v5723_v32 = vld [vmem:[%s6891_s13 + $0x58] sm:$0xff] }
 0x32b   :  { %3537 = vmatpush.bf16.msra.mxu1 %v5186_v28  ;;  %v3177_v37 = vpop.f32.mrf.mxu0  ;;  %v5721_v28 = vld [vmem:[%s6891_s13 + $0x48] sm:$0xff] }
 0x32c   :  { %3550 = vmatpush.bf16.msra.mxu2 %v5190_v25  ;;  %3663 = vmatpush.bf16.msra.mxu3 %v5250_v26  ;;  %v5712_v25 = vld [vmem:[%s6891_s13] sm:$0xff] }
 0x32f   :  { %3538 = vmatpush.bf16.msra.mxu1 %v5178_v57  ;;  %v2532_v48 = vpop.f32.mrf.mxu1 }
 0x330   :  { %3551 = vmatpush.bf16.msra.mxu2 %v5182_v4  ;;  %3664 = vmatpush.bf16.msra.mxu3 %v5242_v29  ;;  %v2549_v61 = vadd.f32 %v2532_v48, %v2423_v30  ;;  %v5725_v30 = vld [vmem:[%s6891_s13 + $0x68] sm:$0xff]  ;;  %v3685_v29 = vld [vmem:[#allocation17] sm:$0x3] }
 0x332   :  { %3539 = vmatmul.bf16.vlgmr.msra.gmra.mxu1 %v3433_v59 }
 0x333   :  { %3552 = vmatmul.bf16.vlgmr.msra.gmra.mxu2 %v3433_v59  ;;  %3665 = vmatmul.bf16.vlgmr.msra.gmra.mxu3 %v6795_v40 }
 0x334   :  { %3845 = vmatpush.bf16.msrb.mxu1 %v5719_v20  ;;  %3858 = vmatpush.bf16.msrb.mxu2 %v5727_v63  ;;  %v5810_v63 = vld [vmem:[#allocation22] ss:$0 sm:$0xff] }
 0x336   :  { %v2545_v60 = vpop.f32.mrf.mxu2 }
 0x337   :  { %v2550_v34 = vadd.f32 %v2545_v60, %v2424_v54  ;;  %v2534_v5 = vpop.f32.mrf.mxu1  ;;  %v5722_v54 = vld [vmem:[%s6891_s13 + $0x50] sm:$0xff]  ;;  %v3687_v60 = vperm.slane %v3685_v29, 0 }
 0x338   :  { %v2658_v24 = vpop.f32.mrf.mxu3  ;;  %3846 = vmatpush.bf16.msrb.mxu1 %v5718_v13  ;;  %3859 = vmatpush.bf16.msrb.mxu2 %v5726_v27 }
 0x339   :  { %v2675_v36 = vadd.f32 %v2658_v24, %v2549_v61  ;;  %v2676_v6 = vadd.f32 %v6802_v53, %v2550_v34  ;;  %v3688_v34 = vperm.slane %v3685_v29, 1 }
 0x33c   :  { %3847 = vmatpush.bf16.msrb.mxu1 %v5717_v22  ;;  %3860 = vmatpush.bf16.msrb.mxu2 %v5725_v30  ;;  %v5811_v22 = vld [vmem:[#allocation23] ss:$0 sm:$0xff] }
 0x33e   :  { %v2547_v42 = vpop.f32.mrf.mxu2 }
 0x340   :  { %v2660_v18 = vpop.f32.mrf.mxu3  ;;  %3848 = vmatpush.bf16.msrb.mxu1 %v5716_v45  ;;  %3861 = vmatpush.bf16.msrb.mxu2 %v5724_v23  ;;  %v5812_v45 = vld [vmem:[#allocation25] ss:$0 sm:$0xff] }
 0x343   :  { %v6819_v1 = vpop.f32.mrf.mxu0 }
 0x344   :  { %3849 = vmatpush.bf16.msrb.mxu1 %v5715_v31  ;;  %3862 = vmatpush.bf16.msrb.mxu2 %v5723_v32 }
 0x348   :  { %3850 = vmatpush.bf16.msrb.mxu1 %v5714_v52  ;;  %3863 = vmatpush.bf16.msrb.mxu2 %v5722_v54  ;;  %v5813_v52 = vld [vmem:[#allocation28] ss:$0 sm:$0xff] }
 0x34b   :  { %v3429_v62 = vpop.f32.mrf.mxu0 }
 0x34c   :  { %3851 = vmatpush.bf16.msrb.mxu1 %v5713_v0  ;;  %3864 = vmatpush.bf16.msrb.mxu2 %v5721_v28 }
 0x34f   :  { %v2784_v7 = vpop.f32.mrf.mxu1 }
 0x350   :  { %v2801_v8 = vadd.f32 %v2784_v7, %v2675_v36  ;;  %3852 = vmatpush.bf16.msrb.mxu1 %v5712_v25  ;;  %3865 = vmatpush.bf16.msrb.mxu2 %v5720_v50  ;;  %v3695_v36 = vld [vmem:[#allocation19] sm:$0x3] }
 0x351   :  { %v3697_v62 = vperm.slane %v3695_v36, 0 }
 0x356   :  { %v2797_v9 = vpop.f32.mrf.mxu2 }
 0x357   :  { %v2802_v40 = vadd.f32 %v2797_v9, %v2676_v6  ;;  %v2786_v3 = vpop.f32.mrf.mxu1 }
 0x358   :  { %v2910_v12 = vpop.f32.mrf.mxu3 }
 0x359   :  { %v2927_v15 = vadd.f32 %v2910_v12, %v2801_v8  ;;  %v2928_v39 = vadd.f32 %v6809_v49, %v2802_v40  ;;  %v3698_v8 = vperm.slane %v3695_v36, 1 }
 0x35e   :  { %v2799_v43 = vpop.f32.mrf.mxu2 }
 0x360   :  { %v2912_v2 = vpop.f32.mrf.mxu3 }
 0x362   :  { %v6821_v14 = vpop.f32.mrf.mxu0 }
 0x36a   :  { %v3681_v16 = vpop.f32.mrf.mxu0 }
 0x36f   :  { %v3036_v21 = vpop.f32.mrf.mxu1 }
 0x370   :  { %v3053_v38 = vadd.f32 %v3036_v21, %v2927_v15 }
 0x376   :  { %v3049_v17 = vpop.f32.mrf.mxu2 }
 0x377   :  { %v3038_v35 = vpop.f32.mrf.mxu1  ;;  %v3054_v51 = vadd.f32 %v3049_v17, %v2928_v39 }
 0x378   :  { %v3162_v53 = vpop.f32.mrf.mxu3  ;;  %v5728_v35 = vld [vmem:[#allocation26] sm:$0xff] }
 0x379   :  { %v3180_v55 = vadd.f32 %v6815_v58, %v3054_v51  ;;  %v3179_v46 = vadd.f32 %v3162_v53, %v3053_v38  ;;  %v3703_v58 = vld [vmem:[#allocation20] sm:$0x3] }
 0x37a   :  { %v3705_v12 = vperm.slane %v3703_v58, 0 }
 0x37e   :  { %v3051_v11 = vpop.f32.mrf.mxu2 }
 0x380   :  { %v3164_v41 = vpop.f32.mrf.mxu3 }
 0x38f   :  { %v3288_v10 = vpop.f32.mrf.mxu1 }
 0x390   :  { %v3305_v4 = vadd.f32 %v3288_v10, %v3179_v46 }
 0x396   :  { %v3301_v19 = vpop.f32.mrf.mxu2 }
 0x397   :  { %v3290_v44 = vpop.f32.mrf.mxu1  ;;  %v3306_v57 = vadd.f32 %v3301_v19, %v3180_v55 }
 0x398   :  { %v3414_v33 = vpop.f32.mrf.mxu3 }
 0x399   :  { %v3431_v59 = vadd.f32 %v3414_v33, %v3305_v4  ;;  %v3432_v37 = vadd.f32 %v6819_v1, %v3306_v57  ;;  %v3706_v1 = vperm.slane %v3703_v58, 1 }
 0x39e   :  { %v3303_v47 = vpop.f32.mrf.mxu2 }
 0x3a0   :  { %v3416_v26 = vpop.f32.mrf.mxu3 }
 0x3af   :  { %v3540_v56 = vpop.f32.mrf.mxu1 }
 0x3b0   :  { %v3557_v48 = vadd.f32 %v3540_v56, %v3431_v59 }
 0x3b6   :  { %v3553_v61 = vpop.f32.mrf.mxu2  ;;  %v3666_v5 = vpop.f32.mrf.mxu3 }
 0x3b7   :  { %v3558_v24 = vadd.f32 %v3553_v61, %v3432_v37  ;;  %v3683_v49 = vadd.f32 %v3666_v5, %v3557_v48  ;;  %v3542_v6 = vpop.f32.mrf.mxu1 }
 0x3b9   :  { %v3684_v42 = vadd.f32 %v6821_v14, %v3558_v24  ;;  %v3691_v18 = vadd.f32 %v3687_v60, %v3683_v49  ;;  %v5729_v14 = vld [vmem:[#allocation26 + $0x8] sm:$0xff] }
 0x3ba   :  { %3913 = vmatpush.bf16.msrb.mxu3 %v5729_v14 }
 0x3bb   :  { %v3692_v7 = vadd.f32 %v3688_v34, %v3684_v42  ;;  %v3693_v9 = vmax.f32 %v3691_v18, 0.0 }
 0x3bd   :  { %v3694_v40 = vmax.f32 %v3692_v7, 0.0  ;;  %v3701_v15 = vmul.f32 %v3697_v62, %v3693_v9 }
 0x3be   :  { %v3555_v3 = vpop.f32.mrf.mxu2  ;;  %v3668_v2 = vpop.f32.mrf.mxu3  ;;  %3914 = vmatpush.bf16.msrb.mxu3 %v5728_v35 }
 0x3bf   :  { %v3702_v43 = vmul.f32 %v3698_v8, %v3694_v40  ;;  %v3709_v16 = vadd.f32 %v3705_v12, %v3701_v15 }
 0x3c1   :  { %v3710_v21 = vadd.f32 %v3706_v1, %v3702_v43  ;;  %v3711_v17 = vpack.c.bf16 %v3709_v16, %v3709_v16 }
 0x3c3   :  { %v3712_v53 = vpack.c.bf16 %v3710_v21, %v3710_v21  ;;  %3853 = vmatmul.bf16.vlgmr.msrb.gmra.mxu1 %v3711_v17 }
 0x3c5   :  { %3866 = vmatmul.bf16.vlgmr.msrb.gmra.mxu2 %v3712_v53 }
 0x440   :  { %v3854_v20 = vpop.f32.mrf.mxu1 }
 0x441   :  { %v3855_v11 = vadd.f32 %v5810_v63, %v3854_v20 }
 0x448   :  { %v3867_v13 = vpop.f32.mrf.mxu2  ;;  %v3856_v27 = vpop.f32.mrf.mxu1 }
 0x449   :  { %v3868_v41 = vadd.f32 %v3867_v13, %v3855_v11 }
 0x44b   :  { %v3871_v30 = vmax.f32 %v3868_v41, 0.0 }
 0x44d   :  { %v3876_v23 = vmul.f32 %v5811_v22, %v3871_v30 }
 0x44f   :  { %v3881_v31 = vadd.f32 %v5812_v45, %v3876_v23 }
 0x450   :  { %v3869_v10 = vpop.f32.mrf.mxu2 }
 0x451   :  { %v3882_v32 = vpack.c.bf16 %v3881_v31, %v3881_v31 }
 0x453   :  { %5375 = vmatmul.msk.bf16.vlgmr.msrb.gmra.mxu3 %vm3903_vm1, %v3882_v32 }
 0x4d6   :  { %v3916_v19 = vpop.f32.mrf.mxu3 }
 0x4d7   :  { %v3917_v33 = vadd.f32 %v5813_v52, %v3916_v19 }
 0x4d9   :  { %v3920_v54 = vsub.f32 0.0, %v3917_v33 }
 0x4db   :  { %v3921_v44 = vmul.f32 1.442695, %v3920_v54 }
 0x4dd   :  { %5814 = vpow2.f32 %v3921_v44 }
 0x4de   :  { %v3918_v0 = vpop.f32.mrf.mxu3 }
 0x4e3   :  { %v5815_v28 = vpop.eup %5814 }
 0x4e4   :  { %v3923_v25 = vadd.f32 1.0, %v5815_v28 }
 0x4e6   :  { %5816 = vrcp.f32 %v3923_v25 }
 0x4ec   :  { %v5817_v47 = vpop.eup %5816 }
 0x4ed   :  { %3925 = vst [vmem:[%s6897_s19] sm:$0xff] %v5817_v47 }
 0x4ee   :  { %3930 = vsyncpa [#allocation4], 1 }
 0x4ef   :  { %3931 = vsyncpa [#allocation6], 1 }
 0x4f0   :  { %3932 = vsyncpa [#allocation9], 1 }
 0x4f1   :  { %3933 = vsyncpa [#allocation12], 1 }
 0x4f2   :  { %3934 = vsyncpa [#allocation15], 1 }
 0x4f3   :  { %3935 = vsyncpa [#allocation18], 1 }
 0x4f4   :  { %3936 = vsyncpa [#allocation21], 1 }
 0x4f5   :  { %3937 = vsyncpa [#allocation24], 1 }
 0x4f6   :  { %3938 = vsyncpa [#allocation27], 1 }

</bundles_post_ra>
